<compile_context>
chip_gen: v7x
topology: tpu7x:2x2x1
jax: 0.10.0
libtpu: 0.0.40
codegen_flags: <defaults>
</compile_context>

<pallas_src>
import functools

import numpy as np

import jax
import jax.numpy as jnp
from jax.experimental import pallas as pl
from jax.experimental.pallas import tpu as pltpu


# ----------------------------------------------------------------------------
# Pallas kernel: fused 3x3x3 conv (roll+mask im2col -> single MXU dot)
#                + folded BatchNorm bias + LeakyReLU
# ----------------------------------------------------------------------------
def _leaky_conv3d_kernel(x_ref, w_ref, m_ref, b_ref, o_ref, stack_ref, *,
                         offsets, rows_per_tap, alpha):
    # x_ref:     (R, P)  f32  R = batches*Cin rows (batch folded on sublanes, zero-padded
    #                         to rows_per_tap), P = D*H*W on the lane axis
    # w_ref:     (M, K)  f32  M = batches*Cout, K = n_taps*rows_per_tap; BN scale folded
    #                         in, block-diagonal over the folded batches
    # m_ref:     (T, P)  f32  0/1 validity mask per tap
    # b_ref:     (M, 1)  f32  folded BN bias
    # o_ref:     (M, P)       output (lane-dense stores; reshapes freely back to NCDHW)
    # stack_ref: (K, P)  f32  im2col patch matrix (VMEM scratch)
    _, P = x_ref.shape
    x = x_ref[...]                                   # load once, lives across the tap loop

    # ---- im2col: lane-roll + boundary mask per tap; dense tile-aligned stores ----------
    # rows_per_tap is a multiple of the f32 sublane grain (8) and each slab starts at an
    # aligned offset, so every store below is an unmasked full-tile vst.
    for t, off in enumerate(offsets):
        shifted = x if off == 0 else pltpu.roll(x, shift=(-off) % P, axis=1)
        piece = shifted * m_ref[pl.ds(t, 1), :]      # mask row broadcast over sublanes
        stack_ref[pl.ds(t * rows_per_tap, rows_per_tap), :] = piece

    # ---- single MXU contraction over the whole K axis, f32 accumulation ----------------
    acc = jnp.dot(w_ref[...], stack_ref[...], preferred_element_type=jnp.float32)

    # ---- folded BatchNorm bias (scale already in the weights) + LeakyReLU --------------
    y = acc + b_ref[...]
    o_ref[...] = jnp.where(y > 0, y, alpha * y).astype(o_ref.dtype)


# ----------------------------------------------------------------------------
# Wrapper: PyTorch-style NCDHW in / NCDHW out
# ----------------------------------------------------------------------------
def leaky_conv3d(x, weight, gamma, beta, mean, var, *, alpha=0.2, eps=1e-5,
                 batch_blocks=1):
    """x: (N, Cin, D, H, W). weight: (Cout, Cin, k, k, k). Returns (N, Cout, D, H, W).

    batch_blocks=1 folds the whole batch into one grid step (best on single-TC v5e/v6e);
    use batch_blocks=2 on v7x to keep a 2-wide "parallel" grid axis for megacore.
    """
    N, Cin, D, H, W = x.shape
    Cout, Cin2, Kd, Kh, Kw = weight.shape
    assert Cin2 == Cin and Kd == Kh == Kw, "cubic kernel expected"
    ks = Kd
    P = D * H * W
    assert P % 128 == 0, "flattened D*H*W must be a multiple of 128 (lane axis)"
    assert N % batch_blocks == 0
    G = batch_blocks
    NB = N // G                                    # batches folded per grid step

    SUB = 8                                        # f32 sublane grain
    rows = -(-(NB * Cin) // SUB) * SUB             # per-tap slab height (multiple of 8)
    M = NB * Cout                                  # output rows per grid step

    # tap enumeration (kd slowest, kw fastest) and flattened lane offsets
    rr = range(-(ks // 2), ks // 2 + 1)
    taps = [(dd, dh, dw) for dd in rr for dh in rr for dw in rr]
    offsets = tuple(dd * H * W + dh * W + dw for dd, dh, dw in taps)
    n_taps = len(taps)
    K = n_taps * rows

    # 0/1 validity masks per tap (host-side constants).  A lane-roll that wraps around the
    # P axis only ever lands on positions these masks zero out, so no padding is needed.
    di = np.arange(D)[:, None, None]
    hi = np.arange(H)[None, :, None]
    wi = np.arange(W)[None, None, :]
    masks = np.stack([
        (((di + dd) >= 0) & ((di + dd) < D) &
         ((hi + dh) >= 0) & ((hi + dh) < H) &
         ((wi + dw) >= 0) & ((wi + dw) < W)).reshape(P)
        for dd, dh, dw in taps]).astype(np.float32)                    # (T, P)
    masks = jnp.asarray(masks)

    # Fold BN (inference running stats): scale into the weights, bias into the epilogue.
    scale = gamma / jnp.sqrt(var + eps)
    bias = beta - mean * scale

    # Weights -> (M, K): tap-major; per tap a block-diagonal (NB*Cout, NB*Cin) block
    # (weights shared across the folded batches), zero-padded to `rows` K-rows per tap.
    w_taps = jnp.transpose(weight * scale[:, None, None, None, None],
                           (2, 3, 4, 0, 1)).reshape(n_taps, Cout, Cin)
    eye = jnp.eye(NB, dtype=w_taps.dtype)
    w_bd = jnp.einsum("ab,toi->taobi", eye, w_taps).reshape(n_taps, M, NB * Cin)
    w_bd = jnp.pad(w_bd, ((0, 0), (0, 0), (0, rows - NB * Cin)))
    w_full = jnp.transpose(w_bd, (1, 0, 2)).reshape(M, K)

    bias_full = jnp.tile(bias, NB).reshape(M, 1).astype(jnp.float32)

    # Activations: NCDHW -> (G, NB*Cin, P) is a free reshape; zero-pad rows to `rows`.
    x_g = x.reshape(G, NB * Cin, P)
    if rows > NB * Cin:
        x_g = jnp.pad(x_g, ((0, 0), (0, rows - NB * Cin), (0, 0)))

    kern = functools.partial(_leaky_conv3d_kernel, offsets=offsets,
                             rows_per_tap=rows, alpha=alpha)

    y = pl.pallas_call(
        kern,
        out_shape=jax.ShapeDtypeStruct((G, M, P), x.dtype),
        grid=(G,),
        in_specs=[
            pl.BlockSpec((None, rows, P), lambda g: (g, 0, 0)),    # activations (batch-block squeezed)
            pl.BlockSpec((M, K), lambda g: (0, 0)),                # folded / block-diag weights
            pl.BlockSpec((n_taps, P), lambda g: (0, 0)),           # tap masks
            pl.BlockSpec((M, 1), lambda g: (0, 0)),                # BN bias
        ],
        out_specs=pl.BlockSpec((None, M, P), lambda g: (g, 0, 0)),
        scratch_shapes=[pltpu.VMEM((K, P), jnp.float32)],          # im2col stack
        compiler_params=pltpu.CompilerParams(
            dimension_semantics=("parallel",)),
    )(x_g, w_full, masks, bias_full)

    # (G, NB*Cout, P) -> (N, Cout, D, H, W): batch-major rows, so this reshape is free.
    return y.reshape(N, Cout, D, H, W)


# ----------------------------------------------------------------------------
# Pure-JAX reference (module semantics in f32)
# ----------------------------------------------------------------------------
def leaky_conv3d_reference(x, weight, gamma, beta, mean, var, *, alpha=0.2, eps=1e-5):
    ks = weight.shape[-1]
    pad = ks // 2
    y = jax.lax.conv_general_dilated(
        x, weight, window_strides=(1, 1, 1),
        padding=((pad, pad),) * 3,
        dimension_numbers=("NCDHW", "OIDHW", "NCDHW"),
        precision=jax.lax.Precision.HIGHEST)
    scale = gamma / jnp.sqrt(var + eps)
    shift = beta - mean * scale
    y = y * scale[None, :, None, None, None] + shift[None, :, None, None, None]
    return jnp.where(y > 0, y, alpha * y)


if __name__ == "__main__":
    key = jax.random.PRNGKey(0)
    kx, kw, kg, kb, km, kv = jax.random.split(key, 6)

    # batch=2, in_channels=4, out_channels=8, depth(seq)=8, spatial=16x16
    N, Cin, Cout, D, H, W = 2, 4, 8, 8, 16, 16
    x = jax.random.normal(kx, (N, Cin, D, H, W), jnp.float32)          # NCDHW like PyTorch
    weight = jax.random.uniform(kw, (Cout, Cin, 3, 3, 3), jnp.float32,
                                minval=-0.1, maxval=0.1)
    gamma = 1.0 + 0.1 * jax.random.normal(kg, (Cout,), jnp.float32)
    beta = 0.1 * jax.random.normal(kb, (Cout,), jnp.float32)
    mean = 0.1 * jax.random.normal(km, (Cout,), jnp.float32)
    var = jnp.abs(1.0 + 0.1 * jax.random.normal(kv, (Cout,), jnp.float32))

    fwd = jax.jit(leaky_conv3d)
    out = jax.block_until_ready(fwd(x, weight, gamma, beta, mean, var))

    assert out.shape == (N, Cout, D, H, W), out.shape
    assert bool(jnp.all(jnp.isfinite(out)))

    ref = leaky_conv3d_reference(x, weight, gamma, beta, mean, var)
    max_err = float(jnp.max(jnp.abs(out - ref)))
    assert max_err < 1e-2, max_err

    print("KERNEL_OK")
</pallas_src>

<mosaic_0001>
module attributes {stable_mosaic.version = 11 : i64} {
  func.func @_leaky_conv3d_kernel(%arg0: i32, %arg1: memref<1x8x2048xf32, #tpu.memory_space<vmem>>, %arg2: memref<16x216xf32, #tpu.memory_space<vmem>>, %arg3: memref<27x2048xf32, #tpu.memory_space<vmem>>, %arg4: memref<16x1xf32, #tpu.memory_space<vmem>>, %arg5: memref<1x16x2048xf32, #tpu.memory_space<vmem>>, %arg6: memref<216x2048xf32, #tpu.memory_space<vmem>>) attributes {dimension_semantics = [#tpu.dimension_semantics<parallel>], iteration_bounds = array<i64: 1>, scalar_prefetch = 0 : i64, scratch_operands = 1 : i64, tpu.core_type = #tpu.core_type<tc>, window_params = [{transform_indices = @transform_0, window_bounds = array<i64: 1, 8, 2048>}, {pipeline_mode = #tpu.pipeline_mode<synchronous>, transform_indices = @transform_1, window_bounds = array<i64: 16, 216>}, {pipeline_mode = #tpu.pipeline_mode<synchronous>, transform_indices = @transform_2, window_bounds = array<i64: 27, 2048>}, {pipeline_mode = #tpu.pipeline_mode<synchronous>, transform_indices = @transform_3, window_bounds = array<i64: 16, 1>}, {transform_indices = @transform_4, window_bounds = array<i64: 1, 16, 2048>}]} {
    %c0 = arith.constant 0 : index
    %c0_0 = arith.constant 0 : index
    %c0_1 = arith.constant 0 : index
    %0 = vector.load %arg1[%c0, %c0_0, %c0_1] : memref<1x8x2048xf32, #tpu.memory_space<vmem>>, vector<1x8x2048xf32>
    %1 = vector.shape_cast %0 : vector<1x8x2048xf32> to vector<8x2048xf32>
    %c273_i32 = arith.constant 273 : i32
    %2 = tpu.dynamic_rotate %1 by %c273_i32 dim 1 : vector<8x2048xf32>, i32 -> vector<8x2048xf32>
    %c0_2 = arith.constant 0 : index
    %c0_3 = arith.constant 0 : index
    %3 = vector.load %arg3[%c0_2, %c0_3] : memref<27x2048xf32, #tpu.memory_space<vmem>>, vector<1x2048xf32>
    %4 = vector.broadcast %3 : vector<1x2048xf32> to vector<8x2048xf32>
    %5 = arith.mulf %2, %4 : vector<8x2048xf32>
    %c0_4 = arith.constant 0 : index
    %c0_5 = arith.constant 0 : index
    %6 = vector.load %arg6[%c0_4, %c0_5] : memref<216x2048xf32, #tpu.memory_space<vmem>>, vector<8x2048xf32>
    tpu.vector_store %arg6[%c0_4, %c0_5], %5 {strides = array<i32>} : memref<216x2048xf32, #tpu.memory_space<vmem>>, vector<8x2048xf32>,
    %c272_i32 = arith.constant 272 : i32
    %7 = tpu.dynamic_rotate %1 by %c272_i32 dim 1 : vector<8x2048xf32>, i32 -> vector<8x2048xf32>
    %c1 = arith.constant 1 : index
    %c0_6 = arith.constant 0 : index
    %8 = vector.load %arg3[%c1, %c0_6] : memref<27x2048xf32, #tpu.memory_space<vmem>>, vector<1x2048xf32>
    %9 = vector.broadcast %8 : vector<1x2048xf32> to vector<8x2048xf32>
    %10 = arith.mulf %7, %9 : vector<8x2048xf32>
    %c8 = arith.constant 8 : index
    %c0_7 = arith.constant 0 : index
    %11 = vector.load %arg6[%c8, %c0_7] : memref<216x2048xf32, #tpu.memory_space<vmem>>, vector<8x2048xf32>
    tpu.vector_store %arg6[%c8, %c0_7], %10 {strides = array<i32>} : memref<216x2048xf32, #tpu.memory_space<vmem>>, vector<8x2048xf32>,
    %c271_i32 = arith.constant 271 : i32
    %12 = tpu.dynamic_rotate %1 by %c271_i32 dim 1 : vector<8x2048xf32>, i32 -> vector<8x2048xf32>
    %c2 = arith.constant 2 : index
    %c0_8 = arith.constant 0 : index
    %13 = vector.load %arg3[%c2, %c0_8] : memref<27x2048xf32, #tpu.memory_space<vmem>>, vector<1x2048xf32>
    %14 = vector.broadcast %13 : vector<1x2048xf32> to vector<8x2048xf32>
    %15 = arith.mulf %12, %14 : vector<8x2048xf32>
    %c16 = arith.constant 16 : index
    %c0_9 = arith.constant 0 : index
    %16 = vector.load %arg6[%c16, %c0_9] : memref<216x2048xf32, #tpu.memory_space<vmem>>, vector<8x2048xf32>
    tpu.vector_store %arg6[%c16, %c0_9], %15 {strides = array<i32>} : memref<216x2048xf32, #tpu.memory_space<vmem>>, vector<8x2048xf32>,
    %c257_i32 = arith.constant 257 : i32
    %17 = tpu.dynamic_rotate %1 by %c257_i32 dim 1 : vector<8x2048xf32>, i32 -> vector<8x2048xf32>
    %c3 = arith.constant 3 : index
    %c0_10 = arith.constant 0 : index
    %18 = vector.load %arg3[%c3, %c0_10] : memref<27x2048xf32, #tpu.memory_space<vmem>>, vector<1x2048xf32>
    %19 = vector.broadcast %18 : vector<1x2048xf32> to vector<8x2048xf32>
    %20 = arith.mulf %17, %19 : vector<8x2048xf32>
    %c24 = arith.constant 24 : index
    %c0_11 = arith.constant 0 : index
    %21 = vector.load %arg6[%c24, %c0_11] : memref<216x2048xf32, #tpu.memory_space<vmem>>, vector<8x2048xf32>
    tpu.vector_store %arg6[%c24, %c0_11], %20 {strides = array<i32>} : memref<216x2048xf32, #tpu.memory_space<vmem>>, vector<8x2048xf32>,
    %c256_i32 = arith.constant 256 : i32
    %22 = tpu.dynamic_rotate %1 by %c256_i32 dim 1 : vector<8x2048xf32>, i32 -> vector<8x2048xf32>
    %c4 = arith.constant 4 : index
    %c0_12 = arith.constant 0 : index
    %23 = vector.load %arg3[%c4, %c0_12] : memref<27x2048xf32, #tpu.memory_space<vmem>>, vector<1x2048xf32>
    %24 = vector.broadcast %23 : vector<1x2048xf32> to vector<8x2048xf32>
    %25 = arith.mulf %22, %24 : vector<8x2048xf32>
    %c32 = arith.constant 32 : index
    %c0_13 = arith.constant 0 : index
    %26 = vector.load %arg6[%c32, %c0_13] : memref<216x2048xf32, #tpu.memory_space<vmem>>, vector<8x2048xf32>
    tpu.vector_store %arg6[%c32, %c0_13], %25 {strides = array<i32>} : memref<216x2048xf32, #tpu.memory_space<vmem>>, vector<8x2048xf32>,
    %c255_i32 = arith.constant 255 : i32
    %27 = tpu.dynamic_rotate %1 by %c255_i32 dim 1 : vector<8x2048xf32>, i32 -> vector<8x2048xf32>
    %c5 = arith.constant 5 : index
    %c0_14 = arith.constant 0 : index
    %28 = vector.load %arg3[%c5, %c0_14] : memref<27x2048xf32, #tpu.memory_space<vmem>>, vector<1x2048xf32>
    %29 = vector.broadcast %28 : vector<1x2048xf32> to vector<8x2048xf32>
    %30 = arith.mulf %27, %29 : vector<8x2048xf32>
    %c40 = arith.constant 40 : index
    %c0_15 = arith.constant 0 : index
    %31 = vector.load %arg6[%c40, %c0_15] : memref<216x2048xf32, #tpu.memory_space<vmem>>, vector<8x2048xf32>
    tpu.vector_store %arg6[%c40, %c0_15], %30 {strides = array<i32>} : memref<216x2048xf32, #tpu.memory_space<vmem>>, vector<8x2048xf32>,
    %c241_i32 = arith.constant 241 : i32
    %32 = tpu.dynamic_rotate %1 by %c241_i32 dim 1 : vector<8x2048xf32>, i32 -> vector<8x2048xf32>
    %c6 = arith.constant 6 : index
    %c0_16 = arith.constant 0 : index
    %33 = vector.load %arg3[%c6, %c0_16] : memref<27x2048xf32, #tpu.memory_space<vmem>>, vector<1x2048xf32>
    %34 = vector.broadcast %33 : vector<1x2048xf32> to vector<8x2048xf32>
    %35 = arith.mulf %32, %34 : vector<8x2048xf32>
    %c48 = arith.constant 48 : index
    %c0_17 = arith.constant 0 : index
    %36 = vector.load %arg6[%c48, %c0_17] : memref<216x2048xf32, #tpu.memory_space<vmem>>, vector<8x2048xf32>
    tpu.vector_store %arg6[%c48, %c0_17], %35 {strides = array<i32>} : memref<216x2048xf32, #tpu.memory_space<vmem>>, vector<8x2048xf32>,
    %c240_i32 = arith.constant 240 : i32
    %37 = tpu.dynamic_rotate %1 by %c240_i32 dim 1 : vector<8x2048xf32>, i32 -> vector<8x2048xf32>
    %c7 = arith.constant 7 : index
    %c0_18 = arith.constant 0 : index
    %38 = vector.load %arg3[%c7, %c0_18] : memref<27x2048xf32, #tpu.memory_space<vmem>>, vector<1x2048xf32>
    %39 = vector.broadcast %38 : vector<1x2048xf32> to vector<8x2048xf32>
    %40 = arith.mulf %37, %39 : vector<8x2048xf32>
    %c56 = arith.constant 56 : index
    %c0_19 = arith.constant 0 : index
    %41 = vector.load %arg6[%c56, %c0_19] : memref<216x2048xf32, #tpu.memory_space<vmem>>, vector<8x2048xf32>
    tpu.vector_store %arg6[%c56, %c0_19], %40 {strides = array<i32>} : memref<216x2048xf32, #tpu.memory_space<vmem>>, vector<8x2048xf32>,
    %c239_i32 = arith.constant 239 : i32
    %42 = tpu.dynamic_rotate %1 by %c239_i32 dim 1 : vector<8x2048xf32>, i32 -> vector<8x2048xf32>
    %c8_20 = arith.constant 8 : index
    %c0_21 = arith.constant 0 : index
    %43 = vector.load %arg3[%c8_20, %c0_21] : memref<27x2048xf32, #tpu.memory_space<vmem>>, vector<1x2048xf32>
    %44 = vector.broadcast %43 : vector<1x2048xf32> to vector<8x2048xf32>
    %45 = arith.mulf %42, %44 : vector<8x2048xf32>
    %c64 = arith.constant 64 : index
    %c0_22 = arith.constant 0 : index
    %46 = vector.load %arg6[%c64, %c0_22] : memref<216x2048xf32, #tpu.memory_space<vmem>>, vector<8x2048xf32>
    tpu.vector_store %arg6[%c64, %c0_22], %45 {strides = array<i32>} : memref<216x2048xf32, #tpu.memory_space<vmem>>, vector<8x2048xf32>,
    %c17_i32 = arith.constant 17 : i32
    %47 = tpu.dynamic_rotate %1 by %c17_i32 dim 1 : vector<8x2048xf32>, i32 -> vector<8x2048xf32>
    %c9 = arith.constant 9 : index
    %c0_23 = arith.constant 0 : index
    %48 = vector.load %arg3[%c9, %c0_23] : memref<27x2048xf32, #tpu.memory_space<vmem>>, vector<1x2048xf32>
    %49 = vector.broadcast %48 : vector<1x2048xf32> to vector<8x2048xf32>
    %50 = arith.mulf %47, %49 : vector<8x2048xf32>
    %c72 = arith.constant 72 : index
    %c0_24 = arith.constant 0 : index
    %51 = vector.load %arg6[%c72, %c0_24] : memref<216x2048xf32, #tpu.memory_space<vmem>>, vector<8x2048xf32>
    tpu.vector_store %arg6[%c72, %c0_24], %50 {strides = array<i32>} : memref<216x2048xf32, #tpu.memory_space<vmem>>, vector<8x2048xf32>,
    %c16_i32 = arith.constant 16 : i32
    %52 = tpu.dynamic_rotate %1 by %c16_i32 dim 1 : vector<8x2048xf32>, i32 -> vector<8x2048xf32>
    %c10 = arith.constant 10 : index
    %c0_25 = arith.constant 0 : index
    %53 = vector.load %arg3[%c10, %c0_25] : memref<27x2048xf32, #tpu.memory_space<vmem>>, vector<1x2048xf32>
    %54 = vector.broadcast %53 : vector<1x2048xf32> to vector<8x2048xf32>
    %55 = arith.mulf %52, %54 : vector<8x2048xf32>
    %c80 = arith.constant 80 : index
    %c0_26 = arith.constant 0 : index
    %56 = vector.load %arg6[%c80, %c0_26] : memref<216x2048xf32, #tpu.memory_space<vmem>>, vector<8x2048xf32>
    tpu.vector_store %arg6[%c80, %c0_26], %55 {strides = array<i32>} : memref<216x2048xf32, #tpu.memory_space<vmem>>, vector<8x2048xf32>,
    %c15_i32 = arith.constant 15 : i32
    %57 = tpu.dynamic_rotate %1 by %c15_i32 dim 1 : vector<8x2048xf32>, i32 -> vector<8x2048xf32>
    %c11 = arith.constant 11 : index
    %c0_27 = arith.constant 0 : index
    %58 = vector.load %arg3[%c11, %c0_27] : memref<27x2048xf32, #tpu.memory_space<vmem>>, vector<1x2048xf32>
    %59 = vector.broadcast %58 : vector<1x2048xf32> to vector<8x2048xf32>
    %60 = arith.mulf %57, %59 : vector<8x2048xf32>
    %c88 = arith.constant 88 : index
    %c0_28 = arith.constant 0 : index
    %61 = vector.load %arg6[%c88, %c0_28] : memref<216x2048xf32, #tpu.memory_space<vmem>>, vector<8x2048xf32>
    tpu.vector_store %arg6[%c88, %c0_28], %60 {strides = array<i32>} : memref<216x2048xf32, #tpu.memory_space<vmem>>, vector<8x2048xf32>,
    %c1_i32 = arith.constant 1 : i32
    %62 = tpu.dynamic_rotate %1 by %c1_i32 dim 1 : vector<8x2048xf32>, i32 -> vector<8x2048xf32>
    %c12 = arith.constant 12 : index
    %c0_29 = arith.constant 0 : index
    %63 = vector.load %arg3[%c12, %c0_29] : memref<27x2048xf32, #tpu.memory_space<vmem>>, vector<1x2048xf32>
    %64 = vector.broadcast %63 : vector<1x2048xf32> to vector<8x2048xf32>
    %65 = arith.mulf %62, %64 : vector<8x2048xf32>
    %c96 = arith.constant 96 : index
    %c0_30 = arith.constant 0 : index
    %66 = vector.load %arg6[%c96, %c0_30] : memref<216x2048xf32, #tpu.memory_space<vmem>>, vector<8x2048xf32>
    tpu.vector_store %arg6[%c96, %c0_30], %65 {strides = array<i32>} : memref<216x2048xf32, #tpu.memory_space<vmem>>, vector<8x2048xf32>,
    %c13 = arith.constant 13 : index
    %c0_31 = arith.constant 0 : index
    %67 = vector.load %arg3[%c13, %c0_31] : memref<27x2048xf32, #tpu.memory_space<vmem>>, vector<1x2048xf32>
    %68 = vector.broadcast %67 : vector<1x2048xf32> to vector<8x2048xf32>
    %69 = arith.mulf %1, %68 : vector<8x2048xf32>
    %c104 = arith.constant 104 : index
    %c0_32 = arith.constant 0 : index
    %70 = vector.load %arg6[%c104, %c0_32] : memref<216x2048xf32, #tpu.memory_space<vmem>>, vector<8x2048xf32>
    tpu.vector_store %arg6[%c104, %c0_32], %69 {strides = array<i32>} : memref<216x2048xf32, #tpu.memory_space<vmem>>, vector<8x2048xf32>,
    %c2047_i32 = arith.constant 2047 : i32
    %71 = tpu.dynamic_rotate %1 by %c2047_i32 dim 1 : vector<8x2048xf32>, i32 -> vector<8x2048xf32>
    %c14 = arith.constant 14 : index
    %c0_33 = arith.constant 0 : index
    %72 = vector.load %arg3[%c14, %c0_33] : memref<27x2048xf32, #tpu.memory_space<vmem>>, vector<1x2048xf32>
    %73 = vector.broadcast %72 : vector<1x2048xf32> to vector<8x2048xf32>
    %74 = arith.mulf %71, %73 : vector<8x2048xf32>
    %c112 = arith.constant 112 : index
    %c0_34 = arith.constant 0 : index
    %75 = vector.load %arg6[%c112, %c0_34] : memref<216x2048xf32, #tpu.memory_space<vmem>>, vector<8x2048xf32>
    tpu.vector_store %arg6[%c112, %c0_34], %74 {strides = array<i32>} : memref<216x2048xf32, #tpu.memory_space<vmem>>, vector<8x2048xf32>,
    %c2033_i32 = arith.constant 2033 : i32
    %76 = tpu.dynamic_rotate %1 by %c2033_i32 dim 1 : vector<8x2048xf32>, i32 -> vector<8x2048xf32>
    %c15 = arith.constant 15 : index
    %c0_35 = arith.constant 0 : index
    %77 = vector.load %arg3[%c15, %c0_35] : memref<27x2048xf32, #tpu.memory_space<vmem>>, vector<1x2048xf32>
    %78 = vector.broadcast %77 : vector<1x2048xf32> to vector<8x2048xf32>
    %79 = arith.mulf %76, %78 : vector<8x2048xf32>
    %c120 = arith.constant 120 : index
    %c0_36 = arith.constant 0 : index
    %80 = vector.load %arg6[%c120, %c0_36] : memref<216x2048xf32, #tpu.memory_space<vmem>>, vector<8x2048xf32>
    tpu.vector_store %arg6[%c120, %c0_36], %79 {strides = array<i32>} : memref<216x2048xf32, #tpu.memory_space<vmem>>, vector<8x2048xf32>,
    %c2032_i32 = arith.constant 2032 : i32
    %81 = tpu.dynamic_rotate %1 by %c2032_i32 dim 1 : vector<8x2048xf32>, i32 -> vector<8x2048xf32>
    %c16_37 = arith.constant 16 : index
    %c0_38 = arith.constant 0 : index
    %82 = vector.load %arg3[%c16_37, %c0_38] : memref<27x2048xf32, #tpu.memory_space<vmem>>, vector<1x2048xf32>
    %83 = vector.broadcast %82 : vector<1x2048xf32> to vector<8x2048xf32>
    %84 = arith.mulf %81, %83 : vector<8x2048xf32>
    %c128 = arith.constant 128 : index
    %c0_39 = arith.constant 0 : index
    %85 = vector.load %arg6[%c128, %c0_39] : memref<216x2048xf32, #tpu.memory_space<vmem>>, vector<8x2048xf32>
    tpu.vector_store %arg6[%c128, %c0_39], %84 {strides = array<i32>} : memref<216x2048xf32, #tpu.memory_space<vmem>>, vector<8x2048xf32>,
    %c2031_i32 = arith.constant 2031 : i32
    %86 = tpu.dynamic_rotate %1 by %c2031_i32 dim 1 : vector<8x2048xf32>, i32 -> vector<8x2048xf32>
    %c17 = arith.constant 17 : index
    %c0_40 = arith.constant 0 : index
    %87 = vector.load %arg3[%c17, %c0_40] : memref<27x2048xf32, #tpu.memory_space<vmem>>, vector<1x2048xf32>
    %88 = vector.broadcast %87 : vector<1x2048xf32> to vector<8x2048xf32>
    %89 = arith.mulf %86, %88 : vector<8x2048xf32>
    %c136 = arith.constant 136 : index
    %c0_41 = arith.constant 0 : index
    %90 = vector.load %arg6[%c136, %c0_41] : memref<216x2048xf32, #tpu.memory_space<vmem>>, vector<8x2048xf32>
    tpu.vector_store %arg6[%c136, %c0_41], %89 {strides = array<i32>} : memref<216x2048xf32, #tpu.memory_space<vmem>>, vector<8x2048xf32>,
    %c1809_i32 = arith.constant 1809 : i32
    %91 = tpu.dynamic_rotate %1 by %c1809_i32 dim 1 : vector<8x2048xf32>, i32 -> vector<8x2048xf32>
    %c18 = arith.constant 18 : index
    %c0_42 = arith.constant 0 : index
    %92 = vector.load %arg3[%c18, %c0_42] : memref<27x2048xf32, #tpu.memory_space<vmem>>, vector<1x2048xf32>
    %93 = vector.broadcast %92 : vector<1x2048xf32> to vector<8x2048xf32>
    %94 = arith.mulf %91, %93 : vector<8x2048xf32>
    %c144 = arith.constant 144 : index
    %c0_43 = arith.constant 0 : index
    %95 = vector.load %arg6[%c144, %c0_43] : memref<216x2048xf32, #tpu.memory_space<vmem>>, vector<8x2048xf32>
    tpu.vector_store %arg6[%c144, %c0_43], %94 {strides = array<i32>} : memref<216x2048xf32, #tpu.memory_space<vmem>>, vector<8x2048xf32>,
    %c1808_i32 = arith.constant 1808 : i32
    %96 = tpu.dynamic_rotate %1 by %c1808_i32 dim 1 : vector<8x2048xf32>, i32 -> vector<8x2048xf32>
    %c19 = arith.constant 19 : index
    %c0_44 = arith.constant 0 : index
    %97 = vector.load %arg3[%c19, %c0_44] : memref<27x2048xf32, #tpu.memory_space<vmem>>, vector<1x2048xf32>
    %98 = vector.broadcast %97 : vector<1x2048xf32> to vector<8x2048xf32>
    %99 = arith.mulf %96, %98 : vector<8x2048xf32>
    %c152 = arith.constant 152 : index
    %c0_45 = arith.constant 0 : index
    %100 = vector.load %arg6[%c152, %c0_45] : memref<216x2048xf32, #tpu.memory_space<vmem>>, vector<8x2048xf32>
    tpu.vector_store %arg6[%c152, %c0_45], %99 {strides = array<i32>} : memref<216x2048xf32, #tpu.memory_space<vmem>>, vector<8x2048xf32>,
    %c1807_i32 = arith.constant 1807 : i32
    %101 = tpu.dynamic_rotate %1 by %c1807_i32 dim 1 : vector<8x2048xf32>, i32 -> vector<8x2048xf32>
    %c20 = arith.constant 20 : index
    %c0_46 = arith.constant 0 : index
    %102 = vector.load %arg3[%c20, %c0_46] : memref<27x2048xf32, #tpu.memory_space<vmem>>, vector<1x2048xf32>
    %103 = vector.broadcast %102 : vector<1x2048xf32> to vector<8x2048xf32>
    %104 = arith.mulf %101, %103 : vector<8x2048xf32>
    %c160 = arith.constant 160 : index
    %c0_47 = arith.constant 0 : index
    %105 = vector.load %arg6[%c160, %c0_47] : memref<216x2048xf32, #tpu.memory_space<vmem>>, vector<8x2048xf32>
    tpu.vector_store %arg6[%c160, %c0_47], %104 {strides = array<i32>} : memref<216x2048xf32, #tpu.memory_space<vmem>>, vector<8x2048xf32>,
    %c1793_i32 = arith.constant 1793 : i32
    %106 = tpu.dynamic_rotate %1 by %c1793_i32 dim 1 : vector<8x2048xf32>, i32 -> vector<8x2048xf32>
    %c21 = arith.constant 21 : index
    %c0_48 = arith.constant 0 : index
    %107 = vector.load %arg3[%c21, %c0_48] : memref<27x2048xf32, #tpu.memory_space<vmem>>, vector<1x2048xf32>
    %108 = vector.broadcast %107 : vector<1x2048xf32> to vector<8x2048xf32>
    %109 = arith.mulf %106, %108 : vector<8x2048xf32>
    %c168 = arith.constant 168 : index
    %c0_49 = arith.constant 0 : index
    %110 = vector.load %arg6[%c168, %c0_49] : memref<216x2048xf32, #tpu.memory_space<vmem>>, vector<8x2048xf32>
    tpu.vector_store %arg6[%c168, %c0_49], %109 {strides = array<i32>} : memref<216x2048xf32, #tpu.memory_space<vmem>>, vector<8x2048xf32>,
    %c1792_i32 = arith.constant 1792 : i32
    %111 = tpu.dynamic_rotate %1 by %c1792_i32 dim 1 : vector<8x2048xf32>, i32 -> vector<8x2048xf32>
    %c22 = arith.constant 22 : index
    %c0_50 = arith.constant 0 : index
    %112 = vector.load %arg3[%c22, %c0_50] : memref<27x2048xf32, #tpu.memory_space<vmem>>, vector<1x2048xf32>
    %113 = vector.broadcast %112 : vector<1x2048xf32> to vector<8x2048xf32>
    %114 = arith.mulf %111, %113 : vector<8x2048xf32>
    %c176 = arith.constant 176 : index
    %c0_51 = arith.constant 0 : index
    %115 = vector.load %arg6[%c176, %c0_51] : memref<216x2048xf32, #tpu.memory_space<vmem>>, vector<8x2048xf32>
    tpu.vector_store %arg6[%c176, %c0_51], %114 {strides = array<i32>} : memref<216x2048xf32, #tpu.memory_space<vmem>>, vector<8x2048xf32>,
    %c1791_i32 = arith.constant 1791 : i32
    %116 = tpu.dynamic_rotate %1 by %c1791_i32 dim 1 : vector<8x2048xf32>, i32 -> vector<8x2048xf32>
    %c23 = arith.constant 23 : index
    %c0_52 = arith.constant 0 : index
    %117 = vector.load %arg3[%c23, %c0_52] : memref<27x2048xf32, #tpu.memory_space<vmem>>, vector<1x2048xf32>
    %118 = vector.broadcast %117 : vector<1x2048xf32> to vector<8x2048xf32>
    %119 = arith.mulf %116, %118 : vector<8x2048xf32>
    %c184 = arith.constant 184 : index
    %c0_53 = arith.constant 0 : index
    %120 = vector.load %arg6[%c184, %c0_53] : memref<216x2048xf32, #tpu.memory_space<vmem>>, vector<8x2048xf32>
    tpu.vector_store %arg6[%c184, %c0_53], %119 {strides = array<i32>} : memref<216x2048xf32, #tpu.memory_space<vmem>>, vector<8x2048xf32>,
    %c1777_i32 = arith.constant 1777 : i32
    %121 = tpu.dynamic_rotate %1 by %c1777_i32 dim 1 : vector<8x2048xf32>, i32 -> vector<8x2048xf32>
    %c24_54 = arith.constant 24 : index
    %c0_55 = arith.constant 0 : index
    %122 = vector.load %arg3[%c24_54, %c0_55] : memref<27x2048xf32, #tpu.memory_space<vmem>>, vector<1x2048xf32>
    %123 = vector.broadcast %122 : vector<1x2048xf32> to vector<8x2048xf32>
    %124 = arith.mulf %121, %123 : vector<8x2048xf32>
    %c192 = arith.constant 192 : index
    %c0_56 = arith.constant 0 : index
    %125 = vector.load %arg6[%c192, %c0_56] : memref<216x2048xf32, #tpu.memory_space<vmem>>, vector<8x2048xf32>
    tpu.vector_store %arg6[%c192, %c0_56], %124 {strides = array<i32>} : memref<216x2048xf32, #tpu.memory_space<vmem>>, vector<8x2048xf32>,
    %c1776_i32 = arith.constant 1776 : i32
    %126 = tpu.dynamic_rotate %1 by %c1776_i32 dim 1 : vector<8x2048xf32>, i32 -> vector<8x2048xf32>
    %c25 = arith.constant 25 : index
    %c0_57 = arith.constant 0 : index
    %127 = vector.load %arg3[%c25, %c0_57] : memref<27x2048xf32, #tpu.memory_space<vmem>>, vector<1x2048xf32>
    %128 = vector.broadcast %127 : vector<1x2048xf32> to vector<8x2048xf32>
    %129 = arith.mulf %126, %128 : vector<8x2048xf32>
    %c200 = arith.constant 200 : index
    %c0_58 = arith.constant 0 : index
    %130 = vector.load %arg6[%c200, %c0_58] : memref<216x2048xf32, #tpu.memory_space<vmem>>, vector<8x2048xf32>
    tpu.vector_store %arg6[%c200, %c0_58], %129 {strides = array<i32>} : memref<216x2048xf32, #tpu.memory_space<vmem>>, vector<8x2048xf32>,
    %c1775_i32 = arith.constant 1775 : i32
    %131 = tpu.dynamic_rotate %1 by %c1775_i32 dim 1 : vector<8x2048xf32>, i32 -> vector<8x2048xf32>
    %c26 = arith.constant 26 : index
    %c0_59 = arith.constant 0 : index
    %132 = vector.load %arg3[%c26, %c0_59] : memref<27x2048xf32, #tpu.memory_space<vmem>>, vector<1x2048xf32>
    %133 = vector.broadcast %132 : vector<1x2048xf32> to vector<8x2048xf32>
    %134 = arith.mulf %131, %133 : vector<8x2048xf32>
    %c208 = arith.constant 208 : index
    %c0_60 = arith.constant 0 : index
    %135 = vector.load %arg6[%c208, %c0_60] : memref<216x2048xf32, #tpu.memory_space<vmem>>, vector<8x2048xf32>
    tpu.vector_store %arg6[%c208, %c0_60], %134 {strides = array<i32>} : memref<216x2048xf32, #tpu.memory_space<vmem>>, vector<8x2048xf32>,
    %c0_61 = arith.constant 0 : index
    %c0_62 = arith.constant 0 : index
    %136 = vector.load %arg2[%c0_61, %c0_62] : memref<16x216xf32, #tpu.memory_space<vmem>>, vector<16x216xf32>
    %c0_63 = arith.constant 0 : index
    %c0_64 = arith.constant 0 : index
    %137 = vector.load %arg6[%c0_63, %c0_64] : memref<216x2048xf32, #tpu.memory_space<vmem>>, vector<216x2048xf32>
    %cst = arith.constant dense<0.000000e+00> : vector<16x2048xf32>
    %138 = tpu.matmul %136, %137, %cst {dimension_numbers = #tpu.dot_dimension_numbers<[1], [0], [0], [1], [0, 0, 1, 1], [], []>} : vector<16x216xf32>, vector<216x2048xf32>, vector<16x2048xf32> -> vector<16x2048xf32>
    %c0_65 = arith.constant 0 : index
    %c0_66 = arith.constant 0 : index
    %139 = vector.load %arg4[%c0_65, %c0_66] : memref<16x1xf32, #tpu.memory_space<vmem>>, vector<16x1xf32>
    %140 = vector.broadcast %139 : vector<16x1xf32> to vector<16x2048xf32>
    %141 = arith.addf %138, %140 : vector<16x2048xf32>
    %cst_67 = arith.constant 0.000000e+00 : f32
    %142 = vector.broadcast %cst_67 : f32 to vector<16x2048xf32>
    %143 = arith.cmpf ogt, %141, %142 : vector<16x2048xf32>
    %cst_68 = arith.constant 2.000000e-01 : f32
    %144 = vector.broadcast %cst_68 : f32 to vector<16x2048xf32>
    %145 = arith.mulf %144, %141 : vector<16x2048xf32>
    %146 = arith.select %143, %141, %145 : vector<16x2048xi1>, vector<16x2048xf32>
    %c0_69 = arith.constant 0 : index
    %c0_70 = arith.constant 0 : index
    %c0_71 = arith.constant 0 : index
    %147 = vector.load %arg5[%c0_69, %c0_70, %c0_71] : memref<1x16x2048xf32, #tpu.memory_space<vmem>>, vector<1x16x2048xf32>
    %148 = vector.shape_cast %147 : vector<1x16x2048xf32> to vector<16x2048xf32>
    %149 = vector.shape_cast %146 : vector<16x2048xf32> to vector<1x16x2048xf32>
    tpu.vector_store %arg5[%c0_69, %c0_70, %c0_71], %149 {strides = array<i32>} : memref<1x16x2048xf32, #tpu.memory_space<vmem>>, vector<1x16x2048xf32>,
    return
  }
  func.func @transform_0(%arg0: i32) -> (i32, i32, i32) {
    %c0_i32 = arith.constant 0 : i32
    %c0_i32_0 = arith.constant 0 : i32
    %c0_i32_1 = arith.constant 0 : i32
    return %arg0, %c0_i32, %c0_i32_0 : i32, i32, i32
  }
  func.func @transform_1(%arg0: i32) -> (i32, i32) {
    %c0_i32 = arith.constant 0 : i32
    %c0_i32_0 = arith.constant 0 : i32
    %c0_i32_1 = arith.constant 0 : i32
    return %c0_i32, %c0_i32_0 : i32, i32
  }
  func.func @transform_2(%arg0: i32) -> (i32, i32) {
    %c0_i32 = arith.constant 0 : i32
    %c0_i32_0 = arith.constant 0 : i32
    %c0_i32_1 = arith.constant 0 : i32
    return %c0_i32, %c0_i32_0 : i32, i32
  }
  func.func @transform_3(%arg0: i32) -> (i32, i32) {
    %c0_i32 = arith.constant 0 : i32
    %c0_i32_0 = arith.constant 0 : i32
    %c0_i32_1 = arith.constant 0 : i32
    return %c0_i32, %c0_i32_0 : i32, i32
  }
  func.func @transform_4(%arg0: i32) -> (i32, i32, i32) {
    %c0_i32 = arith.constant 0 : i32
    %c0_i32_0 = arith.constant 0 : i32
    %c0_i32_1 = arith.constant 0 : i32
    return %arg0, %c0_i32, %c0_i32_0 : i32, i32, i32
  }
}

</mosaic_0001>

<bundles_post_ra>
// kernel: tile.8
= control target key start
LH: loop header
LB: loop body
LE: loop exit
PB: predicated region body
PF: predicated region fallthrough
CT: control target
= control target key end

     0   :  { %s22_s0 = inlined_call_operand.vmem [shape: f32[8], index: 0, kind: input, shape index: {}]   ;;  %s23_s1 = inlined_call_operand.vmem [shape: f32[2,8], index: 1, kind: output, shape index: {}]  }
   0x1   :  { %v4_v0 = vld [vmem:[%s22_s0] ss:$0 sm:$0xff] }
   0x2   :  { %5 = vst [vmem:[%s23_s1] sm:$0x3] %v4_v0 }

// kernel: tile.0
= control target key start
LH: loop header
LB: loop body
LE: loop exit
PB: predicated region body
PF: predicated region fallthrough
CT: control target
= control target key end

     0   :  { %s66_s8 = smov 125   ;;  %vm7_vm0 = vcmask 7168   ;;  %s67_s11 = smov 126   ;;  %s117_s0 = inlined_call_operand.vmem [shape: f32[2,8], index: 0, kind: input, shape index: {}]   ;;  %s118_s1 = inlined_call_operand.vmem [shape: f32[16,1], index: 1, kind: output, shape index: {}]  }
   0x1   :  { %v4_v0 = vld [vmem:[%s117_s0] sm:$0x3]  ;;  %s65_s0 = smov 127   ;;  %s68_s12 = smov 124  }
   0x2   :  { %5 = vst [vmem:[#allocation0] sm:$0x3] %v4_v0  ;;  %s69_s13 = smov 123   ;;  %s70_s14 = smov 122  }
   0x3   :  { %s71_s15 = smov 121  }
   0x9   :  { %v9_v1 = vld [vmem:[#allocation0] sm:$0x3]  }
   0xa   :  { %v21_v2 = vld [vmem:[#allocation0] sm:$0x3]   ;;  %10 = vrot.lane.b32.xlu0 %v9_v1, %s65_s0 }
   0xb   :  { %22 = vrot.lane.b32.xlu1 %v21_v2, %s66_s8  ;;  %v15_v3 = vld [vmem:[#allocation0] sm:$0x3]  }
   0xc   :  { %v27_v4 = vld [vmem:[#allocation0] sm:$0x3]  }
   0xd   :  { %v6_v5 = vld [vmem:[#allocation0] sm:$0x3]  }
   0xe   :  { %8 = vst.msk [vmem:[%s118_s1] ss:$8 sm:$0x3] %vm7_vm0, %v6_v5   ;;  %16 = vrot.lane.b32.xlu0 %v15_v3, %s67_s11  ;;  %v33_v6 = vld [vmem:[#allocation0] sm:$0x3]  }
   0xf   :  { %28 = vrot.lane.b32.xlu1 %v27_v4, %s68_s12  ;;  %v39_v7 = vld [vmem:[#allocation0] sm:$0x3]  }
  0x10   :  { %v45_v8 = vld [vmem:[#allocation0] sm:$0x3]  }
  0x12   :  { %34 = vrot.lane.b32.xlu0 %v33_v6, %s69_s13 }
  0x13   :  { %40 = vrot.lane.b32.xlu1 %v39_v7, %s70_s14 }
  0x16   :  { %46 = vrot.lane.b32.xlu0 %v45_v8, %s71_s15 }
  0x7c   :  { %v11_v9 = vpop.permute.xlu0 %10  }
  0x7d   :  { %v23_v10 = vpop.permute.xlu1 %22   ;;  %51 = vst.msk [vmem:[%s118_s1 + $0x1] ss:$8 sm:$0x3] %vm7_vm0, %v11_v9  }
  0x7e   :  { %53 = vst.msk [vmem:[%s118_s1 + $0x3] ss:$8 sm:$0x3] %vm7_vm0, %v23_v10  }
  0x80   :  { %v17_v11 = vpop.permute.xlu0 %16  }
  0x81   :  { %v29_v12 = vpop.permute.xlu1 %28   ;;  %52 = vst.msk [vmem:[%s118_s1 + $0x2] ss:$8 sm:$0x3] %vm7_vm0, %v17_v11  }
  0x82   :  { %54 = vst.msk [vmem:[%s118_s1 + $0x4] ss:$8 sm:$0x3] %vm7_vm0, %v29_v12  }
  0x84   :  { %v35_v13 = vpop.permute.xlu0 %34  }
  0x85   :  { %v41_v14 = vpop.permute.xlu1 %40   ;;  %55 = vst.msk [vmem:[%s118_s1 + $0x5] ss:$8 sm:$0x3] %vm7_vm0, %v35_v13  }
  0x86   :  { %56 = vst.msk [vmem:[%s118_s1 + $0x6] ss:$8 sm:$0x3] %vm7_vm0, %v41_v14  }
  0x88   :  { %v47_v15 = vpop.permute.xlu0 %46  }
  0x89   :  { %57 = vst.msk [vmem:[%s118_s1 + $0x7] ss:$8 sm:$0x3] %vm7_vm0, %v47_v15  }

// kernel: leaky_conv3d.1
= control target key start
LH: loop header
LB: loop body
LE: loop exit
PB: predicated region body
PF: predicated region fallthrough
CT: control target
= control target key end

     0   :  { %s5485_s19 = smov 17   ;;  %s5486_s24 = smov 16   ;;  %v10076_v6 = vlaneseq  ;;  %vm4168_vm0 = vcmask 719872   ;;  %s10071_s0 = inlined_call_operand.vmem [shape: f32[1,8,2048], index: 0, kind: input, shape index: {}]   ;;  %s10072_s2 = inlined_call_operand.vmem [shape: f32[27,2048], index: 2, kind: input, shape index: {}]   ;;  %s10073_s1 = inlined_call_operand.vmem [shape: f32[16,216], index: 1, kind: input, shape index: {}]   ;;  %s10074_s3 = inlined_call_operand.vmem [shape: f32[16,1], index: 3, kind: input, shape index: {}]   ;;  %s10075_s4 = inlined_call_operand.vmem [shape: f32[1,16,2048], index: 4, kind: output, shape index: {}]  }
   0x1   :  { %v5522_v0 = vld [vmem:[%s10071_s0 + $0x70] sm:$0xff]  ;;  %v5527_v1 = vld [vmem:[%s10071_s0] sm:$0xff]  ;;  %v5536_v2 = vld [vmem:[%s10071_s0 + $0x78] sm:$0xff]  ;;  %s5487_s27 = smov 15   ;;  %s5488_s28 = smov 1  }
   0x2   :  { %61 = vrot.lane.b32.xlu1 %v5522_v0, %s5485_s19  ;;  %33 = vrot.lane.b32.xlu0 %v5527_v1, %s5485_s19  ;;  %v5541_v3 = vld [vmem:[%s10071_s0 + $0x8] sm:$0xff]  ;;  %s5489_s29 = smov 127   ;;  %v5585_v5 = vld [vmem:[%s10071_s0 + $0x10] sm:$0xff]  ;;  %s5490_s6 = smov 113   ;;  %v94_v7 = vshrl.u32 %v10076_v6, 7 }
   0x3   :  { %v30_v4 = vld [vmem:[%s10071_s0 + $0x68] sm:$0xff]  ;;  %s5491_s7 = smov 112   ;;  %v5631_v15 = vld [vmem:[%s10071_s0 + $0x18] sm:$0xff]  ;;  %s5492_s20 = smov 111  }
   0x4   :  { %v5612_v8 = vsub.s32 0, %v94_v7  ;;  %v5614_v9 = vsub.s32 1, %v94_v7  ;;  %v5616_v10 = vsub.s32 5, %v94_v7  ;;  %v5618_v11 = vsub.s32 6, %v94_v7 }
   0x5   :  { %v5620_v12 = vsub.s32 7, %v94_v7  ;;  %v4957_v13 = vld [vmem:[%s10072_s2 + $0x81] ss:$8 sm:$0xf]  ;;  %v5689_v33 = vsub.s32 2, %v94_v7  ;;  %v5691_v34 = vsub.s32 3, %v94_v7 }
   0x6   :  { %63 = vrot.lane.b32.xlu1 %v5536_v2, %s5485_s19  ;;  %35 = vrot.lane.b32.xlu0 %v5541_v3, %s5485_s19  ;;  %10346 = vst [vmem:[#allocation3_spill] sm:$0xff] %v5618_v11  ;;  %v4958_v14 = vld [vmem:[%s10072_s2 + $0x81] ss:$8 sm:$0xf0]  ;;  %v5693_v35 = vsub.s32 4, %v94_v7 }
   0x7   :  { %v4995_v16 = vld [vmem:[%s10072_s2 + $0x142] ss:$8 sm:$0xf]  ;;  %v4959_v20 = vld [vmem:[%s10072_s2 + $0xc1] ss:$8 sm:$0xf]  ;;  %v5661_v24 = vor.u32 %v4958_v14, %v4957_v13 }
   0x8   :  { %v4996_v17 = vld [vmem:[%s10072_s2 + $0x142] ss:$8 sm:$0xf0]  ;;  %v4960_v21 = vld [vmem:[%s10072_s2 + $0xc1] ss:$8 sm:$0xf0] }
   0x9   :  { %v4961_v18 = vld [vmem:[%s10072_s2 + $0x82] ss:$8 sm:$0xf]  ;;  %v4999_v22 = vld [vmem:[%s10072_s2 + $0x143] ss:$8 sm:$0xf]  ;;  %v5669_v27 = vor.u32 %v4996_v17, %v4995_v16  ;;  %v5697_v37 = vor.u32 %v4960_v21, %v4959_v20 }
   0xa   :  { %207 = vrot.lane.b32.xlu1 %v5541_v3, %s5486_s24  ;;  %205 = vrot.lane.b32.xlu0 %v5527_v1, %s5486_s24  ;;  %v4962_v19 = vld [vmem:[%s10072_s2 + $0x82] ss:$8 sm:$0xf0]  ;;  %v5000_v23 = vld [vmem:[%s10072_s2 + $0x143] ss:$8 sm:$0xf0] }
   0xb   :  { %10347 = vst [vmem:[#allocation4_spill] sm:$0xff] %v5661_v24  ;;  %v4963_v25 = vld [vmem:[%s10072_s2 + $0xc2] ss:$8 sm:$0xf]  ;;  %10348 = vst [vmem:[#allocation5_spill] sm:$0xff] %v5669_v27  ;;  %v5681_v30 = vor.u32 %v4962_v19, %v4961_v18  ;;  %v5695_v36 = vor.u32 %v5000_v23, %v4999_v22 }
   0xc   :  { %v4964_v26 = vld [vmem:[%s10072_s2 + $0xc2] ss:$8 sm:$0xf0]  ;;  %v84_v28 = vld [vmem:[%s10072_s2] ss:$8 sm:$0xf] }
   0xd   :  { %v85_v29 = vld [vmem:[%s10072_s2] ss:$8 sm:$0xf0]  ;;  %10349 = vst [vmem:[#allocation6_spill] sm:$0xff] %v5681_v30  ;;  %10350 = vst [vmem:[#allocation7_spill] sm:$0xff] %v5695_v36  ;;  %v5701_v39 = vor.u32 %v4964_v26, %v4963_v25 }
   0xe   :  { %235 = vrot.lane.b32.xlu1 %v5536_v2, %s5486_s24  ;;  %233 = vrot.lane.b32.xlu0 %v5522_v0, %s5486_s24  ;;  %v4925_v31 = vld [vmem:[%s10072_s2 + $0x1] ss:$8 sm:$0xf]  ;;  %10351 = vst [vmem:[#allocation8_spill] sm:$0xff] %v5697_v37  ;;  %v5713_v44 = vor.u32 %v85_v29, %v84_v28 }
   0xf   :  { %v4926_v32 = vld [vmem:[%s10072_s2 + $0x1] ss:$8 sm:$0xf0]  ;;  %10352 = vst [vmem:[#allocation9_spill] sm:$0xff] %v5701_v39 }
  0x10   :  { %v4929_v40 = vld [vmem:[%s10072_s2 + $0x2] ss:$8 sm:$0xf]  ;;  %10353 = vst [vmem:[#allocation10_spill] sm:$0xff] %v5713_v44  ;;  %v5715_v45 = vor.u32 %v4926_v32, %v4925_v31 }
  0x11   :  { %v4930_v41 = vld [vmem:[%s10072_s2 + $0x2] ss:$8 sm:$0xf0]  ;;  %v4965_v46 = vld [vmem:[%s10072_s2 + $0x83] ss:$8 sm:$0xf] }
  0x12   :  { %231 = vrot.lane.b32.xlu1 %v30_v4, %s5486_s24  ;;  %59 = vrot.lane.b32.xlu0 %v30_v4, %s5485_s19  ;;  %10354 = vst [vmem:[#allocation11_spill] sm:$0xff] %v5715_v45  ;;  %v4966_v47 = vld [vmem:[%s10072_s2 + $0x83] ss:$8 sm:$0xf0]  ;;  %v5759_v62 = vor.u32 %v4930_v41, %v4929_v40 }
  0x13   :  { %v5003_v51 = vld [vmem:[%s10072_s2 + $0x144] ss:$8 sm:$0xf]  ;;  %v4967_v57 = vld [vmem:[%s10072_s2 + $0xc3] ss:$8 sm:$0xf]  ;;  %v5773_v16 = vor.u32 %v4966_v47, %v4965_v46 }
  0x14   :  { %v5004_v52 = vld [vmem:[%s10072_s2 + $0x144] ss:$8 sm:$0xf0]  ;;  %v4968_v58 = vld [vmem:[%s10072_s2 + $0xc3] ss:$8 sm:$0xf0] }
  0x15   :  { %10355 = vst [vmem:[#allocation12_spill] sm:$0xff] %v5759_v62  ;;  %v4933_v63 = vld [vmem:[%s10072_s2 + $0x3] ss:$8 sm:$0xf]  ;;  %10356 = vst [vmem:[#allocation13_spill] sm:$0xff] %v5773_v16  ;;  %v5789_v21 = vor.u32 %v5004_v52, %v5003_v51  ;;  %v5801_v28 = vor.u32 %v4968_v58, %v4967_v57 }
  0x16   :  { %378 = vrot.lane.b32.xlu1 %v5541_v3, %s5487_s27  ;;  %376 = vrot.lane.b32.xlu0 %v5527_v1, %s5487_s27  ;;  %v4969_v17 = vld [vmem:[%s10072_s2 + $0x84] ss:$8 sm:$0xf]  ;;  %v5007_v22 = vld [vmem:[%s10072_s2 + $0x145] ss:$8 sm:$0xf] }
  0x17   :  { %v4970_v18 = vld [vmem:[%s10072_s2 + $0x84] ss:$8 sm:$0xf0]  ;;  %10357 = vst [vmem:[#allocation14_spill] sm:$0xff] %v5789_v21  ;;  %10358 = vst [vmem:[#allocation15_spill] sm:$0xff] %v5801_v28 }
  0x18   :  { %v5008_v23 = vld [vmem:[%s10072_s2 + $0x145] ss:$8 sm:$0xf0]  ;;  %v5817_v47 = vor.u32 %v4970_v18, %v4969_v17  ;;  %v4977_v55 = vld [vmem:[%s10072_s2 + $0x86] ss:$8 sm:$0xf] }
  0x19   :  { %v4973_v31 = vld [vmem:[%s10072_s2 + $0x85] ss:$8 sm:$0xf]  ;;  %v5825_v58 = vor.u32 %v5008_v23, %v5007_v22  ;;  %v4937_v54 = vld [vmem:[%s10072_s2 + $0x4] ss:$8 sm:$0xf] }
  0x1a   :  { %406 = vrot.lane.b32.xlu1 %v5536_v2, %s5487_s27  ;;  %404 = vrot.lane.b32.xlu0 %v5522_v0, %s5487_s27  ;;  %v4974_v32 = vld [vmem:[%s10072_s2 + $0x85] ss:$8 sm:$0xf0]  ;;  %10360 = vst [vmem:[#allocation17_spill] sm:$0xff] %v5817_v47 }
  0x1b   :  { %10361 = vst [vmem:[#allocation18_spill] sm:$0xff] %v5825_v58  ;;  %v4941_v22 = vld [vmem:[%s10072_s2 + $0x5] ss:$8 sm:$0xf]  ;;  %v5847_v51 = vor.u32 %v4974_v32, %v4973_v31 }
  0x1c   :  { %v4942_v23 = vld [vmem:[%s10072_s2 + $0x5] ss:$8 sm:$0xf0]  ;;  %v4978_v31 = vld [vmem:[%s10072_s2 + $0x86] ss:$8 sm:$0xf0] }
  0x1d   :  { %v4938_v53 = vld [vmem:[%s10072_s2 + $0x4] ss:$8 sm:$0xf0]  ;;  %v4975_v32 = vld [vmem:[%s10072_s2 + $0xc5] ss:$8 sm:$0xf]  ;;  %v5889_v59 = vor.u32 %v4942_v23, %v4941_v22  ;;  %v5903_v17 = vor.u32 %v4978_v31, %v4977_v55  ;;  %v2025_v55 = vrot.slane %v5847_v51, %v5612_v8  ;;  %v2037_v37 = vrot.slane %v5847_v51, %v5691_v34 }
  0x1e   :  { %549 = vrot.lane.b32.xlu1 %v5541_v3, %s5488_s28  ;;  %547 = vrot.lane.b32.xlu0 %v5527_v1, %s5488_s28  ;;  %v4976_v50 = vld [vmem:[%s10072_s2 + $0xc5] ss:$8 sm:$0xf0]  ;;  %v4979_v57 = vld [vmem:[%s10072_s2 + $0xc6] ss:$8 sm:$0xf] }
  0x1f   :  { %10363 = vst [vmem:[#allocation20_spill] sm:$0xff] %v5889_v59  ;;  %v4980_v52 = vld [vmem:[%s10072_s2 + $0xc6] ss:$8 sm:$0xf0]  ;;  %10364 = vst [vmem:[#allocation21_spill] sm:$0xff] %v5903_v17  ;;  %v5952_v49 = vor.u32 %v4976_v50, %v4975_v32 }
  0x20   :  { %v5015_v22 = vld [vmem:[%s10072_s2 + $0x147] ss:$8 sm:$0xf]  ;;  %v5927_v48 = vor.u32 %v4980_v52, %v4979_v57  ;;  %v4945_v43 = vld [vmem:[%s10072_s2 + $0x6] ss:$8 sm:$0xf] }
  0x21   :  { %v5016_v23 = vld [vmem:[%s10072_s2 + $0x147] ss:$8 sm:$0xf0]  ;;  %10367 = vst [vmem:[#allocation24_spill] sm:$0xff] %v5952_v49 }
  0x22   :  { %577 = vrot.lane.b32.xlu1 %v5536_v2, %s5488_s28  ;;  %575 = vrot.lane.b32.xlu0 %v5522_v0, %s5488_s28  ;;  %10365 = vst [vmem:[#allocation22_spill] sm:$0xff] %v5927_v48  ;;  %v5942_v31 = vor.u32 %v5016_v23, %v5015_v22  ;;  %v4981_v57 = vld [vmem:[%s10072_s2 + $0x87] ss:$8 sm:$0xf] }
  0x23   :  { %v4982_v40 = vld [vmem:[%s10072_s2 + $0x87] ss:$8 sm:$0xf0]  ;;  %v5011_v38 = vld [vmem:[%s10072_s2 + $0x146] ss:$8 sm:$0xf] }
  0x24   :  { %10366 = vst [vmem:[#allocation23_spill] sm:$0xff] %v5942_v31  ;;  %v5012_v22 = vld [vmem:[%s10072_s2 + $0x146] ss:$8 sm:$0xf0]  ;;  %v5998_v19 = vor.u32 %v4982_v40, %v4981_v57 }
  0x25   :  { %v5019_v32 = vld [vmem:[%s10072_s2 + $0x1c0] ss:$8 sm:$0xf]  ;;  %v4983_v46 = vld [vmem:[%s10072_s2 + $0xc7] ss:$8 sm:$0xf]  ;;  %v6035_v26 = vor.u32 %v5012_v22, %v5011_v38 }
  0x26   :  { %573 = vrot.lane.b32.xlu1 %v30_v4, %s5488_s28  ;;  %402 = vrot.lane.b32.xlu0 %v30_v4, %s5487_s27  ;;  %v4934_v4 = vld [vmem:[%s10072_s2 + $0x3] ss:$8 sm:$0xf0]  ;;  %v5020_v52 = vld [vmem:[%s10072_s2 + $0x1c0] ss:$8 sm:$0xf0] }
  0x27   :  { %v5803_v29 = vor.u32 %v4934_v4, %v4933_v63  ;;  %v4971_v63 = vld [vmem:[%s10072_s2 + $0xc4] ss:$8 sm:$0xf]  ;;  %v4984_v41 = vld [vmem:[%s10072_s2 + $0xc7] ss:$8 sm:$0xf0] }
  0x28   :  { %v4972_v4 = vld [vmem:[%s10072_s2 + $0xc4] ss:$8 sm:$0xf0]  ;;  %10371 = vst [vmem:[#allocation28_spill] sm:$0xff] %v5998_v19  ;;  %10375 = vst [vmem:[#allocation32_spill] sm:$0xff] %v6035_v26 }
  0x29   :  { %10359 = vst [vmem:[#allocation16_spill] sm:$0xff] %v5803_v29  ;;  %v5869_v61 = vor.u32 %v4972_v4, %v4971_v63  ;;  %v2029_v4 = vrot.slane %v5847_v51, %v5614_v9  ;;  %v5917_v63 = vor.u32 %v4938_v53, %v4937_v54  ;;  %v4946_v53 = vld [vmem:[%s10072_s2 + $0x6] ss:$8 sm:$0xf0] }
  0x2a   :  { %842 = vrot.lane.b32.xlu1 %v5541_v3, %s5489_s29  ;;  %840 = vrot.lane.b32.xlu0 %v5527_v1, %s5489_s29  ;;  %v5938_v54 = vld [vmem:[%s10071_s0 + $0x20] sm:$0xff]  ;;  %v5996_v20 = vor.u32 %v4946_v53, %v4945_v43  ;;  %v6012_v53 = vor.u32 %v5020_v52, %v5019_v32  ;;  %v6027_v43 = vor.u32 %v4984_v41, %v4983_v46 }
  0x2b   :  { %10362 = vst [vmem:[#allocation19_spill] sm:$0xff] %v5869_v61  ;;  %v735_v50 = vrot.slane %v5917_v63, %v5614_v9  ;;  %v5975_v18 = vmul.f32 %v2029_v4, %v5541_v3  ;;  %v743_v56 = vrot.slane %v5917_v63, %v5691_v34  ;;  %v739_v23 = vrot.slane %v5917_v63, %v5689_v33  ;;  %v4949_v60 = vld [vmem:[%s10072_s2 + $0x7] ss:$8 sm:$0xf] }
  0x2c   :  { %v731_v14 = vrot.slane %v5917_v63, %v5612_v8  ;;  %v5990_v4 = vmul.f32 %v2025_v55, %v5527_v1  ;;  %10370 = vst [vmem:[#allocation27_spill] sm:$0xff] %v5996_v20  ;;  %v4950_v42 = vld [vmem:[%s10072_s2 + $0x7] ss:$8 sm:$0xf0]  ;;  %10372 = vst [vmem:[#allocation29_spill] sm:$0xff] %v6012_v53  ;;  %v751_v48 = vrot.slane %v5917_v63, %v5616_v10 }
  0x2d   :  { %10368 = vst [vmem:[#allocation25_spill] sm:$0xff] %v5975_v18  ;;  %v4985_v40 = vld [vmem:[%s10072_s2 + $0x100] ss:$8 sm:$0xf]  ;;  %v6025_v55 = vmul.f32 %v735_v50, %v5536_v2  ;;  %10374 = vst [vmem:[#allocation31_spill] sm:$0xff] %v6027_v43  ;;  %v6038_v25 = vmul.f32 %v743_v56, %v5541_v3  ;;  %v6041_v13 = vmul.f32 %v739_v23, %v5527_v1 }
  0x2e   :  { %870 = vrot.lane.b32.xlu1 %v5536_v2, %s5489_s29  ;;  %844 = vrot.lane.b32.xlu0 %v5585_v5, %s5489_s29  ;;  %10369 = vst [vmem:[#allocation26_spill] sm:$0xff] %v5990_v4  ;;  %v4986_v57 = vld [vmem:[%s10072_s2 + $0x100] ss:$8 sm:$0xf0]  ;;  %v6046_v41 = vor.u32 %v4950_v42, %v4949_v60 }
  0x2f   :  { %10373 = vst [vmem:[#allocation30_spill] sm:$0xff] %v6025_v55  ;;  %v5023_v52 = vld [vmem:[%s10072_s2 + $0x1c1] ss:$8 sm:$0xf]  ;;  %10376 = vst [vmem:[#allocation33_spill] sm:$0xff] %v6038_v25  ;;  %v6054_v22 = vor.u32 %v4986_v57, %v4985_v40 }
  0x30   :  { %v5024_v32 = vld [vmem:[%s10072_s2 + $0x1c1] ss:$8 sm:$0xf0]  ;;  %10377 = vst [vmem:[#allocation34_spill] sm:$0xff] %v6041_v13  ;;  %10379 = vst [vmem:[#allocation36_spill] sm:$0xff] %v6046_v41 }
  0x31   :  { %10380 = vst [vmem:[#allocation37_spill] sm:$0xff] %v6054_v22  ;;  %v6068_v60 = vor.u32 %v5024_v32, %v5023_v52  ;;  %v4988_v23 = vld [vmem:[%s10072_s2 + $0x140] ss:$8 sm:$0xf0] }
  0x32   :  { %1011 = vrot.lane.b32.xlu1 %v5527_v1, %s5490_s6  ;;  %868 = vrot.lane.b32.xlu0 %v5522_v0, %s5489_s29  ;;  %v4953_v32 = vld [vmem:[%s10072_s2 + $0x80] ss:$8 sm:$0xf]  ;;  %v4989_v52 = vld [vmem:[%s10072_s2 + $0x101] ss:$8 sm:$0xf] }
  0x33   :  { %10381 = vst [vmem:[#allocation38_spill] sm:$0xff] %v6068_v60  ;;  %v4954_v42 = vld [vmem:[%s10072_s2 + $0x80] ss:$8 sm:$0xf0] }
  0x34   :  { %v4990_v56 = vld [vmem:[%s10072_s2 + $0x101] ss:$8 sm:$0xf0]  ;;  %v6120_v7 = vor.u32 %v4954_v42, %v4953_v32  ;;  %v4997_v32 = vld [vmem:[%s10072_s2 + $0x103] ss:$8 sm:$0xf] }
  0x35   :  { %v4992_v50 = vld [vmem:[%s10072_s2 + $0x141] ss:$8 sm:$0xf0]  ;;  %v4998_v57 = vld [vmem:[%s10072_s2 + $0x103] ss:$8 sm:$0xf0] }
  0x36   :  { %1015 = vrot.lane.b32.xlu1 %v5585_v5, %s5490_s6  ;;  %1013 = vrot.lane.b32.xlu0 %v5541_v3, %s5490_s6  ;;  %10384 = vst [vmem:[#allocation41_spill] sm:$0xff] %v6120_v7  ;;  %v5028_v42 = vld [vmem:[%s10072_s2 + $0x1c2] ss:$8 sm:$0xf0] }
  0x37   :  { %v5002_v6 = vld [vmem:[%s10072_s2 + $0x104] ss:$8 sm:$0xf0]  ;;  %v5014_v26 = vld [vmem:[%s10072_s2 + $0x107] ss:$8 sm:$0xf0] }
  0x38   :  { %v5022_v53 = vld [vmem:[%s10072_s2 + $0x181] ss:$8 sm:$0xf0] }
  0x3a   :  { %1182 = vrot.lane.b32.xlu1 %v5527_v1, %s5491_s7  ;;  %1041 = vrot.lane.b32.xlu0 %v5536_v2, %s5490_s6 }
  0x3e   :  { %1186 = vrot.lane.b32.xlu1 %v5585_v5, %s5491_s7  ;;  %1184 = vrot.lane.b32.xlu0 %v5541_v3, %s5491_s7 }
  0x42   :  { %1039 = vrot.lane.b32.xlu1 %v5522_v0, %s5490_s6  ;;  %1212 = vrot.lane.b32.xlu0 %v5536_v2, %s5491_s7 }
  0x46   :  { %37 = vrot.lane.b32.xlu1 %v5585_v5, %s5485_s19  ;;  %1210 = vrot.lane.b32.xlu0 %v5522_v0, %s5491_s7 }
  0x4a   :  { %1353 = vrot.lane.b32.xlu1 %v5527_v1, %s5492_s20  ;;  %39 = vrot.lane.b32.xlu0 %v5631_v15, %s5485_s19  ;;  %v4993_v1 = vld [vmem:[%s10072_s2 + $0x102] ss:$8 sm:$0xf] }
  0x4e   :  { %1357 = vrot.lane.b32.xlu1 %v5585_v5, %s5492_s20  ;;  %1355 = vrot.lane.b32.xlu0 %v5541_v3, %s5492_s20  ;;  %v4991_v3 = vld [vmem:[%s10072_s2 + $0x141] ss:$8 sm:$0xf] }
  0x4f   :  { %v6164_v40 = vor.u32 %v4992_v50, %v4991_v3  ;;  %v6187_v50 = vld [vmem:[%s10071_s0 + $0x28] sm:$0xff]  ;;  %v10388_v3 = vlaneseq }
  0x51   :  { %10386 = vst [vmem:[#allocation43_spill] sm:$0xff] %v6164_v40  ;;  %v6190_v31 = vand.u32 127, %v10388_v3  ;;  %v5005_v3 = vld [vmem:[%s10072_s2 + $0x105] ss:$8 sm:$0xf] }
  0x52   :  { %1381 = vrot.lane.b32.xlu1 %v5522_v0, %s5492_s20  ;;  %1383 = vrot.lane.b32.xlu0 %v5536_v2, %s5492_s20  ;;  %v6044_v2 = vmul.f32 %v731_v14, %v5522_v0  ;;  %v4994_v0 = vld [vmem:[%s10072_s2 + $0x102] ss:$8 sm:$0xf0]  ;;  %v4987_v14 = vld [vmem:[%s10072_s2 + $0x140] ss:$8 sm:$0xf] }
  0x53   :  { %v6098_v38 = vor.u32 %v4994_v0, %v4993_v1  ;;  %v6118_v46 = vor.u32 %v4988_v23, %v4987_v14  ;;  %v6136_v23 = vor.u32 %v4990_v56, %v4989_v52  ;;  %v5027_v52 = vld [vmem:[%s10072_s2 + $0x1c2] ss:$8 sm:$0xf]  ;;  %v5001_v56 = vld [vmem:[%s10072_s2 + $0x104] ss:$8 sm:$0xf]  ;;  %v6178_v14 = vor.u32 %v4998_v57, %v4997_v32 }
  0x54   :  { %10378 = vst [vmem:[#allocation35_spill] sm:$0xff] %v6044_v2  ;;  %v6196_v32 = vor.u32 %v5028_v42, %v5027_v52  ;;  %v6204_v61 = vor.u32 %v5002_v6, %v5001_v56  ;;  %v5006_v42 = vld [vmem:[%s10072_s2 + $0x105] ss:$8 sm:$0xf0]  ;;  %vm67_vm1 = vcmp.lt.s32.totalorder %v6190_v31, 17  ;;  %v2033_v52 = vrot.slane %v5847_v51, %v5689_v33 }
  0x55   :  { %10382 = vst [vmem:[#allocation39_spill] sm:$0xff] %v6098_v38  ;;  %10383 = vst [vmem:[#allocation40_spill] sm:$0xff] %v6118_v46  ;;  %v5009_v56 = vld [vmem:[%s10072_s2 + $0x106] ss:$8 sm:$0xf]  ;;  %v6244_v49 = vor.u32 %v5006_v42, %v5005_v3  ;;  %vm237_vm2 = vcmp.lt.s32.totalorder %v6190_v31, 16 }
  0x56   :  { %211 = vrot.lane.b32.xlu1 %v5631_v15, %s5486_s24  ;;  %209 = vrot.lane.b32.xlu0 %v5585_v5, %s5486_s24  ;;  %10385 = vst [vmem:[#allocation42_spill] sm:$0xff] %v6136_v23  ;;  %10387 = vst [vmem:[#allocation44_spill] sm:$0xff] %v6178_v14  ;;  %v5010_v1 = vld [vmem:[%s10072_s2 + $0x106] ss:$8 sm:$0xf0]  ;;  %vm408_vm3 = vcmp.lt.s32.totalorder %v6190_v31, 15 }
  0x57   :  { %10389 = vst [vmem:[#allocation45_spill] sm:$0xff] %v6196_v32  ;;  %10390 = vst [vmem:[#allocation46_spill] sm:$0xff] %v6204_v61  ;;  %v3721_v57 = vld [vmem:[%s10073_s1 + $0x8] sm:$0xff]  ;;  %v6270_v6 = vor.u32 %v5010_v1, %v5009_v56  ;;  %vm579_vm4 = vcmp.lt.s32.totalorder %v6190_v31, 1  ;;  %vm872_vm5 = vcmp.lt.s32.totalorder %v6190_v31, 127  ;;  %vm1043_vm6 = vcmp.lt.s32.totalorder %v6190_v31, 113 }
  0x58   :  { %10391 = vst [vmem:[#allocation47_spill] sm:$0xff] %v6244_v49  ;;  %v5013_v40 = vld [vmem:[%s10072_s2 + $0x107] ss:$8 sm:$0xf]  ;;  %5029 = vmatprep.mubr.msk.f32.mxu0 %vm4168_vm0, %v3721_v57  ;;  %5031 = vmatprep.mubr.msk.f32.mxu1 %vm4168_vm0, %v3721_v57  ;;  %v747_v57 = vrot.slane %v5917_v63, %v5693_v35  ;;  %vm1214_vm7 = vcmp.lt.s32.totalorder %v6190_v31, 112  ;;  %vm1385_vm8 = vcmp.lt.s32.totalorder %v6190_v31, 111 }
  0x59   :  { %v5017_v32 = vld [vmem:[%s10072_s2 + $0x180] ss:$8 sm:$0xf]  ;;  %v6295_v46 = vor.u32 %v5014_v26, %v5013_v40  ;;  %v5021_v40 = vld [vmem:[%s10072_s2 + $0x181] ss:$8 sm:$0xf]  ;;  %v3127_v43 = vrot.slane %v6270_v6, %v5614_v9  ;;  %v3123_v0 = vrot.slane %v6270_v6, %v5612_v8  ;;  %v3131_v25 = vrot.slane %v6270_v6, %v5689_v33 }
  0x5a   :  { %382 = vrot.lane.b32.xlu1 %v5631_v15, %s5487_s27  ;;  %380 = vrot.lane.b32.xlu0 %v5585_v5, %s5487_s27  ;;  %v5018_v1 = vld [vmem:[%s10072_s2 + $0x180] ss:$8 sm:$0xf0]  ;;  %v6322_v60 = vmul.f32 %v747_v57, %v5585_v5  ;;  %v5026_v57 = vld [vmem:[%s10072_s2 + $0x182] ss:$8 sm:$0xf0] }
  0x5b   :  { %10392 = vst [vmem:[#allocation48_spill] sm:$0xff] %v6295_v46  ;;  %v6309_v26 = vor.u32 %v5018_v1, %v5017_v32  ;;  %v6325_v32 = vmul.f32 %v2037_v37, %v5631_v15  ;;  %v6328_v1 = vmul.f32 %v2033_v52, %v5585_v5  ;;  %v5025_v37 = vld [vmem:[%s10072_s2 + $0x182] ss:$8 sm:$0xf]  ;;  %v6384_v28 = vmul.f32 %v3123_v0, %v5585_v5 }
  0x5c   :  { %10395 = vst [vmem:[#allocation51_spill] sm:$0xff] %v6322_v60  ;;  %v6354_v60 = vor.u32 %v5022_v53, %v5021_v40  ;;  %v6369_v53 = vmul.f32 %v3127_v43, %v5631_v15  ;;  %v6372_v40 = vmul.f32 %v751_v48, %v5631_v15  ;;  %v10404_v43 = vrot.slane %v5715_v45, %v5691_v34  ;;  %v6410_v0 = vld [vmem:[%s10071_s0 + $0x30] sm:$0xff] }
  0x5d   :  { %10394 = vst [vmem:[#allocation50_spill] sm:$0xff] %v6309_v26  ;;  %10396 = vst [vmem:[#allocation52_spill] sm:$0xff] %v6325_v32  ;;  %v6735_v20 = vmul.f32 %v3131_v25, %v5938_v54 }
  0x5e   :  { %553 = vrot.lane.b32.xlu1 %v5631_v15, %s5488_s28  ;;  %551 = vrot.lane.b32.xlu0 %v5585_v5, %s5488_s28  ;;  %10397 = vst [vmem:[#allocation53_spill] sm:$0xff] %v6328_v1  ;;  %10398 = vst [vmem:[#allocation54_spill] sm:$0xff] %v6354_v60  ;;  %v10585_v60 = vrot.slane %v6120_v7, %v5614_v9 }
  0x5f   :  { %10400 = vst [vmem:[#allocation56_spill] sm:$0xff] %v6369_v53  ;;  %10401 = vst [vmem:[#allocation57_spill] sm:$0xff] %v6372_v40 }
  0x60   :  { %10402 = vst [vmem:[#allocation58_spill] sm:$0xff] %v6384_v28  ;;  %10451 = vst [vmem:[#allocation83_spill] sm:$0xff] %v6735_v20 }
  0x62   :  { %848 = vrot.lane.b32.xlu1 %v5938_v54, %s5489_s29  ;;  %846 = vrot.lane.b32.xlu0 %v5631_v15, %s5489_s29 }
  0x66   :  { %1019 = vrot.lane.b32.xlu1 %v5938_v54, %s5490_s6  ;;  %1017 = vrot.lane.b32.xlu0 %v5631_v15, %s5490_s6 }
  0x6a   :  { %1190 = vrot.lane.b32.xlu1 %v5938_v54, %s5491_s7  ;;  %1188 = vrot.lane.b32.xlu0 %v5631_v15, %s5491_s7 }
  0x6e   :  { %1361 = vrot.lane.b32.xlu1 %v5938_v54, %s5492_s20  ;;  %1359 = vrot.lane.b32.xlu0 %v5631_v15, %s5492_s20  ;;  %v10403_v15 = vrot.slane %v5713_v44, %v5691_v34 }
  0x72   :  { %43 = vrot.lane.b32.xlu1 %v6187_v50, %s5485_s19  ;;  %41 = vrot.lane.b32.xlu0 %v5938_v54, %s5485_s19 }
  0x74   :  { %v6260_v3 = vpop.permute.xlu1 %61  ;;  %v6262_v42 = vpop.permute.xlu0 %33 }
  0x76   :  { %215 = vrot.lane.b32.xlu1 %v6187_v50, %s5486_s24  ;;  %213 = vrot.lane.b32.xlu0 %v5938_v54, %s5486_s24 }
  0x78   :  { %v64_v4 = vpop.permute.xlu1 %63  ;;  %v6305_v18 = vpop.permute.xlu0 %35 }
  0x79   :  { %10393 = vst [vmem:[#allocation49_spill] sm:$0xff] %v6305_v18  ;;  %v6346_v52 = vsel %vm67_vm1, %v6262_v42, %v6305_v18  ;;  %v6398_v18 = vor.u32 %v5026_v57, %v5025_v37  ;;  %v6403_v5 = vsel %vm67_vm1, %v6260_v3, %v64_v4 }
  0x7a   :  { %386 = vrot.lane.b32.xlu1 %v6187_v50, %s5487_s27  ;;  %384 = vrot.lane.b32.xlu0 %v5938_v54, %s5487_s27  ;;  %v176_v48 = vmul.f32 %v10403_v15, %v6346_v52  ;;  %10406 = vst [vmem:[#allocation60_spill] sm:$0xff] %v6403_v5 }
  0x7b   :  { %10405 = vst [vmem:[#allocation59_spill] sm:$0xff] %v6398_v18 }
  0x7c   :  { %v6362_v1 = vpop.permute.xlu1 %207  ;;  %v206_v32 = vpop.permute.xlu0 %205 }
  0x7d   :  { %10399 = vst [vmem:[#allocation55_spill] sm:$0xff] %v6362_v1  ;;  %v6377_v58 = vsel %vm237_vm2, %v206_v32, %v6362_v1 }
  0x7e   :  { %557 = vrot.lane.b32.xlu1 %v6187_v50, %s5488_s28  ;;  %v347_v56 = vmul.f32 %v10404_v43, %v6377_v58  ;;  %555 = vrot.lane.b32.xlu0 %v5938_v54, %s5488_s28  ;;  %v6421_v43 = vsel %vm67_vm1, %v64_v4, %v6262_v42  ;;  %v10413_v4 = vrot.slane %v5713_v44, %v5689_v33 }
  0x80   :  { %v236_v2 = vpop.permute.xlu1 %235  ;;  %v234_v40 = vpop.permute.xlu0 %233  ;;  %v5097_v28 = vpack.c.bf16 %v347_v56, %v176_v48  ;;  %v10407_v56 = vrot.slane %v5669_v27, %v5616_v10  ;;  %v175_v1 = vmul.f32 %v10413_v4, %v6421_v43 }
  0x81   :  { %v6429_v57 = vsel %vm237_vm2, %v236_v2, %v206_v32  ;;  %v6433_v37 = vsel %vm237_vm2, %v234_v40, %v236_v2  ;;  %v10409_v32 = vrot.slane %v5695_v36, %v5616_v10  ;;  %v10411_v2 = vrot.slane %v5713_v44, %v5614_v9 }
  0x82   :  { %v6443_v48 = vmul.f32 %v10407_v56, %v6403_v5  ;;  %852 = vrot.lane.b32.xlu1 %v6410_v0, %s5489_s29  ;;  %850 = vrot.lane.b32.xlu0 %v6187_v50, %s5489_s29  ;;  %v10412_v56 = vrot.slane %v5715_v45, %v5614_v9 }
  0x83   :  { %v6449_v15 = vmul.f32 %v10409_v32, %v6433_v37  ;;  %v174_v53 = vmul.f32 %v10411_v2, %v6403_v5  ;;  %5098 = vmatprep.subr.bf16.mxu1 %v5097_v28  ;;  %v10414_v2 = vrot.slane %v5715_v45, %v5689_v33 }
  0x84   :  { %10408 = vst [vmem:[#allocation61_spill] sm:$0xff] %v6443_v48  ;;  %v345_v32 = vmul.f32 %v10412_v56, %v6433_v37  ;;  %v6473_v42 = vpop.permute.xlu1 %231  ;;  %v6475_v13 = vpop.permute.xlu0 %59 }
  0x85   :  { %10410 = vst [vmem:[#allocation62_spill] sm:$0xff] %v6449_v15  ;;  %v346_v5 = vmul.f32 %v10414_v2, %v6429_v57  ;;  %10415 = vst [vmem:[#allocation63_spill] sm:$0xff] %v6473_v42  ;;  %v6488_v2 = vsel %vm237_vm2, %v6473_v42, %v234_v40  ;;  %v6494_v55 = vsel %vm67_vm1, %v6475_v13, %v6260_v3 }
  0x86   :  { %10416 = vst [vmem:[#allocation64_spill] sm:$0xff] %v6475_v13  ;;  %10417 = vst [vmem:[#allocation65_spill] sm:$0xff] %v6494_v55  ;;  %v5045_v28 = vpack.c.bf16 %v345_v32, %v174_v53  ;;  %1023 = vrot.lane.b32.xlu1 %v6410_v0, %s5490_s6  ;;  %1021 = vrot.lane.b32.xlu0 %v6187_v50, %s5490_s6  ;;  %v10418_v3 = vrot.slane %v5713_v44, %v5612_v8 }
  0x87   :  { %v5099_v21 = vpack.c.bf16 %v346_v5, %v175_v1  ;;  %v10419_v53 = vrot.slane %v5715_v45, %v5612_v8  ;;  %v10423_v32 = vrot.slane %v5669_v27, %v5693_v35  ;;  %v2045_v15 = vrot.slane %v5847_v51, %v5616_v10 }
  0x88   :  { %5046 = vmatprep.subr.bf16.mxu0 %v5045_v28  ;;  %v173_v1 = vmul.f32 %v10418_v3, %v6494_v55  ;;  %v6519_v56 = vpop.permute.xlu1 %378  ;;  %v377_v4 = vpop.permute.xlu0 %376  ;;  %v759_v42 = vrot.slane %v5917_v63, %v5620_v12  ;;  %v10431_v44 = vrot.slane %v5669_v27, %v5618_v11 }
  0x89   :  { %v344_v5 = vmul.f32 %v10419_v53, %v6488_v2  ;;  %5100 = vmatpush1.bf16.msra.mxu1 %v5099_v21  ;;  %10420 = vst [vmem:[#allocation66_spill] sm:$0xff] %v6519_v56  ;;  %v10421_v53 = vrot.slane %v5695_v36, %v5693_v35  ;;  %v6539_v28 = vmul.f32 %v10423_v32, %v6494_v55 }
  0x8a   :  { %1194 = vrot.lane.b32.xlu1 %v6410_v0, %s5491_s7  ;;  %v2041_v32 = vrot.slane %v5847_v51, %v5693_v35  ;;  %1192 = vrot.lane.b32.xlu0 %v6187_v50, %s5491_s7  ;;  %v6594_v13 = vsel %vm408_vm3, %v377_v4, %v6519_v56  ;;  %v6782_v25 = vmul.f32 %v759_v42, %v6187_v50 }
  0x8b   :  { %v6533_v21 = vmul.f32 %v10421_v53, %v6488_v2  ;;  %10424 = vst [vmem:[#allocation68_spill] sm:$0xff] %v6539_v28  ;;  %v5047_v48 = vpack.c.bf16 %v344_v5, %v173_v1  ;;  %v755_v1 = vrot.slane %v5917_v63, %v5618_v11  ;;  %v10434_v63 = vrot.slane %v5803_v29, %v5691_v34 }
  0x8c   :  { %v407_v53 = vpop.permute.xlu1 %406  ;;  %v6562_v40 = vpop.permute.xlu0 %404  ;;  %10455 = vst [vmem:[#allocation85_spill] sm:$0xff] %v6782_v25 }
  0x8d   :  { %10422 = vst [vmem:[#allocation67_spill] sm:$0xff] %v6533_v21  ;;  %5048 = vmatpush1.bf16.msra.mxu0 %v5047_v48  ;;  %v6583_v48 = vmul.f32 %v2041_v32, %v5938_v54  ;;  %v6601_v32 = vld [vmem:[%s10071_s0 + $0x38] sm:$0xff]  ;;  %v6612_v21 = vmul.f32 %v755_v1, %v5938_v54  ;;  %v6628_v1 = vmul.f32 %v2045_v15, %v6187_v50 }
  0x8e   :  { %1365 = vrot.lane.b32.xlu1 %v6410_v0, %s5492_s20  ;;  %1363 = vrot.lane.b32.xlu0 %v6187_v50, %s5492_s20  ;;  %v10433_v15 = vrot.slane %v5759_v62, %v5691_v34  ;;  %v4923_v54 = vld [vmem:[%s10072_s2 + $0x40] ss:$8 sm:$0xf] }
  0x8f   :  { %10425 = vst [vmem:[#allocation69_spill] sm:$0xff] %v6583_v48  ;;  %10427 = vst [vmem:[#allocation71_spill] sm:$0xff] %v6612_v21  ;;  %v3135_v48 = vrot.slane %v6270_v6, %v5691_v34  ;;  %v10429_v21 = vrot.slane %v5661_v24, %v5612_v8 }
  0x90   :  { %v6609_v55 = vpop.permute.xlu1 %549  ;;  %v548_v28 = vpop.permute.xlu0 %547  ;;  %10428 = vst [vmem:[#allocation72_spill] sm:$0xff] %v6628_v1  ;;  %v518_v3 = vmul.f32 %v10433_v15, %v6594_v13  ;;  %v6668_v15 = vsel %vm408_vm3, %v407_v53, %v377_v4 }
  0x91   :  { %10426 = vst [vmem:[#allocation70_spill] sm:$0xff] %v6609_v55  ;;  %v6623_v5 = vsel %vm579_vm4, %v548_v28, %v6609_v55  ;;  %v6636_v45 = vmul.f32 %v10429_v21, %v6421_v43  ;;  %v6642_v55 = vmul.f32 %v10431_v44, %v6421_v43  ;;  %v10435_v21 = vrot.slane %v5661_v24, %v5614_v9 }
  0x92   :  { %v689_v1 = vmul.f32 %v10434_v63, %v6623_v5  ;;  %47 = vrot.lane.b32.xlu1 %v6601_v32, %s5485_s19  ;;  %v10437_v44 = vrot.slane %v5669_v27, %v5620_v12  ;;  %v6673_v63 = vsel %vm408_vm3, %v6562_v40, %v407_v53  ;;  %45 = vrot.lane.b32.xlu0 %v6410_v0, %s5485_s19 }
  0x93   :  { %10430 = vst [vmem:[#allocation73_spill] sm:$0xff] %v6636_v45  ;;  %10432 = vst [vmem:[#allocation74_spill] sm:$0xff] %v6642_v55  ;;  %v6658_v56 = vmul.f32 %v10435_v21, %v6346_v52  ;;  %v10440_v27 = vrot.slane %v5759_v62, %v5689_v33 }
  0x94   :  { %v6664_v43 = vmul.f32 %v10437_v44, %v6346_v52  ;;  %v578_v21 = vpop.permute.xlu1 %577  ;;  %v576_v55 = vpop.permute.xlu0 %575  ;;  %v5101_v45 = vpack.c.bf16 %v689_v1, %v518_v3  ;;  %v10443_v3 = vrot.slane %v5803_v29, %v5614_v9 }
  0x95   :  { %10436 = vst [vmem:[#allocation75_spill] sm:$0xff] %v6658_v56  ;;  %v6685_v44 = vsel %vm579_vm4, %v578_v21, %v548_v28  ;;  %v6689_v53 = vsel %vm579_vm4, %v576_v55, %v578_v21  ;;  %v517_v52 = vmul.f32 %v10440_v27, %v6668_v15  ;;  %v10441_v28 = vrot.slane %v5759_v62, %v5614_v9 }
  0x96   :  { %10438 = vst [vmem:[#allocation76_spill] sm:$0xff] %v6664_v43  ;;  %10439 = vst [vmem:[#allocation77_spill] sm:$0xff] %v6689_v53  ;;  %v10442_v21 = vrot.slane %v5803_v29, %v5689_v33  ;;  %v687_v1 = vmul.f32 %v10443_v3, %v6689_v53  ;;  %219 = vrot.lane.b32.xlu1 %v6601_v32, %s5486_s24  ;;  %v10444_v27 = vrot.slane %v5681_v30, %v5614_v9 }
  0x97   :  { %v516_v4 = vmul.f32 %v10441_v28, %v6673_v63  ;;  %v10446_v28 = vrot.slane %v5695_v36, %v5620_v12  ;;  %217 = vrot.lane.b32.xlu0 %v6410_v0, %s5486_s24  ;;  %5102 = vmatprep.subr.bf16.mxu1 %v5101_v45  ;;  %v6728_v3 = vmul.f32 %v3135_v48, %v6187_v50 }
  0x98   :  { %v688_v43 = vmul.f32 %v10442_v21, %v6685_v44  ;;  %v6717_v56 = vmul.f32 %v10444_v27, %v6377_v58  ;;  %v6730_v21 = vpop.permute.xlu1 %573  ;;  %v6732_v19 = vpop.permute.xlu0 %402  ;;  %v10456_v48 = vrot.slane %v5681_v30, %v5612_v8  ;;  %v10459_v50 = vrot.slane %v5695_v36, %v5618_v11 }
  0x99   :  { %v6723_v26 = vmul.f32 %v10446_v28, %v6377_v58  ;;  %10448 = vst [vmem:[#allocation80_spill] sm:$0xff] %v6728_v3  ;;  %10449 = vst [vmem:[#allocation81_spill] sm:$0xff] %v6730_v21  ;;  %v5049_v46 = vpack.c.bf16 %v687_v1, %v516_v4  ;;  %v6742_v28 = vsel %vm579_vm4, %v6730_v21, %v576_v55  ;;  %v4924_v55 = vld [vmem:[%s10072_s2 + $0x40] ss:$8 sm:$0xf0] }
  0x9a   :  { %10445 = vst [vmem:[#allocation78_spill] sm:$0xff] %v6717_v56  ;;  %10450 = vst [vmem:[#allocation82_spill] sm:$0xff] %v6732_v19  ;;  %v5103_v27 = vpack.c.bf16 %v688_v43, %v517_v52  ;;  %v6748_v45 = vsel %vm408_vm3, %v6732_v19, %v6562_v40  ;;  %v10453_v43 = vrot.slane %v5803_v29, %v5612_v8  ;;  %390 = vrot.lane.b32.xlu1 %v6601_v32, %s5487_s27  ;;  %v10490_v29 = vld [vmem:[#allocation15_spill] sm:$0xff] }
  0x9b   :  { %10447 = vst [vmem:[#allocation79_spill] sm:$0xff] %v6723_v26  ;;  %10452 = vst [vmem:[#allocation84_spill] sm:$0xff] %v6742_v28  ;;  %v10454_v52 = vrot.slane %v5759_v62, %v5612_v8  ;;  %388 = vrot.lane.b32.xlu0 %v6410_v0, %s5487_s27  ;;  %5050 = vmatprep.subr.bf16.mxu0 %v5049_v46  ;;  %v6788_v1 = vmul.f32 %v10456_v48, %v6429_v57 }
  0x9c   :  { %v686_v40 = vmul.f32 %v10453_v43, %v6742_v28  ;;  %5104 = vmatpush1.bf16.msra.mxu1 %v5103_v27  ;;  %v843_v58 = vpop.permute.xlu1 %842  ;;  %v841_v46 = vpop.permute.xlu0 %840  ;;  %v6792_v43 = vor.u32 %v4924_v55, %v4923_v54  ;;  %v6798_v42 = vmul.f32 %v10459_v50, %v6429_v57  ;;  %v10461_v48 = vrot.slane %v5701_v39, %v5620_v12  ;;  %v4927_v54 = vld [vmem:[%s10072_s2 + $0x41] ss:$8 sm:$0xf]  ;;  %v4932_v27 = vld [vmem:[%s10072_s2 + $0x42] ss:$8 sm:$0xf0] }
  0x9d   :  { %v515_v4 = vmul.f32 %v10454_v52, %v6748_v45  ;;  %10457 = vst [vmem:[#allocation86_spill] sm:$0xff] %v6788_v1  ;;  %v4928_v57 = vld [vmem:[%s10072_s2 + $0x41] ss:$8 sm:$0xf0]  ;;  %v10463_v55 = vrot.slane %v5701_v39, %v5618_v11 }
  0x9e   :  { %10458 = vst [vmem:[#allocation87_spill] sm:$0xff] %v6792_v43  ;;  %10460 = vst [vmem:[#allocation88_spill] sm:$0xff] %v6798_v42  ;;  %v6804_v52 = vmul.f32 %v10461_v48, %v6433_v37  ;;  %561 = vrot.lane.b32.xlu1 %v6601_v32, %s5488_s28  ;;  %v10465_v48 = vrot.slane %v5773_v16, %v5614_v9  ;;  %v6857_v21 = vor.u32 %v4928_v57, %v4927_v54  ;;  %v10483_v57 = vld [vmem:[#allocation33_spill] sm:$0xff] }
  0x9f   :  { %v5051_v26 = vpack.c.bf16 %v686_v40, %v515_v4  ;;  %v6820_v37 = vmul.f32 %v10463_v55, %v6488_v2  ;;  %v6836_v2 = vsel %vm872_vm5, %v841_v46, %v843_v58  ;;  %559 = vrot.lane.b32.xlu0 %v6410_v0, %s5488_s28  ;;  %v4931_v55 = vld [vmem:[%s10072_s2 + $0x42] ss:$8 sm:$0xf]  ;;  %v10475_v42 = vrot.slane %v5889_v59, %v5689_v33 }
  0xa0   :  { %10462 = vst [vmem:[#allocation89_spill] sm:$0xff] %v6804_v52  ;;  %v6832_v19 = vmul.f32 %v10465_v48, %v6594_v13  ;;  %10467 = vst [vmem:[#allocation92_spill] sm:$0xff] %v6836_v2  ;;  %v871_v48 = vpop.permute.xlu1 %870  ;;  %v6849_v40 = vpop.permute.xlu0 %844  ;;  %v6906_v20 = vor.u32 %v4932_v27, %v4931_v55  ;;  %v10482_v27 = vld [vmem:[#allocation30_spill] sm:$0xff] }
  0xa1   :  { %10464 = vst [vmem:[#allocation90_spill] sm:$0xff] %v6820_v37  ;;  %5052 = vmatpush1.bf16.msra.mxu0 %v5051_v26  ;;  %v6843_v26 = vld [vmem:[%s10071_s0 + $0x40] sm:$0xff]  ;;  %10468 = vst [vmem:[#allocation93_spill] sm:$0xff] %v6849_v40  ;;  %v10470_v37 = vld [vmem:[#allocation14_spill] sm:$0xff]  ;;  %v6873_v4 = vsel %vm872_vm5, %v871_v48, %v841_v46  ;;  %v6878_v54 = vsel %vm872_vm5, %v843_v58, %v6849_v40  ;;  %v981_v25 = vmul.f32 %v10475_v42, %v6836_v2 }
  0xa2   :  { %10466 = vst [vmem:[#allocation91_spill] sm:$0xff] %v6832_v19  ;;  %10469 = vst [vmem:[#allocation94_spill] sm:$0xff] %v6857_v21  ;;  %v10471_v50 = vrot.slane %v10470_v37, %v5620_v12  ;;  %v10477_v46 = vrot.slane %v5889_v59, %v5691_v34  ;;  %856 = vrot.lane.b32.xlu1 %v6843_v26, %s5489_s29  ;;  %v4940_v58 = vld [vmem:[%s10072_s2 + $0x44] ss:$8 sm:$0xf0]  ;;  %v10479_v42 = vrot.slane %v5773_v16, %v5612_v8 }
  0xa3   :  { %10473 = vst [vmem:[#allocation96_spill] sm:$0xff] %v6873_v4  ;;  %10474 = vst [vmem:[#allocation97_spill] sm:$0xff] %v6878_v54  ;;  %854 = vrot.lane.b32.xlu0 %v6601_v32, %s5489_s29  ;;  %v10484_v40 = vrot.slane %v10470_v37, %v5618_v11 }
  0xa4   :  { %v6869_v52 = vmul.f32 %v10471_v50, %v6594_v13  ;;  %v10476_v13 = vrot.slane %v5889_v59, %v5614_v9  ;;  %10478 = vst [vmem:[#allocation98_spill] sm:$0xff] %v6906_v20  ;;  %v6918_v3 = vmul.f32 %v10479_v42, %v6668_v15  ;;  %v6922_v36 = vpop.permute.xlu0 %868  ;;  %v10610_v20 = vld [vmem:[#allocation13_spill] sm:$0xff] }
  0xa5   :  { %10481 = vst [vmem:[#allocation100_spill] sm:$0xff] %v6922_v36  ;;  %v6932_v30 = vmul.f32 %v10484_v40, %v6668_v15  ;;  %v6937_v42 = vsel %vm872_vm5, %v6922_v36, %v871_v48  ;;  %v4936_v15 = vld [vmem:[%s10072_s2 + $0x43] ss:$8 sm:$0xf0]  ;;  %v10487_v40 = vrot.slane %v5889_v59, %v5612_v8  ;;  %v10493_v36 = vrot.slane %v10470_v37, %v5616_v10 }
  0xa6   :  { %10472 = vst [vmem:[#allocation95_spill] sm:$0xff] %v6869_v52  ;;  %v980_v50 = vmul.f32 %v10476_v13, %v6873_v4  ;;  %v982_v52 = vmul.f32 %v10477_v46, %v6878_v54  ;;  %v4939_v46 = vld [vmem:[%s10072_s2 + $0x44] ss:$8 sm:$0xf]  ;;  %10480 = vst [vmem:[#allocation99_spill] sm:$0xff] %v6918_v3  ;;  %v6920_v13 = vpop.permute.xlu1 %1011  ;;  %1027 = vrot.lane.b32.xlu1 %v6843_v26, %s5490_s6 }
  0xa7   :  { %10485 = vst [vmem:[#allocation30_spill] sm:$0xff] %v6932_v30  ;;  %10486 = vst [vmem:[#allocation33_spill] sm:$0xff] %v6937_v42  ;;  %v979_v48 = vmul.f32 %v10487_v40, %v6937_v42  ;;  %v6956_v56 = vor.u32 %v4940_v58, %v4939_v46  ;;  %v6968_v59 = vmul.f32 %v10493_v36, %v6673_v63  ;;  %1025 = vrot.lane.b32.xlu0 %v6601_v32, %s5490_s6  ;;  %v10502_v40 = vld [vmem:[#allocation18_spill] sm:$0xff] }
  0xa8   :  { %v5053_v55 = vpack.c.bf16 %v980_v50, %v10482_v27  ;;  %v5105_v62 = vpack.c.bf16 %v982_v52, %v10483_v57  ;;  %v4935_v57 = vld [vmem:[%s10072_s2 + $0x43] ss:$8 sm:$0xf]  ;;  %v10491_v52 = vrot.slane %v10490_v29, %v5620_v12  ;;  %v1014_v46 = vpop.permute.xlu0 %1013 }
  0xa9   :  { %v10488_v50 = vld [vmem:[#allocation34_spill] sm:$0xff]  ;;  %10494 = vst [vmem:[#allocation102_spill] sm:$0xff] %v6968_v59  ;;  %v7079_v16 = vsel %vm1043_vm6, %v6920_v13, %v1014_v46 }
  0xaa   :  { %5054 = vmatprep.subr.bf16.mxu0 %v5053_v55  ;;  %v5107_v27 = vpack.c.bf16 %v981_v25, %v10488_v50  ;;  %10489 = vst [vmem:[#allocation34_spill] sm:$0xff] %v6956_v56  ;;  %v6962_v30 = vmul.f32 %v10491_v52, %v6673_v63  ;;  %5106 = vmatprep.subr.bf16.mxu1 %v5105_v62  ;;  %v6975_v58 = vpop.permute.xlu1 %1015  ;;  %v10496_v55 = vld [vmem:[#allocation35_spill] sm:$0xff] }
  0xab   :  { %10495 = vst [vmem:[#allocation103_spill] sm:$0xff] %v6975_v58  ;;  %v5055_v52 = vpack.c.bf16 %v979_v48, %v10496_v55  ;;  %v6982_v63 = vor.u32 %v4936_v15, %v4935_v57  ;;  %v10498_v62 = vrot.slane %v5817_v47, %v5614_v9  ;;  %v2049_v55 = vrot.slane %v5847_v51, %v5618_v11  ;;  %v4943_v57 = vld [vmem:[%s10072_s2 + $0x45] ss:$8 sm:$0xf] }
  0xac   :  { %10492 = vst [vmem:[#allocation101_spill] sm:$0xff] %v6962_v30  ;;  %5108 = vmatpush1.bf16.msra.mxu1 %v5107_v27  ;;  %v4944_v15 = vld [vmem:[%s10072_s2 + $0x45] ss:$8 sm:$0xf0]  ;;  %1198 = vrot.lane.b32.xlu1 %v6843_v26, %s5491_s7  ;;  %v763_v48 = vrot.slane %v6956_v56, %v5612_v8  ;;  %v10503_v30 = vrot.slane %v10502_v40, %v5620_v12  ;;  %v1042_v1 = vpop.permute.xlu0 %1041 }
  0xad   :  { %10497 = vst [vmem:[#allocation35_spill] sm:$0xff] %v6982_v63  ;;  %v6988_v50 = vmul.f32 %v10498_v62, %v6623_v5  ;;  %v10500_v62 = vrot.slane %v5817_v47, %v5612_v8  ;;  %1196 = vrot.lane.b32.xlu0 %v6601_v32, %s5491_s7  ;;  %5056 = vmatpush1.bf16.msra.mxu0 %v5055_v52 }
  0xae   :  { %v7020_v59 = vmul.f32 %v10503_v30, %v6623_v5  ;;  %v1183_v27 = vpop.permute.xlu1 %1182  ;;  %v7035_v52 = vor.u32 %v4944_v15, %v4943_v57  ;;  %v10508_v30 = vrot.slane %v10502_v40, %v5618_v11  ;;  %v10510_v57 = vrot.slane %v10502_v40, %v5616_v10 }
  0xaf   :  { %10499 = vst [vmem:[#allocation104_spill] sm:$0xff] %v6988_v50  ;;  %v7006_v25 = vmul.f32 %v10500_v62, %v6685_v44  ;;  %v7040_v62 = vmul.f32 %v2049_v55, %v6410_v0  ;;  %v7063_v36 = vmul.f32 %v763_v48, %v6410_v0  ;;  %v7086_v48 = vld [vmem:[%s10071_s0 + $0x48] sm:$0xff]  ;;  %v10516_v5 = vrot.slane %v10490_v29, %v5618_v11 }
  0xb0   :  { %10504 = vst [vmem:[#allocation106_spill] sm:$0xff] %v7020_v59  ;;  %10505 = vst [vmem:[#allocation107_spill] sm:$0xff] %v7035_v52  ;;  %v7050_v47 = vmul.f32 %v10508_v30, %v6685_v44  ;;  %v7056_v15 = vmul.f32 %v10510_v57, %v6689_v53  ;;  %1369 = vrot.lane.b32.xlu1 %v6843_v26, %s5492_s20  ;;  %v10514_v44 = vrot.slane %v10502_v40, %v5693_v35  ;;  %v10533_v52 = vld [vmem:[#allocation22_spill] sm:$0xff] }
  0xb1   :  { %10501 = vst [vmem:[#allocation105_spill] sm:$0xff] %v7006_v25  ;;  %10507 = vst [vmem:[#allocation108_spill] sm:$0xff] %v7040_v62  ;;  %v7074_v57 = vsel %vm1043_vm6, %v1014_v46, %v6975_v58  ;;  %1367 = vrot.lane.b32.xlu0 %v6601_v32, %s5492_s20  ;;  %v7094_v3 = vmul.f32 %v10516_v5, %v6748_v45  ;;  %v10518_v46 = vrot.slane %v10470_v37, %v5693_v35  ;;  %v4947_v5 = vld [vmem:[%s10072_s2 + $0x46] ss:$8 sm:$0xf] }
  0xb2   :  { %10509 = vst [vmem:[#allocation109_spill] sm:$0xff] %v7050_v47  ;;  %10511 = vst [vmem:[#allocation110_spill] sm:$0xff] %v7056_v15  ;;  %v7069_v30 = vmul.f32 %v10514_v44, %v6742_v28  ;;  %v7102_v53 = vpop.permute.xlu1 %1186  ;;  %v1185_v47 = vpop.permute.xlu0 %1184  ;;  %v3139_v44 = vrot.slane %v6270_v6, %v5693_v35  ;;  %v10521_v15 = vld [vmem:[#allocation27_spill] sm:$0xff]  ;;  %v10528_v55 = vrot.slane %v5903_v17, %v5612_v8 }
  0xb3   :  { %10513 = vst [vmem:[#allocation111_spill] sm:$0xff] %v7063_v36  ;;  %10517 = vst [vmem:[#allocation113_spill] sm:$0xff] %v7094_v3  ;;  %v7100_v28 = vmul.f32 %v10518_v46, %v6748_v45  ;;  %v4948_v3 = vld [vmem:[%s10072_s2 + $0x46] ss:$8 sm:$0xf0]  ;;  %v7117_v45 = vsel %vm1214_vm7, %v1185_v47, %v7102_v53  ;;  %v7121_v46 = vsel %vm1214_vm7, %v1183_v27, %v1185_v47 }
  0xb4   :  { %10515 = vst [vmem:[#allocation112_spill] sm:$0xff] %v7069_v30  ;;  %10520 = vst [vmem:[#allocation115_spill] sm:$0xff] %v7102_v53  ;;  %v10522_v36 = vrot.slane %v10521_v15, %v5689_v33  ;;  %v10523_v40 = vrot.slane %v10521_v15, %v5691_v34  ;;  %v10524_v47 = vrot.slane %v6046_v41, %v5689_v33  ;;  %51 = vrot.lane.b32.xlu1 %v7086_v48, %s5485_s19 }
  0xb5   :  { %10519 = vst [vmem:[#allocation114_spill] sm:$0xff] %v7100_v28  ;;  %v10525_v30 = vrot.slane %v6046_v41, %v5691_v34  ;;  %49 = vrot.lane.b32.xlu0 %v6843_v26, %s5485_s19  ;;  %v7162_v25 = vor.u32 %v4948_v3, %v4947_v5  ;;  %v7168_v49 = vmul.f32 %v10528_v55, %v6836_v2 }
  0xb6   :  { %v1152_v62 = vmul.f32 %v10522_v36, %v7079_v16  ;;  %v1153_v37 = vmul.f32 %v10523_v40, %v7074_v57  ;;  %v1323_v53 = vmul.f32 %v10524_v47, %v7121_v46  ;;  %v4951_v36 = vld [vmem:[%s10072_s2 + $0x47] ss:$8 sm:$0xf]  ;;  %v7154_v47 = vsel %vm1043_vm6, %v1042_v1, %v6920_v13  ;;  %v7170_v50 = vpop.permute.xlu1 %1039  ;;  %v1213_v13 = vpop.permute.xlu0 %1212 }
  0xb7   :  { %v1324_v28 = vmul.f32 %v10525_v30, %v7117_v45  ;;  %v4952_v40 = vld [vmem:[%s10072_s2 + $0x47] ss:$8 sm:$0xf0]  ;;  %10527 = vst [vmem:[#allocation116_spill] sm:$0xff] %v7162_v25  ;;  %10529 = vst [vmem:[#allocation117_spill] sm:$0xff] %v7170_v50  ;;  %v7173_v19 = vmul.f32 %v3139_v44, %v6410_v0  ;;  %v1044_v58 = vsel %vm1043_vm6, %v7170_v50, %v1042_v1 }
  0xb8   :  { %v10526_v30 = vld [vmem:[#allocation48_spill] sm:$0xff]  ;;  %v5111_v63 = vpack.c.bf16 %v1323_v53, %v1152_v62  ;;  %v7180_v3 = vsel %vm1214_vm7, %v1213_v13, %v1183_v27  ;;  %v3143_v55 = vrot.slane %v6270_v6, %v5616_v10  ;;  %v7184_v5 = vor.u32 %v4952_v40, %v4951_v36  ;;  %223 = vrot.lane.b32.xlu1 %v7086_v48, %s5486_s24 }
  0xb9   :  { %v5109_v59 = vpack.c.bf16 %v1324_v28, %v1153_v37  ;;  %10530 = vst [vmem:[#allocation118_spill] sm:$0xff] %v7173_v19  ;;  %10531 = vst [vmem:[#allocation119_spill] sm:$0xff] %v7180_v3  ;;  %v10534_v53 = vrot.slane %v10533_v52, %v5618_v11  ;;  %v10536_v0 = vrot.slane %v10521_v15, %v5614_v9  ;;  %v10537_v37 = vld [vmem:[#allocation31_spill] sm:$0xff]  ;;  %221 = vrot.lane.b32.xlu0 %v6843_v26, %s5486_s24  ;;  %v10543_v19 = vld [vmem:[#allocation50_spill] sm:$0xff] }
  0xba   :  { %10532 = vst [vmem:[#allocation120_spill] sm:$0xff] %v7184_v5  ;;  %v10538_v27 = vrot.slane %v10537_v37, %v5618_v11  ;;  %v10540_v44 = vrot.slane %v6046_v41, %v5614_v9  ;;  %v10623_v18 = vld [vmem:[#allocation104_spill] sm:$0xff] }
  0xbb   :  { %v7190_v28 = vmul.f32 %v10534_v53, %v6937_v42  ;;  %v1151_v1 = vmul.f32 %v10536_v0, %v7154_v47  ;;  %5110 = vmatprep.subr.bf16.mxu1 %v5109_v59  ;;  %v10541_v0 = vld [vmem:[#allocation28_spill] sm:$0xff]  ;;  %v7217_v42 = vpop.permute.xlu0 %1210  ;;  %v10544_v53 = vrot.slane %v10533_v52, %v5620_v12 }
  0xbc   :  { %v7199_v62 = vmul.f32 %v10538_v27, %v1044_v58  ;;  %v1322_v36 = vmul.f32 %v10540_v44, %v7180_v3  ;;  %5112 = vmatpush1.bf16.msra.mxu1 %v5111_v63  ;;  %v38_v44 = vpop.permute.xlu1 %37  ;;  %10542 = vst [vmem:[#allocation28_spill] sm:$0xff] %v7217_v42  ;;  %v10546_v63 = vrot.slane %v5903_v17, %v5614_v9  ;;  %v4955_v27 = vld [vmem:[%s10072_s2 + $0xc0] ss:$8 sm:$0xf] }
  0xbd   :  { %10535 = vst [vmem:[#allocation121_spill] sm:$0xff] %v7190_v28  ;;  %v7227_v25 = vmul.f32 %v10544_v53, %v6873_v4  ;;  %v4956_v53 = vld [vmem:[%s10072_s2 + $0xc0] ss:$8 sm:$0xf0]  ;;  %394 = vrot.lane.b32.xlu1 %v7086_v48, %s5487_s27  ;;  %392 = vrot.lane.b32.xlu0 %v6843_v26, %s5487_s27 }
  0xbe   :  { %10539 = vst [vmem:[#allocation122_spill] sm:$0xff] %v7199_v62  ;;  %v5057_v50 = vpack.c.bf16 %v1322_v36, %v1151_v1  ;;  %v7233_v2 = vmul.f32 %v10546_v63, %v6878_v54  ;;  %v7238_v1 = vsel %vm1214_vm7, %v7217_v42, %v1213_v13  ;;  %v10547_v63 = vrot.slane %v10521_v15, %v5612_v8  ;;  %v10550_v28 = vld [vmem:[#allocation29_spill] sm:$0xff] }
  0xbf   :  { %10545 = vst [vmem:[#allocation123_spill] sm:$0xff] %v7227_v25  ;;  %v10548_v13 = vrot.slane %v6046_v41, %v5612_v8  ;;  %v7258_v36 = vmul.f32 %v3143_v55, %v6601_v32  ;;  %v10551_v62 = vrot.slane %v10550_v28, %v5693_v35  ;;  %v7277_v54 = vpop.permute.xlu0 %39  ;;  %v7283_v41 = vor.u32 %v4956_v53, %v4955_v27 }
  0xc0   :  { %v1150_v40 = vmul.f32 %v10547_v63, %v1044_v58  ;;  %v10553_v63 = vld [vmem:[#allocation38_spill] sm:$0xff]  ;;  %5058 = vmatprep.subr.bf16.mxu0 %v5057_v50  ;;  %10556 = vst [vmem:[#allocation127_spill] sm:$0xff] %v7277_v54 }
  0xc1   :  { %v1321_v59 = vmul.f32 %v10548_v13, %v7238_v1  ;;  %10549 = vst [vmem:[#allocation124_spill] sm:$0xff] %v7258_v36  ;;  %v7265_v4 = vmul.f32 %v10551_v62, %v1044_v58  ;;  %v10554_v25 = vrot.slane %v10553_v63, %v5693_v35  ;;  %v1354_v13 = vpop.permute.xlu1 %1353  ;;  %10557 = vst [vmem:[#allocation128_spill] sm:$0xff] %v7283_v41  ;;  %565 = vrot.lane.b32.xlu1 %v7086_v48, %s5488_s28  ;;  %v10562_v62 = vld [vmem:[#allocation49_spill] sm:$0xff] }
  0xc2   :  { %v7321_v27 = vsel %vm67_vm1, %v10562_v62, %v38_v44  ;;  %563 = vrot.lane.b32.xlu0 %v6843_v26, %s5488_s28  ;;  %v10616_v39 = vrot.slane %v10553_v63, %v5616_v10 }
  0xc3   :  { %10552 = vst [vmem:[#allocation125_spill] sm:$0xff] %v7265_v4  ;;  %v7271_v42 = vmul.f32 %v10554_v25, %v7238_v1  ;;  %v5059_v36 = vpack.c.bf16 %v1321_v59, %v1150_v40  ;;  %v10558_v40 = vrot.slane %v5847_v51, %v5620_v12  ;;  %v10560_v51 = vrot.slane %v10541_v0, %v5612_v8  ;;  %v1356_v55 = vpop.permute.xlu0 %1355 }
  0xc4   :  { %v7326_v25 = vsel %vm67_vm1, %v38_v44, %v7277_v54  ;;  %v10571_v4 = vrot.slane %v5661_v24, %v5689_v33  ;;  %v7572_v21 = vmul.f32 %v10616_v39, %v7180_v3  ;;  %v10625_v3 = vld [vmem:[#allocation70_spill] sm:$0xff] }
  0xc5   :  { %10555 = vst [vmem:[#allocation126_spill] sm:$0xff] %v7271_v42  ;;  %v7295_v59 = vmul.f32 %v10558_v40, %v6601_v32  ;;  %5060 = vmatpush1.bf16.msra.mxu0 %v5059_v36  ;;  %v7310_v40 = vmul.f32 %v10560_v51, %v7079_v16  ;;  %v10561_v36 = vrot.slane %v10541_v0, %v5614_v9  ;;  %v7333_v51 = vld [vmem:[%s10071_s0 + $0x50] sm:$0xff]  ;;  %v7341_v62 = vpop.permute.xlu1 %1357 }
  0xc6   :  { %10563 = vst [vmem:[#allocation49_spill] sm:$0xff] %v7333_v51  ;;  %10566 = vst [vmem:[#allocation131_spill] sm:$0xff] %v7341_v62  ;;  %v10567_v42 = vrot.slane %v10550_v28, %v5620_v12  ;;  %v1616_v50 = vmul.f32 %v10571_v4, %v7321_v27  ;;  %860 = vrot.lane.b32.xlu1 %v7333_v51, %s5489_s29  ;;  %858 = vrot.lane.b32.xlu0 %v7086_v48, %s5489_s29 }
  0xc7   :  { %10559 = vst [vmem:[#allocation129_spill] sm:$0xff] %v7295_v59  ;;  %v7316_v58 = vmul.f32 %v10561_v36, %v7074_v57  ;;  %v10564_v36 = vrot.slane %v10550_v28, %v5618_v11 }
  0xc8   :  { %v7353_v59 = vmul.f32 %v10567_v42, %v7074_v57  ;;  %v10572_v42 = vrot.slane %v5661_v24, %v5691_v34  ;;  %v10619_v24 = vld [vmem:[#allocation86_spill] sm:$0xff] }
  0xc9   :  { %v7339_v53 = vmul.f32 %v10564_v36, %v7079_v16  ;;  %v7358_v16 = vsel %vm1385_vm8, %v1356_v55, %v7341_v62  ;;  %v7362_v36 = vsel %vm1385_vm8, %v1354_v13, %v1356_v55  ;;  %v10574_v55 = vrot.slane %v6120_v7, %v5691_v34  ;;  %v7394_v43 = vpop.permute.xlu1 %1381 }
  0xca   :  { %10568 = vst [vmem:[#allocation132_spill] sm:$0xff] %v7353_v59  ;;  %10569 = vst [vmem:[#allocation133_spill] sm:$0xff] %v7358_v16  ;;  %v1617_v57 = vmul.f32 %v10572_v42, %v7326_v25  ;;  %v10577_v42 = vrot.slane %v10537_v37, %v5620_v12  ;;  %1031 = vrot.lane.b32.xlu1 %v7333_v51, %s5490_s6  ;;  %1029 = vrot.lane.b32.xlu0 %v7086_v48, %s5490_s6 }
  0xcb   :  { %10565 = vst [vmem:[#allocation130_spill] sm:$0xff] %v7339_v53  ;;  %10570 = vst [vmem:[#allocation134_spill] sm:$0xff] %v7362_v36  ;;  %v10573_v53 = vrot.slane %v6120_v7, %v5689_v33  ;;  %v1495_v44 = vmul.f32 %v10574_v55, %v7358_v16  ;;  %v1384_v55 = vpop.permute.xlu0 %1383 }
  0xcc   :  { %10576 = vst [vmem:[#allocation135_spill] sm:$0xff] %v7394_v43  ;;  %v7404_v62 = vmul.f32 %v10577_v42, %v7154_v47  ;;  %v10584_v42 = vrot.slane %v6120_v7, %v5612_v8 }
  0xcd   :  { %v1494_v59 = vmul.f32 %v10573_v53, %v7362_v36  ;;  %v5113_v54 = vpack.c.bf16 %v1617_v57, %v1495_v44  ;;  %v7409_v53 = vsel %vm1385_vm8, %v7394_v43, %v1384_v55  ;;  %v10581_v44 = vld [vmem:[#allocation40_spill] sm:$0xff]  ;;  %v10592_v43 = vld [vmem:[#allocation75_spill] sm:$0xff] }
  0xce   :  { %10578 = vst [vmem:[#allocation136_spill] sm:$0xff] %v7404_v62  ;;  %10579 = vst [vmem:[#allocation137_spill] sm:$0xff] %v7409_v53  ;;  %v10582_v57 = vrot.slane %v10581_v44, %v5618_v11  ;;  %v1492_v4 = vmul.f32 %v10584_v42, %v7409_v53  ;;  %1202 = vrot.lane.b32.xlu1 %v7333_v51, %s5491_s7  ;;  %1200 = vrot.lane.b32.xlu0 %v7086_v48, %s5491_s7 }
  0xcf   :  { %v5115_v41 = vpack.c.bf16 %v1616_v50, %v1494_v59  ;;  %v7413_v50 = vsel %vm1385_vm8, %v1384_v55, %v1354_v13  ;;  %v10586_v55 = vld [vmem:[#allocation43_spill] sm:$0xff]  ;;  %5114 = vmatprep.subr.bf16.mxu1 %v5113_v54 }
  0xd0   :  { %10580 = vst [vmem:[#allocation138_spill] sm:$0xff] %v7413_v50  ;;  %v7421_v15 = vmul.f32 %v10582_v57, %v7238_v1  ;;  %v1493_v13 = vmul.f32 %v10585_v60, %v7413_v50  ;;  %v10587_v59 = vrot.slane %v10586_v55, %v5618_v11  ;;  %v10589_v1 = vrot.slane %v10550_v28, %v5616_v10  ;;  %v210_v50 = vpop.permute.xlu0 %209  ;;  %v10603_v28 = vld [vmem:[#allocation78_spill] sm:$0xff] }
  0xd1   :  { %5116 = vmatpush1.bf16.msra.mxu1 %v5115_v41  ;;  %v10594_v41 = vld [vmem:[#allocation55_spill] sm:$0xff]  ;;  %10617 = vst [vmem:[#allocation78_spill] sm:$0xff] %v7572_v21 }
  0xd2   :  { %10583 = vst [vmem:[#allocation139_spill] sm:$0xff] %v7421_v15  ;;  %v7435_v62 = vmul.f32 %v10587_v59, %v7409_v53  ;;  %v7443_v57 = vmul.f32 %v10589_v1, %v7154_v47  ;;  %v7453_v53 = vpop.permute.xlu1 %211  ;;  %v5061_v47 = vpack.c.bf16 %v10592_v43, %v1493_v13  ;;  %v10593_v1 = vld [vmem:[#allocation73_spill] sm:$0xff]  ;;  %v7485_v60 = vsel %vm237_vm2, %v10594_v41, %v210_v50 }
  0xd3   :  { %10591 = vst [vmem:[#allocation142_spill] sm:$0xff] %v7453_v53  ;;  %v7480_v54 = vsel %vm237_vm2, %v210_v50, %v7453_v53  ;;  %v767_v43 = vrot.slane %v6956_v56, %v5614_v9  ;;  %v10597_v50 = vrot.slane %v10553_v63, %v5618_v11  ;;  %v10599_v41 = vrot.slane %v10553_v63, %v5620_v12  ;;  %v10637_v63 = vld [vmem:[#allocation105_spill] sm:$0xff] }
  0xd4   :  { %10588 = vst [vmem:[#allocation140_spill] sm:$0xff] %v7435_v62  ;;  %10590 = vst [vmem:[#allocation141_spill] sm:$0xff] %v7443_v57  ;;  %v5063_v57 = vpack.c.bf16 %v10593_v1, %v1492_v4  ;;  %5062 = vmatprep.subr.bf16.mxu0 %v5061_v47  ;;  %v10595_v4 = vrot.slane %v6054_v22, %v5612_v8  ;;  %v10596_v1 = vrot.slane %v6054_v22, %v5614_v9  ;;  %v381_v15 = vpop.permute.xlu0 %380  ;;  %v10602_v62 = vld [vmem:[#allocation91_spill] sm:$0xff] }
  0xd5   :  { %v7507_v47 = vmul.f32 %v10597_v50, %v7121_v46  ;;  %v7513_v59 = vmul.f32 %v10599_v41, %v7117_v45  ;;  %1373 = vrot.lane.b32.xlu1 %v7333_v51, %s5492_s20  ;;  %1371 = vrot.lane.b32.xlu0 %v7086_v48, %s5492_s20 }
  0xd6   :  { %v7495_v13 = vmul.f32 %v10595_v4, %v7121_v46  ;;  %v7501_v42 = vmul.f32 %v10596_v1, %v7117_v45  ;;  %5064 = vmatpush1.bf16.msra.mxu0 %v5063_v57  ;;  %v7515_v4 = vpop.permute.xlu1 %382  ;;  %v10604_v1 = vpack.c.bf16 %v10602_v62, %v10603_v28  ;;  %v10605_v46 = vld [vmem:[#allocation66_spill] sm:$0xff]  ;;  %v10612_v45 = vrot.slane %v10610_v20, %v5691_v34  ;;  %v10622_v57 = vld [vmem:[#allocation25_spill] sm:$0xff] }
  0xd7   :  { %10598 = vst [vmem:[#allocation75_spill] sm:$0xff] %v7507_v47  ;;  %10600 = vst [vmem:[#allocation73_spill] sm:$0xff] %v7513_v59  ;;  %v7523_v29 = vsel %vm408_vm3, %v381_v15, %v7515_v4  ;;  %v7528_v50 = vsel %vm408_vm3, %v10605_v46, %v381_v15  ;;  %v10607_v47 = vld [vmem:[#allocation6_spill] sm:$0xff]  ;;  %v10611_v15 = vrot.slane %v10610_v20, %v5689_v33  ;;  %v10615_v20 = vld [vmem:[#allocation24_spill] sm:$0xff] }
  0xd8   :  { %10601 = vst [vmem:[#allocation55_spill] sm:$0xff] %v7515_v4  ;;  %5066 = vmatprep.subr.bf16.mxu0 %v10604_v1  ;;  %v10608_v28 = vrot.slane %v10607_v47, %v5689_v33  ;;  %v10609_v1 = vrot.slane %v10607_v47, %v5691_v34  ;;  %v1861_v41 = vmul.f32 %v10612_v45, %v7523_v29  ;;  %v10618_v4 = vld [vmem:[#allocation99_spill] sm:$0xff]  ;;  %v10631_v45 = vld [vmem:[#allocation10_spill] sm:$0xff] }
  0xd9   :  { %v1860_v46 = vmul.f32 %v10611_v15, %v7528_v50  ;;  %v2057_v7 = vrot.slane %v10615_v20, %v5612_v8  ;;  %v10620_v55 = vpack.c.bf16 %v10618_v4, %v10619_v24  ;;  %v10624_v53 = vpack.c.bf16 %v10622_v57, %v10623_v18  ;;  %v10628_v57 = vld [vmem:[#allocation17_spill] sm:$0xff]  ;;  %53 = vrot.lane.b32.xlu0 %v7333_v51, %s5485_s19 }
  0xda   :  { %v1738_v62 = vmul.f32 %v10608_v28, %v7485_v60  ;;  %v1739_v59 = vmul.f32 %v10609_v1, %v7480_v54  ;;  %v7557_v28 = vld [vmem:[%s10071_s0 + $0x58] sm:$0xff]  ;;  %v7560_v1 = vmul.f32 %v767_v43, %v6601_v32  ;;  %v7577_v32 = vpop.permute.xlu1 %553  ;;  %v552_v43 = vpop.permute.xlu0 %551  ;;  %v771_v4 = vrot.slane %v6956_v56, %v5689_v33 }
  0xdb   :  { %5068 = vmatpush1.bf16.msra.mxu0 %v10620_v55  ;;  %10621 = vst [vmem:[#allocation66_spill] sm:$0xff] %v7577_v32  ;;  %v7587_v39 = vsel %vm579_vm4, %v552_v43, %v7577_v32  ;;  %v7592_v24 = vsel %vm579_vm4, %v10625_v3, %v552_v43  ;;  %v10626_v55 = vld [vmem:[#allocation47_spill] sm:$0xff]  ;;  %v10627_v18 = vrot.slane %v6136_v23, %v5614_v9  ;;  %v10640_v32 = vld [vmem:[#allocation53_spill] sm:$0xff] }
  0xdc   :  { %10613 = vst [vmem:[#allocation91_spill] sm:$0xff] %v7560_v1  ;;  %v5117_v15 = vpack.c.bf16 %v1861_v41, %v1739_v59  ;;  %v5119_v1 = vpack.c.bf16 %v1860_v46, %v1738_v62  ;;  %5070 = vmatprep.subr.bf16.mxu0 %v10624_v53  ;;  %v10629_v41 = vrot.slane %v10628_v57, %v5689_v33 }
  0xdd   :  { %v2591_v53 = vmul.f32 %v10627_v18, %v7358_v16  ;;  %v10630_v3 = vrot.slane %v10628_v57, %v5691_v34  ;;  %55 = vrot.lane.b32.xlu1 %v7557_v28, %s5485_s19  ;;  %v10632_v18 = vrot.slane %v10631_v45, %v5693_v35  ;;  %v10635_v43 = vrot.slane %v6136_v23, %v5612_v8 }
  0xde   :  { %v1982_v62 = vmul.f32 %v10629_v41, %v7592_v24  ;;  %v10633_v41 = vrot.slane %v6098_v38, %v5612_v8  ;;  %5118 = vmatprep.subr.bf16.mxu1 %v5117_v15  ;;  %v7638_v57 = vpop.permute.xlu1 %848  ;;  %225 = vrot.lane.b32.xlu0 %v7333_v51, %s5486_s24 }
  0xdf   :  { %v1983_v46 = vmul.f32 %v10630_v3, %v7587_v39  ;;  %v7618_v59 = vmul.f32 %v10632_v18, %v7321_v27  ;;  %v7629_v3 = vmul.f32 %v2057_v7, %v6843_v26  ;;  %v2590_v21 = vmul.f32 %v10635_v43, %v7362_v36  ;;  %v10636_v18 = vld [vmem:[#allocation26_spill] sm:$0xff]  ;;  %5120 = vmatpush1.bf16.msra.mxu1 %v5119_v1 }
  0xe0   :  { %v7624_v16 = vmul.f32 %v10633_v41, %v7321_v27  ;;  %v10638_v47 = vpack.c.bf16 %v10636_v18, %v10637_v63  ;;  %v847_v27 = vpop.permute.xlu0 %846  ;;  %v10639_v41 = vld [vmem:[#allocation52_spill] sm:$0xff]  ;;  %v5123_v15 = vpack.c.bf16 %v10640_v32, %v1982_v62  ;;  %v10641_v7 = vpack.c.bf16 %v7316_v58, %v7233_v2 }
  0xe1   :  { %10634 = vst [vmem:[#allocation99_spill] sm:$0xff] %v7629_v3  ;;  %v5121_v56 = vpack.c.bf16 %v10639_v41, %v1983_v46  ;;  %v7646_v3 = vmul.f32 %v771_v4, %v6843_v26  ;;  %v10644_v1 = vrot.slane %v10631_v45, %v5616_v10  ;;  %v10645_v2 = vrot.slane %v6098_v38, %v5614_v9 }
  0xe2   :  { %5072 = vmatpush1.bf16.msra.mxu0 %v10638_v47  ;;  %227 = vrot.lane.b32.xlu1 %v7557_v28, %s5486_s24  ;;  %v5077_v4 = vpack.c.bf16 %v2591_v53, %v7501_v42  ;;  %v10646_v46 = vrot.slane %v6178_v14, %v5614_v9  ;;  %v7676_v41 = vsel %vm872_vm5, %v847_v27, %v7638_v57  ;;  %v7688_v53 = vpop.permute.xlu1 %1019 }
  0xe3   :  { %5074 = vmatprep.subr.bf16.mxu0 %v10641_v7  ;;  %10642 = vst [vmem:[#allocation86_spill] sm:$0xff] %v7646_v3  ;;  %v7658_v32 = vmul.f32 %v10644_v1, %v7326_v25  ;;  %v2713_v58 = vmul.f32 %v10645_v2, %v7326_v25  ;;  %v10647_v7 = vld [vmem:[#allocation93_spill] sm:$0xff]  ;;  %5122 = vmatprep.subr.bf16.mxu1 %v5121_v56 }
  0xe4   :  { %v2835_v18 = vmul.f32 %v10646_v46, %v7480_v54  ;;  %v7681_v25 = vsel %vm872_vm5, %v10647_v7, %v847_v27  ;;  %v10648_v42 = vpack.c.bf16 %v7310_v40, %v7168_v49  ;;  %5124 = vmatpush1.bf16.msra.mxu1 %v5123_v15  ;;  %v1018_v1 = vpop.permute.xlu0 %1017  ;;  %v5079_v2 = vpack.c.bf16 %v2590_v21, %v7495_v13  ;;  %v10651_v13 = vld [vmem:[#allocation103_spill] sm:$0xff] }
  0xe5   :  { %v3147_v46 = vrot.slane %v6270_v6, %v5618_v11  ;;  %v10649_v56 = vrot.slane %v6178_v14, %v5612_v8  ;;  %v10650_v49 = vrot.slane %v10626_v55, %v5614_v9  ;;  %v7706_v21 = vsel %vm1043_vm6, %v1018_v1, %v7688_v53  ;;  %396 = vrot.lane.b32.xlu0 %v7333_v51, %s5487_s27 }
  0xe6   :  { %5076 = vmatpush1.bf16.msra.mxu0 %v10648_v42  ;;  %v7711_v15 = vsel %vm1043_vm6, %v10651_v13, %v1018_v1  ;;  %v10652_v42 = vrot.slane %v5903_v17, %v5689_v33  ;;  %v10654_v63 = vrot.slane %v10541_v0, %v5689_v33  ;;  %v10655_v1 = vrot.slane %v10541_v0, %v5691_v34  ;;  %v7743_v3 = vpop.permute.xlu1 %1190 }
  0xe7   :  { %v2834_v7 = vmul.f32 %v10649_v56, %v7485_v60  ;;  %v3079_v40 = vmul.f32 %v10650_v49, %v7587_v39  ;;  %5078 = vmatprep.subr.bf16.mxu0 %v5077_v4  ;;  %v10653_v49 = vrot.slane %v5903_v17, %v5691_v34  ;;  %398 = vrot.lane.b32.xlu1 %v7557_v28, %s5487_s27 }
  0xe8   :  { %v2226_v56 = vmul.f32 %v10652_v42, %v7681_v25  ;;  %v2348_v47 = vmul.f32 %v10654_v63, %v7711_v15  ;;  %v2349_v4 = vmul.f32 %v10655_v1, %v7706_v21  ;;  %v5081_v13 = vpack.c.bf16 %v2835_v18, %v2713_v58  ;;  %v1189_v52 = vpop.permute.xlu0 %1188 }
  0xe9   :  { %v2227_v36 = vmul.f32 %v10653_v49, %v7676_v41  ;;  %v10657_v1 = vrot.slane %v6204_v61, %v5614_v9  ;;  %v10658_v62 = vrot.slane %v10626_v55, %v5612_v8  ;;  %v7752_v63 = vmul.f32 %v3147_v46, %v6843_v26  ;;  %567 = vrot.lane.b32.xlu0 %v7333_v51, %s5488_s28 }
  0xea   :  { %5080 = vmatpush1.bf16.msra.mxu0 %v5079_v2  ;;  %v5127_v58 = vpack.c.bf16 %v2348_v47, %v2226_v56  ;;  %v10661_v46 = vrot.slane %v10526_v30, %v5614_v9  ;;  %v10667_v2 = vrot.slane %v6136_v23, %v5689_v33 }
  0xeb   :  { %v2957_v27 = vmul.f32 %v10657_v1, %v7523_v29  ;;  %v5125_v43 = vpack.c.bf16 %v2349_v4, %v2227_v36  ;;  %v3078_v42 = vmul.f32 %v10658_v62, %v7592_v24  ;;  %5082 = vmatprep.subr.bf16.mxu0 %v5081_v13  ;;  %10659 = vst [vmem:[#allocation25_spill] sm:$0xff] %v7752_v63 }
  0xec   :  { %v10660_v36 = vrot.slane %v6204_v61, %v5612_v8  ;;  %569 = vrot.lane.b32.xlu1 %v7557_v28, %s5488_s28  ;;  %v5083_v62 = vpack.c.bf16 %v2834_v7, %v7624_v16  ;;  %v3323_v4 = vmul.f32 %v10661_v46, %v7676_v41  ;;  %v7774_v13 = vsel %vm1214_vm7, %v1189_v52, %v7743_v3  ;;  %v7786_v16 = vld [vmem:[%s10071_s0 + $0x60] sm:$0xff]  ;;  %v1360_v7 = vpop.permute.xlu0 %1359 }
  0xed   :  { %v5085_v56 = vpack.c.bf16 %v3079_v40, %v2957_v27  ;;  %5126 = vmatprep.subr.bf16.mxu1 %v5125_v43  ;;  %v7788_v27 = vpop.permute.xlu1 %1361  ;;  %v3151_v40 = vrot.slane %v6270_v6, %v5620_v12  ;;  %v10663_v43 = vrot.slane %v10526_v30, %v5612_v8  ;;  %v10665_v46 = vrot.slane %v6054_v22, %v5689_v33 }
  0xee   :  { %v2956_v47 = vmul.f32 %v10660_v36, %v7528_v50  ;;  %v10662_v36 = vld [vmem:[#allocation115_spill] sm:$0xff]  ;;  %5084 = vmatpush1.bf16.msra.mxu0 %v5083_v62  ;;  %5128 = vmatpush1.bf16.msra.mxu1 %v5127_v58  ;;  %v7803_v58 = vsel %vm1385_vm8, %v1360_v7, %v7788_v27 }
  0xef   :  { %v7779_v18 = vsel %vm1214_vm7, %v10662_v36, %v1189_v52  ;;  %v3322_v36 = vmul.f32 %v10663_v43, %v7681_v25  ;;  %v10664_v62 = vld [vmem:[#allocation131_spill] sm:$0xff]  ;;  %5086 = vmatprep.subr.bf16.mxu0 %v5085_v56  ;;  %v10666_v43 = vrot.slane %v6054_v22, %v5691_v34  ;;  %v10668_v56 = vrot.slane %v6136_v23, %v5691_v34 }
  0xf0   :  { %v7808_v6 = vsel %vm1385_vm8, %v10664_v62, %v1360_v7  ;;  %v5087_v52 = vpack.c.bf16 %v3078_v42, %v2956_v47  ;;  %v2470_v26 = vmul.f32 %v10665_v46, %v7779_v18  ;;  %864 = vrot.lane.b32.xlu1 %v7786_v16, %s5489_s29  ;;  %v10669_v47 = vld [vmem:[#allocation11_spill] sm:$0xff]  ;;  %v10671_v62 = vld [vmem:[#allocation54_spill] sm:$0xff]  ;;  %862 = vrot.lane.b32.xlu0 %v7557_v28, %s5489_s29  ;;  %v42_v22 = vpop.permute.xlu0 %41 }
  0xf1   :  { %v2471_v1 = vmul.f32 %v10666_v43, %v7774_v13  ;;  %v2592_v63 = vmul.f32 %v10667_v2, %v7808_v6  ;;  %v2593_v42 = vmul.f32 %v10668_v56, %v7803_v58  ;;  %v10670_v7 = vrot.slane %v10669_v47, %v5693_v35  ;;  %v10673_v2 = vld [vmem:[#allocation56_spill] sm:$0xff]  ;;  %v7843_v49 = vpop.permute.xlu1 %43 }
  0xf2   :  { %v10672_v43 = vrot.slane %v10671_v62, %v5614_v9  ;;  %v5089_v37 = vpack.c.bf16 %v3323_v4, %v10673_v2  ;;  %v2061_v56 = vrot.slane %v10615_v20, %v5614_v9  ;;  %5088 = vmatpush1.bf16.msra.mxu0 %v5087_v52  ;;  %10674 = vst [vmem:[#allocation104_spill] sm:$0xff] %v7843_v49 }
  0xf3   :  { %v7832_v46 = vmul.f32 %v10670_v7, %v7485_v60  ;;  %v5129_v23 = vpack.c.bf16 %v2593_v42, %v2471_v1  ;;  %v5131_v60 = vpack.c.bf16 %v2592_v63, %v2470_v26  ;;  %v7846_v7 = vmul.f32 %v3151_v40, %v7086_v48  ;;  %v10683_v42 = vld [vmem:[#allocation127_spill] sm:$0xff] }
  0xf4   :  { %v3567_v5 = vmul.f32 %v10672_v43, %v7774_v13  ;;  %v10676_v51 = vrot.slane %v10669_v47, %v5616_v10  ;;  %v10677_v52 = vrot.slane %v10543_v19, %v5614_v9  ;;  %5090 = vmatprep.subr.bf16.mxu0 %v5089_v37  ;;  %v10678_v26 = vrot.slane %v10671_v62, %v5612_v8 }
  0xf5   :  { %10675 = vst [vmem:[#allocation70_spill] sm:$0xff] %v7846_v7  ;;  %1035 = vrot.lane.b32.xlu1 %v7786_v16, %s5490_s6  ;;  %1033 = vrot.lane.b32.xlu0 %v7557_v28, %s5490_s6  ;;  %v7894_v1 = vsel %vm67_vm1, %v10683_v42, %v42_v22 }
  0xf6   :  { %v7854_v4 = vmul.f32 %v10676_v51, %v7480_v54  ;;  %v3445_v2 = vmul.f32 %v10677_v52, %v7706_v21  ;;  %v3566_v40 = vmul.f32 %v10678_v26, %v7779_v18  ;;  %v10679_v51 = vld [vmem:[#allocation58_spill] sm:$0xff]  ;;  %5130 = vmatprep.subr.bf16.mxu1 %v5129_v23  ;;  %v7880_v26 = vmul.f32 %v2061_v56, %v7086_v48  ;;  %v7896_v23 = vpop.permute.xlu1 %215 }
  0xf7   :  { %v5091_v54 = vpack.c.bf16 %v3322_v36, %v10679_v51  ;;  %v10682_v36 = vrot.slane %v10543_v19, %v5612_v8  ;;  %v7889_v52 = vsel %vm67_vm1, %v42_v22, %v7843_v49  ;;  %5132 = vmatpush1.bf16.msra.mxu1 %v5131_v60  ;;  %10684 = vst [vmem:[#allocation26_spill] sm:$0xff] %v7896_v23 }
  0xf8   :  { %v5093_v63 = vpack.c.bf16 %v3567_v5, %v3445_v2  ;;  %10681 = vst [vmem:[#allocation10_spill] sm:$0xff] %v7880_v26  ;;  %v214_v5 = vpop.permute.xlu0 %213  ;;  %v10685_v2 = vld [vmem:[#allocation142_spill] sm:$0xff]  ;;  %v5149_v22 = vpack.c.bf16 %v7854_v4, %v7658_v32  ;;  %v10691_v60 = vrot.slane %v6098_v38, %v5689_v33 }
  0xf9   :  { %v3444_v51 = vmul.f32 %v10682_v36, %v7711_v15  ;;  %5092 = vmatpush1.bf16.msra.mxu0 %v5091_v54  ;;  %v7901_v56 = vsel %vm237_vm2, %v214_v5, %v7896_v23  ;;  %v7906_v36 = vsel %vm237_vm2, %v10685_v2, %v214_v5  ;;  %v10686_v54 = vld [vmem:[#allocation16_spill] sm:$0xff]  ;;  %1206 = vrot.lane.b32.xlu1 %v7786_v16, %s5491_s7  ;;  %v10688_v5 = vld [vmem:[#allocation59_spill] sm:$0xff] }
  0xfa   :  { %5094 = vmatprep.subr.bf16.mxu0 %v5093_v63  ;;  %v10687_v42 = vrot.slane %v10686_v54, %v5693_v35  ;;  %v10689_v63 = vrot.slane %v10688_v5, %v5614_v9  ;;  %v2714_v7 = vmul.f32 %v10691_v60, %v7894_v1  ;;  %1204 = vrot.lane.b32.xlu0 %v7557_v28, %s5491_s7  ;;  %v10695_v60 = vld [vmem:[#allocation12_spill] sm:$0xff]  ;;  %v7964_v17 = vpop.permute.xlu1 %386 }
  0xfb   :  { %v5095_v26 = vpack.c.bf16 %v3566_v40, %v3444_v51  ;;  %v10693_v40 = vrot.slane %v6178_v14, %v5689_v33  ;;  %v10696_v37 = vrot.slane %v10695_v60, %v5693_v35 }
  0xfc   :  { %v7916_v43 = vmul.f32 %v10687_v42, %v7592_v24  ;;  %v3689_v2 = vmul.f32 %v10689_v63, %v7803_v58  ;;  %v10692_v24 = vrot.slane %v6098_v38, %v5691_v34  ;;  %v10694_v63 = vrot.slane %v6178_v14, %v5691_v34 }
  0xfd   :  { %v2836_v51 = vmul.f32 %v10693_v40, %v7906_v36  ;;  %v7948_v44 = vmul.f32 %v10696_v37, %v7528_v50  ;;  %v10698_v40 = vrot.slane %v10686_v54, %v5616_v10  ;;  %5096 = vmatpush1.bf16.msra.mxu0 %v5095_v26  ;;  %1377 = vrot.lane.b32.xlu1 %v7786_v16, %s5492_s20 }
  0xfe   :  { %v2715_v42 = vmul.f32 %v10692_v24, %v7889_v52  ;;  %v2837_v4 = vmul.f32 %v10694_v63, %v7901_v56  ;;  %v10697_v24 = vrot.slane %v10695_v60, %v5616_v10  ;;  %v10699_v63 = vld [vmem:[#allocation20_spill] sm:$0xff]  ;;  %4227 = vmatprep.subr.mxu0 %v3689_v2  ;;  %1375 = vrot.lane.b32.xlu0 %v7557_v28, %s5492_s20  ;;  %v8008_v26 = vpop.permute.xlu1 %557 }
  0xff   :  { %v691_v49 = vmul.f32 %v10698_v40, %v7587_v39  ;;  %v10700_v14 = vrot.slane %v10699_v63, %v5693_v35  ;;  %v10701_v50 = vrot.slane %v10699_v63, %v5616_v10  ;;  %v5135_v60 = vpack.c.bf16 %v2836_v51, %v2714_v7  ;;  %v10706_v40 = vld [vmem:[#allocation51_spill] sm:$0xff]  ;;  %v10708_v7 = vld [vmem:[#allocation57_spill] sm:$0xff] }
 0x100   :  { %v520_v38 = vmul.f32 %v10697_v24, %v7523_v29  ;;  %v385_v29 = vpop.permute.xlu0 %384  ;;  %v5133_v24 = vpack.c.bf16 %v2837_v4, %v2715_v42  ;;  %v5155_v2 = vpack.c.bf16 %v7916_v43, %v7948_v44  ;;  %v7993_v4 = vld [vmem:[%s10073_s1] sm:$0xff]  ;;  %v10717_v42 = vpack.c.bf16 %v7832_v46, %v7618_v59 }
 0x101   :  { %v7962_v23 = vmul.f32 %v10700_v14, %v7681_v25  ;;  %v7970_v37 = vmul.f32 %v10701_v50, %v7676_v41  ;;  %v10702_v14 = vrot.slane %v10688_v5, %v5612_v8  ;;  %v10707_v43 = vld [vmem:[#allocation55_spill] sm:$0xff]  ;;  %v8013_v51 = vsel %vm408_vm3, %v385_v29, %v7964_v17  ;;  %229 = vrot.lane.b32.xlu1 %v7786_v16, %s5486_s24 }
 0x102   :  { %v8006_v28 = vsel %vm408_vm3, %v10707_v43, %v385_v29  ;;  %5134 = vmatprep.subr.bf16.mxu1 %v5133_v24  ;;  %v5153_v39 = vpack.c.bf16 %v691_v49, %v520_v38  ;;  %v10709_v24 = vld [vmem:[#allocation27_spill] sm:$0xff]  ;;  %v10711_v49 = vld [vmem:[#allocation66_spill] sm:$0xff]  ;;  %v10713_v29 = vld [vmem:[#allocation36_spill] sm:$0xff]  ;;  %v10716_v43 = vrot.slane %v6204_v61, %v5689_v33  ;;  %57 = vrot.lane.b32.xlu0 %v7786_v16, %s5485_s19  ;;  %v8078_v59 = vpop.permute.xlu1 %852 }
 0x103   :  { %v3688_v25 = vmul.f32 %v10702_v14, %v7808_v6  ;;  %5136 = vmatpush1.bf16.msra.mxu1 %v5135_v60  ;;  %v5157_v44 = vpack.c.bf16 %v7970_v37, %v10708_v7  ;;  %v10712_v60 = vrot.slane %v10709_v24, %v5616_v10  ;;  %v10714_v7 = vrot.slane %v10713_v29, %v5693_v35 }
 0x104   :  { %v556_v50 = vpop.permute.xlu0 %555  ;;  %v2958_v14 = vmul.f32 %v10716_v43, %v8006_v28  ;;  %10721 = vst [vmem:[#allocation105_spill] sm:$0xff] %v8078_v59  ;;  %v10741_v43 = vld [vmem:[#allocation34_spill] sm:$0xff] }
 0x105   :  { %4228 = vmatpush1.msra.mxu0 %v3688_v25  ;;  %v10710_v25 = vrot.slane %v10709_v24, %v5693_v35  ;;  %v8028_v38 = vsel %vm579_vm4, %v556_v50, %v8008_v26  ;;  %v1155_v37 = vmul.f32 %v10712_v60, %v7706_v21  ;;  %v10718_v21 = vrot.slane %v6204_v61, %v5691_v34 }
 0x106   :  { %5150 = vmatprep.subr.bf16.mxu0 %v5149_v22  ;;  %v8033_v22 = vsel %vm579_vm4, %v10711_v49, %v556_v50  ;;  %4240 = vmatmul.mubr.f32.vlgmr.msra.gmra.mrb[0].mxu0 %v7993_v4  ;;  %v8051_v50 = vmul.f32 %v10714_v7, %v7779_v18  ;;  %v10719_v60 = vrot.slane %v10626_v55, %v5689_v33 }
 0x107   :  { %v8023_v32 = vmul.f32 %v10710_v25, %v7711_v15  ;;  %v8041_v15 = vld [vmem:[%s10073_s1 + $0x18] sm:$0xff]  ;;  %v10715_v25 = vrot.slane %v10713_v29, %v5616_v10  ;;  %5152 = vmatpush1.bf16.msra.mxu0 %v10717_v42  ;;  %v2959_v18 = vmul.f32 %v10718_v21, %v8013_v51  ;;  %571 = vrot.lane.b32.xlu1 %v7786_v16, %s5488_s28 }
 0x108   :  { %v3080_v7 = vmul.f32 %v10719_v60, %v8033_v22  ;;  %5154 = vmatprep.subr.bf16.mxu0 %v5153_v39  ;;  %v851_v46 = vpop.permute.xlu0 %850  ;;  %5030 = vmatprep.mubr.msk.f32.mxu0 %vm4168_vm0, %v8041_v15 }
 0x109   :  { %v1326_v49 = vmul.f32 %v10715_v25, %v7774_v13  ;;  %v10720_v13 = vrot.slane %v10626_v55, %v5691_v34  ;;  %v8093_v39 = vsel %vm872_vm5, %v851_v46, %v8078_v59  ;;  %v8098_v55 = vsel %vm872_vm5, %v7638_v57, %v851_v46  ;;  %400 = vrot.lane.b32.xlu0 %v7786_v16, %s5487_s27 }
 0x10a   :  { %v5139_v42 = vpack.c.bf16 %v3080_v7, %v2958_v14  ;;  %v5163_v60 = vpack.c.bf16 %v8051_v50, %v8023_v32  ;;  %v10725_v57 = vrot.slane %v10526_v30, %v5689_v33  ;;  %v10726_v14 = vrot.slane %v10526_v30, %v5691_v34 }
 0x10b   :  { %v3081_v25 = vmul.f32 %v10720_v13, %v8028_v38  ;;  %5156 = vmatpush1.bf16.msra.mxu0 %v5155_v2  ;;  %v8120_v2 = vpop.permute.xlu1 %1023  ;;  %v5161_v50 = vpack.c.bf16 %v1326_v49, %v1155_v37 }
 0x10c   :  { %v3324_v46 = vmul.f32 %v10725_v57, %v8098_v55  ;;  %v3325_v32 = vmul.f32 %v10726_v14, %v8093_v39  ;;  %10727 = vst [vmem:[#allocation52_spill] sm:$0xff] %v8120_v2  ;;  %5158 = vmatprep.subr.bf16.mxu0 %v5157_v44  ;;  %v1022_v14 = vpop.permute.xlu0 %1021 }
 0x10d   :  { %v5137_v21 = vpack.c.bf16 %v3081_v25, %v2959_v18  ;;  %v10728_v18 = vld [vmem:[#allocation41_spill] sm:$0xff] }
 0x10e   :  { %v10729_v7 = vrot.slane %v10728_v18, %v5693_v35  ;;  %v10730_v57 = vrot.slane %v10728_v18, %v5616_v10 }
 0x10f   :  { %5138 = vmatprep.subr.bf16.mxu1 %v5137_v21  ;;  %v10732_v21 = vld [vmem:[#allocation4_spill] sm:$0xff] }
 0x110   :  { %v1496_v25 = vmul.f32 %v10729_v7, %v7808_v6  ;;  %v1497_v41 = vmul.f32 %v10730_v57, %v7803_v58  ;;  %5140 = vmatpush1.bf16.msra.mxu1 %v5139_v42  ;;  %v10733_v37 = vrot.slane %v10732_v21, %v5616_v10  ;;  %v5472_v6 = vld [vmem:[%s10071_s0 + $0x68] sm:$0xff]  ;;  %v10735_v58 = vld [vmem:[#allocation83_spill] sm:$0xff]  ;;  %v10736_v57 = vpack.c.bf16 %v7962_v23, %v10706_v40  ;;  %v8172_v42 = vpop.permute.xlu1 %1194 }
 0x111   :  { %1037 = vrot.lane.b32.xlu1 %v5472_v6, %s5490_s6  ;;  %v10734_v7 = vld [vmem:[#allocation80_spill] sm:$0xff]  ;;  %v5143_v44 = vpack.c.bf16 %v3324_v46, %v10735_v58  ;;  %v10739_v23 = vrot.slane %v10631_v45, %v5618_v11  ;;  %866 = vrot.lane.b32.xlu0 %v5472_v6, %s5489_s29  ;;  %10740 = vst [vmem:[#allocation53_spill] sm:$0xff] %v8172_v42 }
 0x112   :  { %v1619_v49 = vmul.f32 %v10733_v37, %v7889_v52  ;;  %v5141_v59 = vpack.c.bf16 %v3325_v32, %v10734_v7  ;;  %5160 = vmatpush1.bf16.msra.mxu0 %v10736_v57  ;;  %v8150_v37 = vld [vmem:[%s10073_s1 + $0x10] sm:$0xff]  ;;  %v8169_v57 = vsel %vm1043_vm6, %v7688_v53, %v1022_v14  ;;  %v775_v32 = vrot.slane %v10741_v43, %v5691_v34 }
 0x113   :  { %v8164_v40 = vmul.f32 %v10739_v23, %v7894_v1  ;;  %v10742_v58 = vrot.slane %v10732_v21, %v5693_v35  ;;  %v10743_v23 = vld [vmem:[#allocation13_spill] sm:$0xff]  ;;  %v8187_v53 = vsel %vm1043_vm6, %v1022_v14, %v8120_v2  ;;  %5162 = vmatprep.subr.bf16.mxu0 %v5161_v50  ;;  %4246 = vmatmul.mubr.f32.gmra.mrb[2].mxu0 %v8150_v37 }
 0x114   :  { %5142 = vmatprep.subr.bf16.mxu1 %v5141_v59  ;;  %v10744_v46 = vrot.slane %v10743_v23, %v5616_v10  ;;  %v1193_v59 = vpop.permute.xlu0 %1192  ;;  %v10745_v50 = vrot.slane %v10631_v45, %v5620_v12  ;;  %v10750_v45 = vrot.slane %v10671_v62, %v5689_v33  ;;  %v8266_v18 = vmul.f32 %v775_v32, %v7086_v48 }
 0x115   :  { %v1618_v7 = vmul.f32 %v10742_v58, %v7894_v1  ;;  %5144 = vmatpush1.bf16.msra.mxu1 %v5143_v44  ;;  %v8192_v16 = vsel %vm1214_vm7, %v1193_v59, %v8172_v42  ;;  %v8197_v1 = vsel %vm1214_vm7, %v7743_v3, %v1193_v59  ;;  %1379 = vrot.lane.b32.xlu1 %v5472_v6, %s5492_s20  ;;  %v10746_v44 = vld [vmem:[#allocation6_spill] sm:$0xff] }
 0x116   :  { %v1863_v13 = vmul.f32 %v10744_v46, %v8013_v51  ;;  %v5165_v46 = vpack.c.bf16 %v1619_v49, %v1497_v41  ;;  %v8205_v14 = vmul.f32 %v10745_v50, %v7889_v52  ;;  %v10747_v58 = vrot.slane %v10746_v44, %v5616_v10  ;;  %5164 = vmatpush1.bf16.msra.mxu0 %v5163_v60 }
 0x117   :  { %v10748_v3 = vrot.slane %v10543_v19, %v5689_v33  ;;  %v10749_v41 = vrot.slane %v10543_v19, %v5691_v34  ;;  %v3568_v52 = vmul.f32 %v10750_v45, %v8197_v1  ;;  %v10751_v50 = vrot.slane %v10671_v62, %v5691_v34  ;;  %1208 = vrot.lane.b32.xlu0 %v5472_v6, %s5491_s7  ;;  %v8243_v6 = vld [vmem:[%s10073_s1 + $0x8] sm:$0xff] }
 0x118   :  { %v1741_v61 = vmul.f32 %v10747_v58, %v7901_v56  ;;  %5166 = vmatprep.subr.bf16.mxu0 %v5165_v46  ;;  %v5167_v60 = vpack.c.bf16 %v1618_v7, %v1496_v25  ;;  %v10753_v45 = vrot.slane %v10743_v23, %v5693_v35  ;;  %v1364_v2 = vpop.permute.xlu0 %1363  ;;  %10754 = vst [vmem:[#allocation93_spill] sm:$0xff] %v8243_v6  ;;  %v10755_v25 = vld [vmem:[#allocation17_spill] sm:$0xff]  ;;  %10759 = vst [vmem:[#allocation103_spill] sm:$0xff] %v8266_v18  ;;  %v10779_v18 = vld [vmem:[#allocation42_spill] sm:$0xff] }
 0x119   :  { %v3446_v59 = vmul.f32 %v10748_v3, %v8169_v57  ;;  %v3447_v49 = vmul.f32 %v10749_v41, %v8187_v53  ;;  %v3569_v58 = vmul.f32 %v10751_v50, %v8192_v16  ;;  %v8228_v3 = vpop.permute.xlu1 %1365  ;;  %v10752_v41 = vrot.slane %v10669_v47, %v5618_v11  ;;  %5033 = vmatprep.mubr.msk.f32.mxu0 %vm4168_vm0, %v8243_v6 }
 0x11a   :  { %v1862_v42 = vmul.f32 %v10753_v45, %v8006_v28  ;;  %v5169_v62 = vpack.c.bf16 %v1863_v13, %v1741_v61  ;;  %v10756_v7 = vrot.slane %v10755_v25, %v5616_v10  ;;  %v8254_v50 = vsel %vm1385_vm8, %v1364_v2, %v8228_v3  ;;  %5168 = vmatpush1.bf16.msra.mxu0 %v5167_v60  ;;  %v10770_v60 = vld [vmem:[#allocation21_spill] sm:$0xff] }
 0x11b   :  { %v8234_v19 = vmul.f32 %v10752_v41, %v7906_v36  ;;  %v5145_v41 = vpack.c.bf16 %v3569_v58, %v3447_v49  ;;  %v5147_v61 = vpack.c.bf16 %v3568_v52, %v3446_v59  ;;  %v10292_v13 = vmov 0   ;;  %v10760_v49 = vld [vmem:[#allocation35_spill] sm:$0xff] }
 0x11c   :  { %v1985_v46 = vmul.f32 %v10756_v7, %v8028_v38  ;;  %5470 = vset.pattern.permute.xlu0 %v10292_v13  ;;  %v10757_v45 = vrot.slane %v10669_v47, %v5620_v12  ;;  %v10758_v23 = vrot.slane %v10746_v44, %v5693_v35  ;;  %v8273_v52 = vsel %vm1385_vm8, %v7788_v27, %v1364_v2  ;;  %v46_v27 = vpop.permute.xlu0 %45 }
 0x11d   :  { %5146 = vmatprep.subr.bf16.mxu1 %v5145_v41  ;;  %5170 = vmatprep.subr.bf16.mxu0 %v5169_v62  ;;  %v8275_v47 = vpop.permute.xlu1 %47  ;;  %v2065_v48 = vrot.slane %v10615_v20, %v5689_v33  ;;  %v5203_v41 = vpack.c.bf16 %v8234_v19, %v8164_v40  ;;  %v10767_v19 = vrot.slane %v10688_v5, %v5689_v33 }
 0x11e   :  { %v351_v30 = vmul.f32 %v10757_v45, %v7901_v56  ;;  %v1740_v7 = vmul.f32 %v10758_v23, %v7906_v36  ;;  %v10761_v56 = vrot.slane %v10688_v5, %v5691_v34  ;;  %v10762_v23 = vrot.slane %v10755_v25, %v5693_v35  ;;  %5148 = vmatpush1.bf16.msra.mxu1 %v5147_v61  ;;  %v10772_v61 = vld [vmem:[#allocation49_spill] sm:$0xff] }
 0x11f   :  { %v3690_v40 = vmul.f32 %v10767_v19, %v8273_v52  ;;  %v8322_v19 = vmul.f32 %v2065_v48, %v10772_v61 }
 0x120   :  { %v3691_v36 = vmul.f32 %v10761_v56, %v8254_v50  ;;  %v5171_v32 = vpack.c.bf16 %v1862_v42, %v1740_v7  ;;  %v1984_v58 = vmul.f32 %v10762_v23, %v8033_v22  ;;  %v10764_v42 = vrot.slane %v10541_v0, %v5616_v10  ;;  %v10765_v7 = vld [vmem:[#allocation72_spill] sm:$0xff]  ;;  %v218_v13 = vpop.permute.xlu0 %217 }
 0x121   :  { %v5173_v56 = vpack.c.bf16 %v10765_v7, %v1985_v46  ;;  %v10766_v23 = vrot.slane %v10686_v54, %v5620_v12  ;;  %v5201_v62 = vpack.c.bf16 %v351_v30, %v8205_v14  ;;  %v10769_v46 = vrot.slane %v10686_v54, %v5618_v11  ;;  %10773 = vst [vmem:[#allocation115_spill] sm:$0xff] %v8322_v19  ;;  %v10774_v14 = vld [vmem:[#allocation12_spill] sm:$0xff] }
 0x122   :  { %v2351_v45 = vmul.f32 %v10764_v42, %v8187_v53  ;;  %4304 = vmatprep.subr.mxu1 %v3691_v36  ;;  %5172 = vmatpush1.bf16.msra.mxu0 %v5171_v32  ;;  %v10775_v42 = vrot.slane %v10774_v14, %v5620_v12  ;;  %v10778_v30 = vrot.slane %v10774_v14, %v5618_v11 }
 0x123   :  { %v693_v59 = vmul.f32 %v10766_v23, %v8028_v38  ;;  %v692_v7 = vmul.f32 %v10769_v46, %v8033_v22  ;;  %v10771_v38 = vrot.slane %v10770_v60, %v5616_v10  ;;  %5174 = vmatprep.subr.bf16.mxu0 %v5173_v56  ;;  %v8319_v23 = vpop.permute.xlu1 %219  ;;  %v10776_v22 = vld [vmem:[#allocation69_spill] sm:$0xff]  ;;  %4305 = vmatpush1.msra.mxu1 %v3690_v40 }
 0x124   :  { %v522_v54 = vmul.f32 %v10775_v42, %v8013_v51  ;;  %v5175_v46 = vpack.c.bf16 %v10776_v22, %v1984_v58  ;;  %v521_v19 = vmul.f32 %v10778_v30, %v8006_v28  ;;  %v10780_v51 = vrot.slane %v10779_v18, %v5616_v10  ;;  %5202 = vmatprep.subr.bf16.mxu1 %v5201_v62 }
 0x125   :  { %v2229_v32 = vmul.f32 %v10771_v38, %v8093_v39  ;;  %v10777_v38 = vrot.slane %v10541_v0, %v5693_v35  ;;  %4317 = vmatmul.mubr.f32.vlgmr.msra.gmra.mrb[0].mxu1 %v7993_v4  ;;  %v10781_v40 = vrot.slane %v10699_v63, %v5620_v12  ;;  %v8357_v28 = vsel %vm237_vm2, %v218_v13, %v8319_v23 }
 0x126   :  { %v2595_v58 = vmul.f32 %v10780_v51, %v8254_v50  ;;  %5176 = vmatpush1.bf16.msra.mxu0 %v5175_v46  ;;  %v5205_v62 = vpack.c.bf16 %v693_v59, %v522_v54  ;;  %v5207_v30 = vpack.c.bf16 %v692_v7, %v521_v19  ;;  %5204 = vmatpush1.bf16.msra.mxu1 %v5203_v41  ;;  %v389_v7 = vpop.permute.xlu0 %388  ;;  %v10788_v54 = vld [vmem:[#allocation26_spill] sm:$0xff] }
 0x127   :  { %v2350_v56 = vmul.f32 %v10777_v38, %v8169_v57  ;;  %v5177_v42 = vpack.c.bf16 %v2351_v45, %v2229_v32  ;;  %v986_v22 = vmul.f32 %v10781_v40, %v8093_v39  ;;  %v10782_v38 = vrot.slane %v10770_v60, %v5693_v35  ;;  %v10783_v45 = vld [vmem:[#allocation37_spill] sm:$0xff]  ;;  %v8363_v39 = vpop.permute.xlu1 %390  ;;  %v10785_v40 = vld [vmem:[#allocation107_spill] sm:$0xff]  ;;  %5032 = vmatprep.mubr.msk.f32.mxu1 %vm4168_vm0, %v8041_v15 }
 0x128   :  { %v10784_v32 = vrot.slane %v10783_v45, %v5616_v10  ;;  %v10786_v36 = vrot.slane %v10779_v18, %v5693_v35  ;;  %v8374_v59 = vsel %vm67_vm1, %v46_v27, %v8275_v47  ;;  %5206 = vmatprep.subr.bf16.mxu1 %v5205_v62  ;;  %v10787_v41 = vrot.slane %v10699_v63, %v5618_v11 }
 0x129   :  { %v2228_v14 = vmul.f32 %v10782_v38, %v8098_v55  ;;  %5178 = vmatprep.subr.bf16.mxu0 %v5177_v42  ;;  %4323 = vmatmul.mubr.f32.gmra.mrb[2].mxu1 %v8150_v37 }
 0x12a   :  { %v2473_v51 = vmul.f32 %v10784_v32, %v8192_v16  ;;  %v2594_v46 = vmul.f32 %v10786_v36, %v8273_v52  ;;  %v985_v19 = vmul.f32 %v10787_v41, %v8098_v55  ;;  %v10789_v36 = vld [vmem:[#allocation44_spill] sm:$0xff]  ;;  %v10791_v32 = vrot.slane %v10709_v24, %v5620_v12  ;;  %5208 = vmatpush1.bf16.msra.mxu1 %v5207_v30  ;;  %v10800_v30 = vld [vmem:[#allocation71_spill] sm:$0xff] }
 0x12b   :  { %v5179_v48 = vpack.c.bf16 %v2350_v56, %v2228_v14  ;;  %v8385_v56 = vsel %vm237_vm2, %v10788_v54, %v218_v13  ;;  %v10790_v42 = vrot.slane %v10789_v36, %v5616_v10  ;;  %v10792_v55 = vrot.slane %v10713_v29, %v5620_v12  ;;  %v10794_v54 = vld [vmem:[#allocation85_spill] sm:$0xff]  ;;  %5035 = vmatprep.mubr.msk.f32.mxu1 %vm4168_vm0, %v8243_v6 }
 0x12c   :  { %v5181_v62 = vpack.c.bf16 %v2595_v58, %v2473_v51  ;;  %v1157_v38 = vmul.f32 %v10791_v32, %v8187_v53  ;;  %v10793_v13 = vrot.slane %v10783_v45, %v5693_v35  ;;  %v5209_v58 = vpack.c.bf16 %v986_v22, %v10794_v54  ;;  %v4156_v51 = vld [vmem:[%s10074_s3] sm:$0xff]  ;;  %v10796_v32 = vld [vmem:[#allocation104_spill] sm:$0xff]  ;;  %v8421_v22 = vpop.permute.xlu1 %561 }
 0x12d   :  { %v2839_v14 = vmul.f32 %v10790_v42, %v8357_v28  ;;  %v1328_v63 = vmul.f32 %v10792_v55, %v8192_v16  ;;  %5180 = vmatpush1.bf16.msra.mxu0 %v5179_v48  ;;  %v10795_v53 = vrot.slane %v10713_v29, %v5618_v11  ;;  %v8415_v16 = vsel %vm67_vm1, %v10796_v32, %v46_v27  ;;  %v10797_v55 = vld [vmem:[#allocation39_spill] sm:$0xff] }
 0x12e   :  { %v2472_v41 = vmul.f32 %v10793_v13, %v8197_v1  ;;  %v10798_v48 = vrot.slane %v10797_v55, %v5616_v10  ;;  %5182 = vmatprep.subr.bf16.mxu0 %v5181_v62  ;;  %v10799_v29 = vrot.slane %v10789_v36, %v5693_v35  ;;  %v8430_v27 = vsel %vm408_vm3, %v389_v7, %v8363_v39 }
 0x12f   :  { %v1327_v42 = vmul.f32 %v10795_v53, %v8197_v1  ;;  %5210 = vmatprep.subr.bf16.mxu1 %v5209_v58  ;;  %v560_v53 = vpop.permute.xlu0 %559  ;;  %v5211_v62 = vpack.c.bf16 %v985_v19, %v10800_v30  ;;  %4160 = vperm.xlu0 %5470, %v4156_v51   ;;  %v10801_v58 = vrot.slane %v10709_v24, %v5618_v11  ;;  %v10804_v24 = vld [vmem:[#allocation46_spill] sm:$0xff] }
 0x130   :  { %v2717_v13 = vmul.f32 %v10798_v48, %v8374_v59  ;;  %v5183_v54 = vpack.c.bf16 %v2594_v46, %v2472_v41  ;;  %v2838_v1 = vmul.f32 %v10799_v29, %v8385_v56  ;;  %v8438_v46 = vsel %vm579_vm4, %v560_v53, %v8421_v22 }
 0x131   :  { %v8443_v41 = vsel %vm579_vm4, %v8008_v26, %v560_v53  ;;  %v1156_v48 = vmul.f32 %v10801_v58, %v8169_v57  ;;  %v10802_v19 = vrot.slane %v10732_v21, %v5620_v12  ;;  %v10803_v30 = vrot.slane %v10797_v55, %v5693_v35  ;;  %5212 = vmatpush1.bf16.msra.mxu1 %v5211_v62 }
 0x132   :  { %v5185_v32 = vpack.c.bf16 %v2839_v14, %v2717_v13  ;;  %5184 = vmatpush1.bf16.msra.mxu0 %v5183_v54  ;;  %v5213_v26 = vpack.c.bf16 %v1328_v63, %v1157_v38  ;;  %v8460_v14 = vsel %vm408_vm3, %v7964_v17, %v389_v7  ;;  %v10805_v57 = vrot.slane %v10804_v24, %v5616_v10  ;;  %v10806_v13 = vld [vmem:[#allocation47_spill] sm:$0xff]  ;;  %v10809_v63 = vld [vmem:[#allocation41_spill] sm:$0xff] }
 0x133   :  { %v1621_v29 = vmul.f32 %v10802_v19, %v8374_v59  ;;  %v2716_v2 = vmul.f32 %v10803_v30, %v8415_v16  ;;  %v10807_v53 = vrot.slane %v10806_v13, %v5616_v10  ;;  %v8470_v19 = vpop.permute.xlu1 %856  ;;  %v5215_v38 = vpack.c.bf16 %v1327_v42, %v1156_v48  ;;  %v855_v6 = vpop.permute.xlu0 %854  ;;  %v10813_v48 = vld [vmem:[#allocation105_spill] sm:$0xff] }
 0x134   :  { %v2961_v51 = vmul.f32 %v10805_v57, %v8430_v27  ;;  %5186 = vmatprep.subr.bf16.mxu0 %v5185_v32  ;;  %10808 = vst [vmem:[#allocation131_spill] sm:$0xff] %v8470_v19  ;;  %v10810_v17 = vrot.slane %v10809_v63, %v5620_v12  ;;  %v10811_v30 = vrot.slane %v10806_v13, %v5693_v35 }
 0x135   :  { %v3083_v58 = vmul.f32 %v10807_v53, %v8438_v46  ;;  %v5187_v54 = vpack.c.bf16 %v2838_v1, %v2716_v2  ;;  %5214 = vmatprep.subr.bf16.mxu1 %v5213_v26  ;;  %v10812_v62 = vrot.slane %v10732_v21, %v5618_v11  ;;  %v8487_v42 = vsel %vm872_vm5, %v855_v6, %v8470_v19  ;;  %v10815_v26 = vld [vmem:[#allocation13_spill] sm:$0xff]  ;;  %v10818_v19 = vld [vmem:[#allocation32_spill] sm:$0xff] }
 0x136   :  { %v1499_v7 = vmul.f32 %v10810_v17, %v8254_v50  ;;  %v3082_v57 = vmul.f32 %v10811_v30, %v8443_v41  ;;  %v8492_v50 = vsel %vm872_vm5, %v10813_v48, %v855_v6  ;;  %v10814_v1 = vmov 0   ;;  %5216 = vmatpush1.bf16.msra.mxu1 %v5215_v38 }
 0x137   :  { %v1620_v32 = vmul.f32 %v10812_v62, %v8415_v16  ;;  %v5189_v2 = vpack.c.bf16 %v3083_v58, %v2961_v51  ;;  %5471 = vset.pattern.permute.xlu1 %v10814_v1  ;;  %v10816_v53 = vrot.slane %v10815_v26, %v5620_v12  ;;  %v10817_v21 = vrot.slane %v10804_v24, %v5693_v35  ;;  %v10820_v58 = vld [vmem:[#allocation48_spill] sm:$0xff] }
 0x138   :  { %5188 = vmatpush1.bf16.msra.mxu0 %v5187_v54  ;;  %v5217_v62 = vpack.c.bf16 %v1621_v29, %v1499_v7  ;;  %v3155_v13 = vrot.slane %v10818_v19, %v5612_v8  ;;  %v10819_v6 = vrot.slane %v10809_v63, %v5618_v11  ;;  %v10821_v48 = vrot.slane %v10820_v58, %v5616_v10 }
 0x139   :  { %v1865_v17 = vmul.f32 %v10816_v53, %v8430_v27  ;;  %v2960_v30 = vmul.f32 %v10817_v21, %v8460_v14  ;;  %5190 = vmatprep.subr.bf16.mxu0 %v5189_v2  ;;  %v8513_v53 = vpop.permute.xlu1 %1027  ;;  %v10823_v7 = vrot.slane %v10746_v44, %v5620_v12  ;;  %v10825_v38 = vrot.slane %v10741_v43, %v5693_v35 }
 0x13a   :  { %v1498_v51 = vmul.f32 %v10819_v6, %v8273_v52  ;;  %v3327_v1 = vmul.f32 %v10821_v48, %v8487_v42  ;;  %10822 = vst [vmem:[#allocation11_spill] sm:$0xff] %v8513_v53  ;;  %v10824_v52 = vrot.slane %v10820_v58, %v5693_v35  ;;  %5218 = vmatprep.subr.bf16.mxu1 %v5217_v62  ;;  %v1026_v6 = vpop.permute.xlu0 %1025 }
 0x13b   :  { %v1743_v54 = vmul.f32 %v10823_v7, %v8357_v28  ;;  %v5191_v21 = vpack.c.bf16 %v3082_v57, %v2960_v30  ;;  %v8529_v2 = vmul.f32 %v10825_v38, %v10772_v61  ;;  %v10827_v29 = vrot.slane %v10815_v26, %v5618_v11  ;;  %v10828_v57 = vld [vmem:[#allocation124_spill] sm:$0xff]  ;;  %v10836_v38 = vld [vmem:[#allocation118_spill] sm:$0xff] }
 0x13c   :  { %v3326_v63 = vmul.f32 %v10824_v52, %v8492_v50  ;;  %v5219_v48 = vpack.c.bf16 %v1620_v32, %v1498_v51  ;;  %v5193_v30 = vpack.c.bf16 %v3327_v1, %v10828_v57  ;;  %v10830_v62 = vrot.slane %v10755_v25, %v5620_v12 }
 0x13d   :  { %10826 = vst [vmem:[#allocation56_spill] sm:$0xff] %v8529_v2  ;;  %v1864_v7 = vmul.f32 %v10827_v29, %v8460_v14  ;;  %5192 = vmatpush1.bf16.msra.mxu0 %v5191_v21  ;;  %v5221_v43 = vpack.c.bf16 %v1865_v17, %v1743_v54  ;;  %v8545_v51 = vmul.f32 %v3155_v13, %v10772_v61  ;;  %v8556_v21 = vpop.permute.xlu1 %1198  ;;  %v4157_v61 = vld [vmem:[%s10074_s3 + $0x8] sm:$0xff] }
 0x13e   :  { %v1987_v52 = vmul.f32 %v10830_v62, %v8438_v46  ;;  %v10832_v26 = vrot.slane %v10746_v44, %v5618_v11  ;;  %v8554_v29 = vsel %vm1043_vm6, %v1026_v6, %v8513_v53  ;;  %5220 = vmatpush1.bf16.msra.mxu1 %v5219_v48  ;;  %5194 = vmatprep.subr.bf16.mxu0 %v5193_v30  ;;  %v10837_v62 = vld [vmem:[#allocation52_spill] sm:$0xff]  ;;  %v1197_v30 = vpop.permute.xlu0 %1196 }
 0x13f   :  { %10831 = vst [vmem:[#allocation58_spill] sm:$0xff] %v8545_v51  ;;  %10833 = vst [vmem:[#allocation127_spill] sm:$0xff] %v8556_v21  ;;  %v10835_v44 = vrot.slane %v10755_v25, %v5618_v11  ;;  %v5195_v57 = vpack.c.bf16 %v3326_v63, %v10836_v38  ;;  %v8571_v48 = vsel %vm1043_vm6, %v10837_v62, %v1026_v6  ;;  %5222 = vmatprep.subr.bf16.mxu1 %v5221_v43  ;;  %v10838_v25 = vld [vmem:[#allocation53_spill] sm:$0xff] }
 0x140   :  { %v1742_v1 = vmul.f32 %v10832_v26, %v8385_v56  ;;  %v8578_v32 = vsel %vm1214_vm7, %v1197_v30, %v8556_v21  ;;  %v8583_v63 = vsel %vm1214_vm7, %v10838_v25, %v1197_v30  ;;  %4165 = vperm.xlu1 %5471, %v4157_v61   ;;  %v10840_v43 = vrot.slane %v10541_v0, %v5620_v12  ;;  %v10842_v26 = vld [vmem:[#allocation31_spill] sm:$0xff]  ;;  %v10843_v30 = vld [vmem:[#allocation50_spill] sm:$0xff] }
 0x141   :  { %v1986_v13 = vmul.f32 %v10835_v44, %v8443_v41  ;;  %v10839_v44 = vld [vmem:[#allocation116_spill] sm:$0xff]  ;;  %5196 = vmatpush1.bf16.msra.mxu0 %v5195_v57  ;;  %v10844_v25 = vrot.slane %v10843_v30, %v5693_v35  ;;  %v10845_v61 = vrot.slane %v10843_v30, %v5616_v10  ;;  %v10846_v57 = vld [vmem:[#allocation54_spill] sm:$0xff]  ;;  %v8612_v54 = vpop.permute.xlu1 %1369  ;;  %v10853_v24 = vrot.slane %v10770_v60, %v5620_v12 }
 0x142   :  { %v5223_v58 = vpack.c.bf16 %v1864_v7, %v1742_v1  ;;  %v2353_v38 = vmul.f32 %v10840_v43, %v8554_v29  ;;  %v10841_v7 = vld [vmem:[#allocation129_spill] sm:$0xff]  ;;  %10849 = vst [vmem:[#allocation142_spill] sm:$0xff] %v8612_v54  ;;  %v10852_v30 = vld [vmem:[#allocation108_spill] sm:$0xff]  ;;  %v1368_v21 = vpop.permute.xlu0 %1367 }
 0x143   :  { %v5225_v1 = vpack.c.bf16 %v10841_v7, %v1987_v52  ;;  %v3448_v6 = vmul.f32 %v10844_v25, %v8571_v48  ;;  %v3449_v2 = vmul.f32 %v10845_v61, %v8554_v29  ;;  %v10847_v52 = vrot.slane %v10846_v57, %v5693_v35  ;;  %v10850_v25 = vld [vmem:[#allocation94_spill] sm:$0xff] }
 0x144   :  { %v10848_v7 = vrot.slane %v10846_v57, %v5616_v10  ;;  %5224 = vmatpush1.bf16.msra.mxu1 %v5223_v58  ;;  %v10851_v51 = vrot.slane %v10850_v25, %v5612_v8  ;;  %v5227_v61 = vpack.c.bf16 %v10852_v30, %v1986_v13  ;;  %v10854_v58 = vrot.slane %v10541_v0, %v5618_v11 }
 0x145   :  { %v3570_v43 = vmul.f32 %v10847_v52, %v8583_v63  ;;  %v2231_v52 = vmul.f32 %v10853_v24, %v8487_v42  ;;  %5226 = vmatprep.subr.bf16.mxu1 %v5225_v1  ;;  %v10855_v24 = vrot.slane %v10783_v45, %v5620_v12  ;;  %v8641_v1 = vsel %vm1385_vm8, %v8228_v3, %v1368_v21  ;;  %v8655_v3 = vpop.permute.xlu1 %51 }
 0x146   :  { %v3571_v62 = vmul.f32 %v10848_v7, %v8578_v32  ;;  %v352_v17 = vmul.f32 %v10851_v51, %v8385_v56  ;;  %v2352_v57 = vmul.f32 %v10854_v58, %v8571_v48  ;;  %v8632_v56 = vsel %vm1385_vm8, %v1368_v21, %v8612_v54 }
 0x147   :  { %v5199_v53 = vpack.c.bf16 %v3570_v43, %v3448_v6  ;;  %v2475_v13 = vmul.f32 %v10855_v24, %v8578_v32  ;;  %v10856_v0 = vrot.slane %v10779_v18, %v5620_v12  ;;  %v5229_v30 = vpack.c.bf16 %v2353_v38, %v2231_v52  ;;  %v10860_v38 = vld [vmem:[#allocation87_spill] sm:$0xff] }
 0x148   :  { %v5197_v51 = vpack.c.bf16 %v3571_v62, %v3449_v2  ;;  %v10857_v2 = vrot.slane %v10850_v25, %v5614_v9  ;;  %v10858_v43 = vrot.slane %v10770_v60, %v5618_v11  ;;  %5228 = vmatpush1.bf16.msra.mxu1 %v5227_v61  ;;  %v10859_v21 = vrot.slane %v10688_v5, %v5616_v10  ;;  %v50_v61 = vpop.permute.xlu0 %49 }
 0x149   :  { %v2597_v6 = vmul.f32 %v10856_v0, %v8632_v56  ;;  %v10861_v52 = vrot.slane %v10860_v38, %v5612_v8  ;;  %5230 = vmatprep.subr.bf16.mxu1 %v5229_v30  ;;  %v10864_v7 = vrot.slane %v10779_v18, %v5618_v11  ;;  %v10869_v18 = vrot.slane %v10760_v49, %v5612_v8 }
 0x14a   :  { %v353_v62 = vmul.f32 %v10857_v2, %v8357_v28  ;;  %v2230_v58 = vmul.f32 %v10858_v43, %v8492_v50  ;;  %5198 = vmatprep.subr.bf16.mxu0 %v5197_v51  ;;  %v3693_v24 = vmul.f32 %v10859_v21, %v8632_v56  ;;  %v10862_v28 = vrot.slane %v10760_v49, %v5614_v9 }
 0x14b   :  { %v181_v0 = vmul.f32 %v10861_v52, %v8415_v16  ;;  %5200 = vmatpush1.bf16.msra.mxu0 %v5199_v53  ;;  %v5233_v51 = vpack.c.bf16 %v2597_v6, %v2475_v13  ;;  %v10863_v2 = vrot.slane %v10860_v38, %v5614_v9  ;;  %v2596_v16 = vmul.f32 %v10864_v7, %v8641_v1  ;;  %v10866_v53 = vld [vmem:[#allocation98_spill] sm:$0xff]  ;;  %v10939_v52 = vld [vmem:[#allocation99_spill] sm:$0xff] }
 0x14c   :  { %v695_v60 = vmul.f32 %v10862_v28, %v8438_v46  ;;  %v5231_v21 = vpack.c.bf16 %v2352_v57, %v2230_v58  ;;  %4381 = vmatprep.subr.mxu0 %v3693_v24  ;;  %v10867_v13 = vrot.slane %v10866_v53, %v5614_v9  ;;  %v694_v7 = vmul.f32 %v10869_v18, %v8443_v41  ;;  %v8702_v24 = vpop.permute.xlu1 %223 }
 0x14d   :  { %v182_v43 = vmul.f32 %v10863_v2, %v8374_v59  ;;  %v5255_v46 = vpack.c.bf16 %v352_v17, %v181_v0  ;;  %v10868_v59 = vrot.slane %v10688_v5, %v5693_v35  ;;  %v10870_v17 = vrot.slane %v10783_v45, %v5618_v11  ;;  %v222_v45 = vpop.permute.xlu0 %221 }
 0x14e   :  { %v524_v6 = vmul.f32 %v10867_v13, %v8430_v27  ;;  %v8700_v27 = vsel %vm67_vm1, %v8275_v47, %v50_v61  ;;  %5232 = vmatpush1.bf16.msra.mxu1 %v5231_v21  ;;  %v10871_v28 = vrot.slane %v10785_v40, %v5614_v9  ;;  %v8711_v41 = vsel %vm67_vm1, %v50_v61, %v8655_v3 }
 0x14f   :  { %v3692_v57 = vmul.f32 %v10868_v59, %v8641_v1  ;;  %v2474_v58 = vmul.f32 %v10870_v17, %v8583_v63  ;;  %v5253_v0 = vpack.c.bf16 %v353_v62, %v182_v43  ;;  %5234 = vmatprep.subr.bf16.mxu1 %v5233_v51  ;;  %v8716_v21 = vsel %vm237_vm2, %v222_v45, %v8702_v24 }
 0x150   :  { %v988_v2 = vmul.f32 %v10871_v28, %v8487_v42  ;;  %v5257_v13 = vpack.c.bf16 %v695_v60, %v524_v6  ;;  %v8721_v62 = vsel %vm237_vm2, %v8319_v23, %v222_v45  ;;  %v10872_v42 = vrot.slane %v10866_v53, %v5612_v8  ;;  %v10893_v28 = vld [vmem:[#allocation93_spill] sm:$0xff] }
 0x151   :  { %4382 = vmatpush1.msra.mxu0 %v3692_v57  ;;  %v5235_v47 = vpack.c.bf16 %v2596_v16, %v2474_v58  ;;  %v10873_v60 = vrot.slane %v10785_v40, %v5612_v8  ;;  %v10874_v43 = vrot.slane %v10797_v55, %v5618_v11  ;;  %v3159_v23 = vrot.slane %v10818_v19, %v5614_v9  ;;  %v393_v58 = vpop.permute.xlu0 %392 }
 0x152   :  { %5254 = vmatprep.subr.bf16.mxu0 %v5253_v0  ;;  %4394 = vmatmul.mubr.f32.vlgmr.msra.gmra.mrb[4].mxu0 %v7993_v4  ;;  %v523_v61 = vmul.f32 %v10872_v42, %v8460_v14  ;;  %v10875_v6 = vrot.slane %v10797_v55, %v5620_v12  ;;  %v10876_v14 = vrot.slane %v10789_v36, %v5618_v11  ;;  %v10879_v0 = vld [vmem:[#allocation120_spill] sm:$0xff]  ;;  %v10881_v42 = vld [vmem:[#allocation91_spill] sm:$0xff] }
 0x153   :  { %v987_v51 = vmul.f32 %v10873_v60, %v8492_v50  ;;  %v2718_v16 = vmul.f32 %v10874_v43, %v8700_v27  ;;  %5256 = vmatpush1.bf16.msra.mxu0 %v5255_v46  ;;  %v10877_v50 = vrot.slane %v10789_v36, %v5620_v12  ;;  %5236 = vmatpush1.bf16.msra.mxu1 %v5235_v47  ;;  %v8750_v46 = vpop.permute.xlu1 %394  ;;  %v8769_v60 = vld [vmem:[%s10071_s0 + $0x58] sm:$0xff]  ;;  %v10890_v55 = vld [vmem:[#allocation8_spill] sm:$0xff] }
 0x154   :  { %v2719_v59 = vmul.f32 %v10875_v6, %v8711_v41  ;;  %v2840_v57 = vmul.f32 %v10876_v14, %v8721_v62  ;;  %5258 = vmatprep.subr.bf16.mxu0 %v5257_v13  ;;  %10878 = vst [vmem:[#allocation16_spill] sm:$0xff] %v8750_v46  ;;  %v5259_v17 = vpack.c.bf16 %v694_v7, %v523_v61  ;;  %10882 = vst [vmem:[#allocation59_spill] sm:$0xff] %v8769_v60  ;;  %v10884_v6 = vld [vmem:[#allocation40_spill] sm:$0xff] }
 0x155   :  { %v2841_v18 = vmul.f32 %v10877_v50, %v8716_v21  ;;  %v2069_v45 = vrot.slane %v10615_v20, %v5691_v34  ;;  %5034 = vmatprep.mubr.msk.f32.mxu0 %vm4168_vm0, %v8041_v15  ;;  %v10880_v36 = vrot.slane %v10879_v0, %v5614_v9  ;;  %v5261_v61 = vpack.c.bf16 %v988_v2, %v10881_v42 }
 0x156   :  { %v5239_v47 = vpack.c.bf16 %v2840_v57, %v2718_v16  ;;  %4400 = vmatmul.mubr.f32.gmra.mrb[6].mxu0 %v8150_v37  ;;  %v8772_v43 = vmul.f32 %v8769_v60, %v3159_v23  ;;  %v10887_v50 = vrot.slane %v10839_v44, %v5614_v9  ;;  %v11106_v31 = vrot.slane %v10860_v38, %v5620_v12 }
 0x157   :  { %v1330_v13 = vmul.f32 %v10880_v36, %v8578_v32  ;;  %v5237_v7 = vpack.c.bf16 %v2841_v18, %v2719_v59  ;;  %5260 = vmatpush1.bf16.msra.mxu0 %v5259_v17  ;;  %v10886_v59 = vld [vmem:[#allocation111_spill] sm:$0xff]  ;;  %v8785_v23 = vpop.permute.xlu1 %565  ;;  %v10889_v36 = vrot.slane %v10879_v0, %v5612_v8  ;;  %5037 = vmatprep.mubr.msk.f32.mxu0 %vm4168_vm0, %v10893_v28 }
 0x158   :  { %10883 = vst [vmem:[#allocation20_spill] sm:$0xff] %v8772_v43  ;;  %v5263_v57 = vpack.c.bf16 %v987_v51, %v10886_v59  ;;  %v1159_v18 = vmul.f32 %v10887_v50, %v8554_v29  ;;  %5262 = vmatprep.subr.bf16.mxu0 %v5261_v61  ;;  %10888 = vst [vmem:[#allocation51_spill] sm:$0xff] %v8785_v23  ;;  %v10891_v51 = vrot.slane %v10890_v55, %v5614_v9  ;;  %v564_v61 = vpop.permute.xlu0 %563  ;;  %v10900_v17 = vld [vmem:[#allocation47_spill] sm:$0xff] }
 0x159   :  { %5238 = vmatprep.subr.bf16.mxu1 %v5237_v7  ;;  %v1329_v42 = vmul.f32 %v10889_v36, %v8583_v63  ;;  %v8800_v29 = vsel %vm408_vm3, %v393_v58, %v8750_v46  ;;  %v8805_v7 = vsel %vm408_vm3, %v8363_v39, %v393_v58  ;;  %v8810_v63 = vsel %vm579_vm4, %v564_v61, %v8785_v23 }
 0x15a   :  { %v1623_v59 = vmul.f32 %v10891_v51, %v8711_v41  ;;  %5240 = vmatpush1.bf16.msra.mxu1 %v5239_v47  ;;  %v8815_v50 = vsel %vm579_vm4, %v8421_v22, %v564_v61  ;;  %v5265_v36 = vpack.c.bf16 %v1330_v13, %v1159_v18  ;;  %v8818_v51 = vmul.f32 %v8769_v60, %v2069_v45  ;;  %v10895_v47 = vld [vmem:[#allocation128_spill] sm:$0xff]  ;;  %v10897_v13 = vld [vmem:[#allocation46_spill] sm:$0xff] }
 0x15b   :  { %v10894_v39 = vrot.slane %v10839_v44, %v5612_v8  ;;  %v10896_v14 = vrot.slane %v10895_v47, %v5614_v9  ;;  %5264 = vmatpush1.bf16.msra.mxu0 %v5263_v57  ;;  %v10898_v18 = vrot.slane %v10897_v13, %v5618_v11  ;;  %v10902_v57 = vrot.slane %v10900_v17, %v5620_v12  ;;  %v8850_v45 = vpop.permute.xlu1 %860 }
 0x15c   :  { %10892 = vst [vmem:[#allocation55_spill] sm:$0xff] %v8818_v51  ;;  %5266 = vmatprep.subr.bf16.mxu0 %v5265_v36  ;;  %10903 = vst [vmem:[#allocation57_spill] sm:$0xff] %v8850_v45  ;;  %v10907_v36 = vld [vmem:[#allocation131_spill] sm:$0xff] }
 0x15d   :  { %v1158_v58 = vmul.f32 %v10894_v39, %v8571_v48  ;;  %v1501_v32 = vmul.f32 %v10896_v14, %v8632_v56  ;;  %v2962_v61 = vmul.f32 %v10898_v18, %v8805_v7  ;;  %v10899_v48 = vrot.slane %v10897_v13, %v5620_v12 }
 0x15e   :  { %v10901_v56 = vrot.slane %v10900_v17, %v5618_v11  ;;  %v3085_v22 = vmul.f32 %v10902_v57, %v8810_v63  ;;  %v10904_v18 = vrot.slane %v10890_v55, %v5612_v8  ;;  %v10908_v57 = vrot.slane %v10895_v47, %v5612_v8 }
 0x15f   :  { %v2963_v39 = vmul.f32 %v10899_v48, %v8800_v29  ;;  %v5267_v2 = vpack.c.bf16 %v1329_v42, %v1158_v58  ;;  %v10905_v48 = vld [vmem:[#allocation15_spill] sm:$0xff]  ;;  %v5269_v60 = vpack.c.bf16 %v1623_v59, %v1501_v32 }
 0x160   :  { %v3084_v14 = vmul.f32 %v10901_v56, %v8815_v50  ;;  %v1622_v13 = vmul.f32 %v10904_v18, %v8700_v27  ;;  %v10906_v30 = vrot.slane %v10905_v48, %v5614_v9  ;;  %v859_v56 = vpop.permute.xlu0 %858  ;;  %v1500_v18 = vmul.f32 %v10908_v57, %v8641_v1  ;;  %v8890_v57 = vpop.permute.xlu1 %1031 }
 0x161   :  { %v8863_v17 = vsel %vm872_vm5, %v859_v56, %v8850_v45  ;;  %v8868_v42 = vsel %vm872_vm5, %v10907_v36, %v859_v56  ;;  %v5241_v58 = vpack.c.bf16 %v3085_v22, %v2963_v39  ;;  %5268 = vmatpush1.bf16.msra.mxu0 %v5267_v2  ;;  %v10912_v56 = vld [vmem:[#allocation48_spill] sm:$0xff]  ;;  %10915 = vst [vmem:[#allocation27_spill] sm:$0xff] %v8890_v57  ;;  %v10920_v45 = vld [vmem:[#allocation25_spill] sm:$0xff] }
 0x162   :  { %v1867_v54 = vmul.f32 %v10906_v30, %v8800_v29  ;;  %v5243_v16 = vpack.c.bf16 %v3084_v14, %v2962_v61  ;;  %v10909_v30 = vld [vmem:[#allocation9_spill] sm:$0xff]  ;;  %v10911_v61 = vld [vmem:[#allocation43_spill] sm:$0xff]  ;;  %v10913_v22 = vrot.slane %v10912_v56, %v5618_v11  ;;  %v10914_v1 = vrot.slane %v10912_v56, %v5620_v12  ;;  %5270 = vmatprep.subr.bf16.mxu0 %v5269_v60 }
 0x163   :  { %v10910_v32 = vrot.slane %v10909_v30, %v5614_v9  ;;  %5242 = vmatprep.subr.bf16.mxu1 %v5241_v58  ;;  %v5271_v14 = vpack.c.bf16 %v1622_v13, %v1500_v18  ;;  %v10917_v19 = vrot.slane %v10905_v48, %v5612_v8  ;;  %v10918_v58 = vld [vmem:[#allocation19_spill] sm:$0xff]  ;;  %v10921_v18 = vld [vmem:[#allocation70_spill] sm:$0xff] }
 0x164   :  { %v3328_v39 = vmul.f32 %v10913_v22, %v8868_v42  ;;  %v3329_v36 = vmul.f32 %v10914_v1, %v8863_v17  ;;  %5244 = vmatpush1.bf16.msra.mxu1 %v5243_v16  ;;  %v1030_v22 = vpop.permute.xlu0 %1029  ;;  %v10919_v60 = vrot.slane %v10918_v58, %v5614_v9 }
 0x165   :  { %v1745_v59 = vmul.f32 %v10910_v32, %v8716_v21  ;;  %v1866_v51 = vmul.f32 %v10917_v19, %v8805_v7  ;;  %v8908_v13 = vsel %vm1043_vm6, %v1030_v22, %v8890_v57  ;;  %5272 = vmatpush1.bf16.msra.mxu0 %v5271_v14  ;;  %v10929_v14 = vld [vmem:[#allocation10_spill] sm:$0xff] }
 0x166   :  { %v1989_v1 = vmul.f32 %v10919_v60, %v8810_v63  ;;  %v5247_v47 = vpack.c.bf16 %v3328_v39, %v10920_v45  ;;  %v5245_v19 = vpack.c.bf16 %v3329_v36, %v10921_v18  ;;  %v8921_v39 = vpop.permute.xlu1 %1202  ;;  %v10924_v36 = vld [vmem:[#allocation7_spill] sm:$0xff]  ;;  %v10925_v60 = vrot.slane %v10918_v58, %v5612_v8  ;;  %v10930_v32 = vld [vmem:[#allocation22_spill] sm:$0xff] }
 0x167   :  { %v5273_v43 = vpack.c.bf16 %v1867_v54, %v1745_v59  ;;  %v10922_v54 = vrot.slane %v10909_v30, %v5612_v8  ;;  %10923 = vst [vmem:[#allocation66_spill] sm:$0xff] %v8921_v39  ;;  %v10926_v45 = vld [vmem:[#allocation11_spill] sm:$0xff] }
 0x168   :  { %5246 = vmatprep.subr.bf16.mxu1 %v5245_v19  ;;  %v1988_v56 = vmul.f32 %v10925_v60, %v8815_v50  ;;  %v10927_v19 = vrot.slane %v10842_v26, %v5614_v9 }
 0x169   :  { %v1744_v16 = vmul.f32 %v10922_v54, %v8721_v62  ;;  %5274 = vmatprep.subr.bf16.mxu0 %v5273_v43  ;;  %v8936_v43 = vsel %vm1043_vm6, %v10926_v45, %v1030_v22  ;;  %5248 = vmatpush1.bf16.msra.mxu1 %v5247_v47  ;;  %v1201_v54 = vpop.permute.xlu0 %1200  ;;  %v5277_v22 = vpack.c.bf16 %v10929_v14, %v1989_v1  ;;  %v10933_v1 = vld [vmem:[#allocation50_spill] sm:$0xff] }
 0x16a   :  { %v2355_v18 = vmul.f32 %v10927_v19, %v8908_v13  ;;  %v10931_v47 = vrot.slane %v10930_v32, %v5614_v9  ;;  %v10934_v14 = vrot.slane %v10933_v1, %v5618_v11  ;;  %v10935_v30 = vrot.slane %v10933_v1, %v5620_v12  ;;  %v8981_v55 = vpop.permute.xlu1 %1373 }
 0x16b   :  { %v5275_v59 = vpack.c.bf16 %v1866_v51, %v1744_v16  ;;  %v8945_v51 = vsel %vm1214_vm7, %v1201_v54, %v8921_v39  ;;  %v10928_v16 = vld [vmem:[#allocation127_spill] sm:$0xff]  ;;  %v10940_v1 = vrot.slane %v10842_v26, %v5612_v8 }
 0x16c   :  { %v8950_v60 = vsel %vm1214_vm7, %v10928_v16, %v1201_v54  ;;  %v2233_v19 = vmul.f32 %v10931_v47, %v8863_v17  ;;  %v10932_v54 = vld [vmem:[#allocation5_spill] sm:$0xff]  ;;  %v3450_v45 = vmul.f32 %v10934_v14, %v8936_v43  ;;  %v3451_v47 = vmul.f32 %v10935_v30, %v8908_v13 }
 0x16d   :  { %5276 = vmatpush1.bf16.msra.mxu0 %v5275_v59  ;;  %v10936_v59 = vld [vmem:[#allocation54_spill] sm:$0xff]  ;;  %v5279_v14 = vpack.c.bf16 %v10939_v52, %v1988_v56  ;;  %v2354_v30 = vmul.f32 %v10940_v1, %v8936_v43  ;;  %v1372_v23 = vpop.permute.xlu0 %1371 }
 0x16e   :  { %v10937_v39 = vrot.slane %v10936_v59, %v5618_v11  ;;  %v10938_v57 = vrot.slane %v10936_v59, %v5620_v12  ;;  %5278 = vmatprep.subr.bf16.mxu0 %v5277_v22  ;;  %v5281_v46 = vpack.c.bf16 %v2355_v18, %v2233_v19  ;;  %v10941_v22 = vld [vmem:[#allocation142_spill] sm:$0xff]  ;;  %v10942_v59 = vrot.slane %v10930_v32, %v5612_v8 }
 0x16f   :  { %v8998_v52 = vsel %vm1385_vm8, %v10941_v22, %v1372_v23  ;;  %v10944_v19 = vrot.slane %v10911_v61, %v5614_v9  ;;  %v9018_v22 = vpop.permute.xlu1 %55 }
 0x170   :  { %v3572_v28 = vmul.f32 %v10937_v39, %v8950_v60  ;;  %v3573_v16 = vmul.f32 %v10938_v57, %v8945_v51  ;;  %v8993_v57 = vsel %vm1385_vm8, %v1372_v23, %v8981_v55  ;;  %v2232_v18 = vmul.f32 %v10942_v59, %v8868_v42 }
 0x171   :  { %v2599_v1 = vmul.f32 %v10944_v19, %v8993_v57  ;;  %5280 = vmatpush1.bf16.msra.mxu0 %v5279_v14  ;;  %v10946_v59 = vrot.slane %v10688_v5, %v5620_v12  ;;  %v10947_v19 = vrot.slane %v10850_v25, %v5689_v33 }
 0x172   :  { %v5251_v44 = vpack.c.bf16 %v3572_v28, %v3450_v45  ;;  %v5249_v56 = vpack.c.bf16 %v3573_v16, %v3451_v47  ;;  %v10943_v28 = vrot.slane %v10884_v6, %v5614_v9  ;;  %v10945_v16 = vrot.slane %v10850_v25, %v5691_v34  ;;  %5282 = vmatprep.subr.bf16.mxu0 %v5281_v46 }
 0x173   :  { %v354_v39 = vmul.f32 %v10947_v19, %v8721_v62  ;;  %v5283_v23 = vpack.c.bf16 %v2354_v30, %v2232_v18  ;;  %v10953_v19 = vrot.slane %v10688_v5, %v5618_v11  ;;  %v10955_v5 = vrot.slane %v10866_v53, %v5691_v34  ;;  %v11052_v11 = vld [vmem:[#allocation81_spill] sm:$0xff] }
 0x174   :  { %v2477_v45 = vmul.f32 %v10943_v28, %v8945_v51  ;;  %v355_v47 = vmul.f32 %v10945_v16, %v8716_v21  ;;  %5250 = vmatprep.subr.bf16.mxu1 %v5249_v56  ;;  %v3695_v28 = vmul.f32 %v10946_v59, %v8993_v57  ;;  %v10948_v21 = vrot.slane %v10911_v61, %v5612_v8  ;;  %v54_v56 = vpop.permute.xlu0 %53 }
 0x175   :  { %5252 = vmatpush1.bf16.msra.mxu1 %v5251_v44  ;;  %v10949_v59 = vrot.slane %v10860_v38, %v5691_v34  ;;  %v10950_v44 = vrot.slane %v10860_v38, %v5689_v33  ;;  %5284 = vmatpush1.bf16.msra.mxu0 %v5283_v23 }
 0x176   :  { %v2598_v46 = vmul.f32 %v10948_v21, %v8998_v52  ;;  %v5285_v16 = vpack.c.bf16 %v2599_v1, %v2477_v45  ;;  %4458 = vmatprep.subr.mxu1 %v3695_v28  ;;  %v10951_v45 = vrot.slane %v10760_v49, %v5691_v34  ;;  %v10952_v1 = vrot.slane %v10884_v6, %v5612_v8 }
 0x177   :  { %v184_v2 = vmul.f32 %v10949_v59, %v8711_v41  ;;  %v183_v18 = vmul.f32 %v10950_v44, %v8700_v27  ;;  %v3694_v21 = vmul.f32 %v10953_v19, %v8998_v52  ;;  %v9060_v59 = vpop.permute.xlu1 %227  ;;  %v2073_v44 = vrot.slane %v10615_v20, %v5693_v35 }
 0x178   :  { %v697_v41 = vmul.f32 %v10951_v45, %v8810_v63  ;;  %v2476_v28 = vmul.f32 %v10952_v1, %v8950_v60  ;;  %5286 = vmatprep.subr.bf16.mxu0 %v5285_v16  ;;  %v10954_v63 = vld [vmem:[#allocation18_spill] sm:$0xff]  ;;  %v526_v19 = vmul.f32 %v10955_v5, %v8800_v29  ;;  %v10956_v16 = vrot.slane %v10760_v49, %v5689_v33 }
 0x179   :  { %v5305_v27 = vpack.c.bf16 %v355_v47, %v184_v2  ;;  %v5307_v1 = vpack.c.bf16 %v354_v39, %v183_v18  ;;  %v9075_v2 = vsel %vm67_vm1, %v8655_v3, %v54_v56  ;;  %4459 = vmatpush1.msra.mxu1 %v3694_v21  ;;  %v226_v47 = vpop.permute.xlu0 %225  ;;  %v10957_v3 = vrot.slane %v10866_v53, %v5689_v33 }
 0x17a   :  { %v5287_v23 = vpack.c.bf16 %v2598_v46, %v2476_v28  ;;  %v696_v14 = vmul.f32 %v10956_v16, %v8815_v50  ;;  %v9084_v39 = vsel %vm237_vm2, %v226_v47, %v9060_v59  ;;  %v9089_v29 = vsel %vm237_vm2, %v8702_v24, %v226_v47  ;;  %4471 = vmatmul.mubr.f32.vlgmr.msra.gmra.mrb[4].mxu1 %v7993_v4  ;;  %v9126_v47 = vld [vmem:[%s10071_s0 + $0x60] sm:$0xff] }
 0x17b   :  { %5306 = vmatprep.subr.bf16.mxu1 %v5305_v27  ;;  %v525_v46 = vmul.f32 %v10957_v3, %v8805_v7  ;;  %v10958_v50 = vrot.slane %v10785_v40, %v5691_v34  ;;  %v9103_v28 = vsel %vm67_vm1, %v54_v56, %v9018_v22  ;;  %v5309_v24 = vpack.c.bf16 %v697_v41, %v526_v19  ;;  %v9121_v19 = vpop.permute.xlu1 %398 }
 0x17c   :  { %5288 = vmatpush1.bf16.msra.mxu0 %v5287_v23  ;;  %v10959_v4 = vrot.slane %v10932_v54, %v5612_v8  ;;  %v10960_v7 = vrot.slane %v10932_v54, %v5614_v9  ;;  %v10962_v56 = vrot.slane %v10924_v36, %v5614_v9  ;;  %5308 = vmatpush1.bf16.msra.mxu1 %v5307_v1 }
 0x17d   :  { %v990_v18 = vmul.f32 %v10958_v50, %v8863_v17  ;;  %v10961_v17 = vrot.slane %v10924_v36, %v5612_v8  ;;  %10963 = vst [vmem:[#allocation36_spill] sm:$0xff] %v9121_v19  ;;  %5310 = vmatprep.subr.bf16.mxu1 %v5309_v24  ;;  %v397_v23 = vpop.permute.xlu0 %396  ;;  %10964 = vst [vmem:[#allocation4_spill] sm:$0xff] %v9126_v47  ;;  %v9129_v16 = vmul.f32 %v9126_v47, %v2073_v44  ;;  %v10968_v50 = vld [vmem:[#allocation103_spill] sm:$0xff] }
 0x17e   :  { %v2720_v21 = vmul.f32 %v10959_v4, %v9075_v2  ;;  %v2721_v27 = vmul.f32 %v10960_v7, %v9103_v28  ;;  %v2843_v41 = vmul.f32 %v10962_v56, %v9084_v39  ;;  %v5311_v4 = vpack.c.bf16 %v696_v14, %v525_v46  ;;  %5036 = vmatprep.mubr.msk.f32.mxu1 %vm4168_vm0, %v8041_v15  ;;  %v10969_v46 = vld [vmem:[#allocation14_spill] sm:$0xff] }
 0x17f   :  { %v2842_v5 = vmul.f32 %v10961_v17, %v9089_v29  ;;  %10965 = vst [vmem:[#allocation80_spill] sm:$0xff] %v9129_v16  ;;  %v10966_v24 = vrot.slane %v10785_v40, %v5689_v33  ;;  %v10967_v44 = vrot.slane %v10879_v0, %v5691_v34  ;;  %v5313_v30 = vpack.c.bf16 %v990_v18, %v10968_v50  ;;  %v10973_v50 = vld [vmem:[#allocation16_spill] sm:$0xff]  ;;  %v10992_v16 = vld [vmem:[#allocation34_spill] sm:$0xff] }
 0x180   :  { %v5289_v56 = vpack.c.bf16 %v2843_v41, %v2721_v27  ;;  %4477 = vmatmul.mubr.f32.gmra.mrb[6].mxu1 %v8150_v37  ;;  %v10972_v37 = vrot.slane %v10879_v0, %v5689_v33 }
 0x181   :  { %v989_v7 = vmul.f32 %v10966_v24, %v8868_v42  ;;  %v5291_v17 = vpack.c.bf16 %v2842_v5, %v2720_v21  ;;  %v1332_v3 = vmul.f32 %v10967_v44, %v8945_v51  ;;  %5312 = vmatpush1.bf16.msra.mxu1 %v5311_v4  ;;  %v9153_v42 = vpop.permute.xlu1 %569  ;;  %v10970_v21 = vld [vmem:[#allocation116_spill] sm:$0xff]  ;;  %v9172_v4 = vsel %vm408_vm3, %v10973_v50, %v397_v23  ;;  %v568_v24 = vpop.permute.xlu0 %567  ;;  %v10977_v50 = vld [vmem:[#allocation93_spill] sm:$0xff] }
 0x182   :  { %5290 = vmatprep.subr.bf16.mxu0 %v5289_v56  ;;  %v10971_v27 = vrot.slane %v10970_v21, %v5691_v34  ;;  %v1331_v41 = vmul.f32 %v10972_v37, %v8950_v60  ;;  %5314 = vmatprep.subr.bf16.mxu1 %v5313_v30  ;;  %v10974_v56 = vld [vmem:[#allocation86_spill] sm:$0xff]  ;;  %v9178_v51 = vsel %vm579_vm4, %v568_v24, %v9153_v42  ;;  %v10976_v60 = vld [vmem:[#allocation29_spill] sm:$0xff] }
 0x183   :  { %5292 = vmatpush1.bf16.msra.mxu0 %v5291_v17  ;;  %v5315_v44 = vpack.c.bf16 %v989_v7, %v10974_v56  ;;  %5039 = vmatprep.mubr.msk.f32.mxu1 %vm4168_vm0, %v10977_v50  ;;  %v10978_v30 = vrot.slane %v10970_v21, %v5689_v33  ;;  %v10979_v17 = vld [vmem:[#allocation8_spill] sm:$0xff]  ;;  %v10981_v50 = vrot.slane %v10969_v46, %v5612_v8  ;;  %v10993_v21 = vld [vmem:[#allocation23_spill] sm:$0xff] }
 0x184   :  { %v1161_v5 = vmul.f32 %v10971_v27, %v8908_v13  ;;  %v10975_v13 = vld [vmem:[#allocation51_spill] sm:$0xff]  ;;  %v10980_v56 = vrot.slane %v10979_v17, %v5691_v34 }
 0x185   :  { %v9183_v27 = vsel %vm579_vm4, %v10975_v13, %v568_v24  ;;  %v1160_v7 = vmul.f32 %v10978_v30, %v8936_v43  ;;  %v9200_v24 = vsel %vm408_vm3, %v397_v23, %v9121_v19  ;;  %v2964_v37 = vmul.f32 %v10981_v50, %v9172_v4  ;;  %5316 = vmatpush1.bf16.msra.mxu1 %v5315_v44  ;;  %v10986_v50 = vld [vmem:[#allocation128_spill] sm:$0xff]  ;;  %v10989_v44 = vld [vmem:[#allocation57_spill] sm:$0xff] }
 0x186   :  { %v1625_v18 = vmul.f32 %v10980_v56, %v9103_v28  ;;  %v5317_v13 = vpack.c.bf16 %v1332_v3, %v1161_v5  ;;  %v10982_v43 = vrot.slane %v10969_v46, %v5614_v9  ;;  %v10983_v56 = vrot.slane %v10954_v63, %v5612_v8  ;;  %v9218_v5 = vpop.permute.xlu1 %864 }
 0x187   :  { %v10984_v23 = vrot.slane %v10954_v63, %v5614_v9  ;;  %10985 = vst [vmem:[#allocation83_spill] sm:$0xff] %v9218_v5  ;;  %v5319_v1 = vpack.c.bf16 %v1331_v41, %v1160_v7  ;;  %v10987_v45 = vrot.slane %v10986_v50, %v5691_v34  ;;  %v10990_v7 = vrot.slane %v10986_v50, %v5689_v33  ;;  %v11005_v63 = vld [vmem:[#allocation20_spill] sm:$0xff] }
 0x188   :  { %v2965_v30 = vmul.f32 %v10982_v43, %v9200_v24  ;;  %v3086_v14 = vmul.f32 %v10983_v56, %v9183_v27  ;;  %v10988_v43 = vrot.slane %v10979_v17, %v5689_v33  ;;  %5318 = vmatprep.subr.bf16.mxu1 %v5317_v13  ;;  %v863_v56 = vpop.permute.xlu0 %862  ;;  %v11003_v46 = vrot.slane %v10905_v48, %v5689_v33 }
 0x189   :  { %v3087_v3 = vmul.f32 %v10984_v23, %v9178_v51  ;;  %v1503_v15 = vmul.f32 %v10987_v45, %v8993_v57  ;;  %v9233_v41 = vsel %vm872_vm5, %v863_v56, %v9218_v5  ;;  %v9238_v57 = vsel %vm872_vm5, %v10989_v44, %v863_v56  ;;  %5320 = vmatpush1.bf16.msra.mxu1 %v5319_v1  ;;  %v11013_v1 = vld [vmem:[#allocation27_spill] sm:$0xff] }
 0x18a   :  { %v1624_v62 = vmul.f32 %v10988_v43, %v9075_v2  ;;  %v5295_v23 = vpack.c.bf16 %v3086_v14, %v2964_v37  ;;  %v1502_v13 = vmul.f32 %v10990_v7, %v8998_v52  ;;  %v10991_v14 = vrot.slane %v10905_v48, %v5691_v34  ;;  %v9258_v52 = vpop.permute.xlu1 %1035  ;;  %v11004_v7 = vld [vmem:[#allocation58_spill] sm:$0xff] }
 0x18b   :  { %v5293_v45 = vpack.c.bf16 %v3087_v3, %v2965_v30  ;;  %v5321_v43 = vpack.c.bf16 %v1625_v18, %v1503_v15  ;;  %v10994_v56 = vrot.slane %v10993_v21, %v5612_v8  ;;  %v10995_v30 = vrot.slane %v10993_v21, %v5614_v9  ;;  %10996 = vst [vmem:[#allocation6_spill] sm:$0xff] %v9258_v52  ;;  %v10999_v18 = vld [vmem:[#allocation9_spill] sm:$0xff] }
 0x18c   :  { %v1869_v37 = vmul.f32 %v10991_v14, %v9200_v24  ;;  %v11000_v17 = vrot.slane %v10999_v18, %v5691_v34  ;;  %v1868_v15 = vmul.f32 %v11003_v46, %v9172_v4  ;;  %v11007_v46 = vrot.slane %v10999_v18, %v5689_v33 }
 0x18d   :  { %v3330_v44 = vmul.f32 %v10994_v56, %v9238_v57  ;;  %v3331_v3 = vmul.f32 %v10995_v30, %v9233_v41  ;;  %5294 = vmatprep.subr.bf16.mxu0 %v5293_v45  ;;  %5322 = vmatprep.subr.bf16.mxu1 %v5321_v43  ;;  %v1034_v56 = vpop.permute.xlu0 %1033  ;;  %v5323_v45 = vpack.c.bf16 %v1624_v62, %v1502_v13  ;;  %v11014_v62 = vld [vmem:[#allocation66_spill] sm:$0xff] }
 0x18e   :  { %v1747_v50 = vmul.f32 %v11000_v17, %v9084_v39  ;;  %5296 = vmatpush1.bf16.msra.mxu0 %v5295_v23  ;;  %v11006_v17 = vrot.slane %v10918_v58, %v5691_v34  ;;  %v1746_v13 = vmul.f32 %v11007_v46, %v9089_v29  ;;  %v9304_v46 = vsel %vm1043_vm6, %v11013_v1, %v1034_v56 }
 0x18f   :  { %v5299_v14 = vpack.c.bf16 %v3330_v44, %v11004_v7  ;;  %v5297_v19 = vpack.c.bf16 %v3331_v3, %v11005_v63  ;;  %v9291_v63 = vsel %vm1043_vm6, %v1034_v56, %v9258_v52  ;;  %5324 = vmatpush1.bf16.msra.mxu1 %v5323_v45  ;;  %v9293_v44 = vpop.permute.xlu1 %1206  ;;  %v11012_v7 = vrot.slane %v10918_v58, %v5689_v33  ;;  %v11025_v58 = vld [vmem:[#allocation115_spill] sm:$0xff] }
 0x190   :  { %v1991_v23 = vmul.f32 %v11006_v17, %v9178_v51  ;;  %v5325_v43 = vpack.c.bf16 %v1869_v37, %v1747_v50  ;;  %11008 = vst [vmem:[#allocation17_spill] sm:$0xff] %v9291_v63  ;;  %11009 = vst [vmem:[#allocation35_spill] sm:$0xff] %v9293_v44  ;;  %v5327_v45 = vpack.c.bf16 %v1868_v15, %v1746_v13  ;;  %v11019_v13 = vld [vmem:[#allocation32_spill] sm:$0xff] }
 0x191   :  { %5298 = vmatprep.subr.bf16.mxu0 %v5297_v19  ;;  %v1990_v17 = vmul.f32 %v11012_v7, %v9183_v27  ;;  %v1205_v20 = vpop.permute.xlu0 %1204  ;;  %v11018_v19 = vld [vmem:[#allocation55_spill] sm:$0xff]  ;;  %v3163_v37 = vrot.slane %v11019_v13, %v5689_v33  ;;  %v11021_v1 = vrot.slane %v10976_v60, %v5614_v9  ;;  %v11026_v18 = vrot.slane %v10930_v32, %v5691_v34 }
 0x192   :  { %5326 = vmatprep.subr.bf16.mxu1 %v5325_v43  ;;  %5300 = vmatpush1.bf16.msra.mxu0 %v5299_v14  ;;  %v9311_v3 = vsel %vm1214_vm7, %v1205_v20, %v9293_v44  ;;  %v9316_v7 = vsel %vm1214_vm7, %v11014_v62, %v1205_v20  ;;  %v11017_v14 = vrot.slane %v10842_v26, %v5691_v34 }
 0x193   :  { %v5329_v15 = vpack.c.bf16 %v11018_v19, %v1991_v23  ;;  %v11020_v20 = vrot.slane %v10976_v60, %v5612_v8  ;;  %v3453_v50 = vmul.f32 %v11021_v1, %v9291_v63  ;;  %5328 = vmatpush1.bf16.msra.mxu1 %v5327_v45  ;;  %v9345_v30 = vpop.permute.xlu1 %1377  ;;  %v2235_v1 = vmul.f32 %v11026_v18, %v9233_v41 }
 0x194   :  { %v2357_v43 = vmul.f32 %v11017_v14, %v9291_v63  ;;  %v11022_v14 = vld [vmem:[#allocation38_spill] sm:$0xff]  ;;  %v11029_v45 = vrot.slane %v10842_v26, %v5689_v33  ;;  %v9370_v52 = vmul.f32 %v9126_v47, %v3163_v37 }
 0x195   :  { %v3452_v62 = vmul.f32 %v11020_v20, %v9304_v46  ;;  %v11023_v23 = vrot.slane %v11022_v14, %v5612_v8  ;;  %v11024_v56 = vrot.slane %v11022_v14, %v5614_v9  ;;  %v5331_v20 = vpack.c.bf16 %v11025_v58, %v1990_v17  ;;  %5330 = vmatprep.subr.bf16.mxu1 %v5329_v15  ;;  %v1376_v48 = vpop.permute.xlu0 %1375 }
 0x196   :  { %v9363_v58 = vsel %vm1385_vm8, %v1376_v48, %v9345_v30  ;;  %v11030_v17 = vrot.slane %v10850_v25, %v5616_v10  ;;  %v5333_v63 = vpack.c.bf16 %v2357_v43, %v2235_v1  ;;  %v11034_v1 = vrot.slane %v10911_v61, %v5691_v34 }
 0x197   :  { %v3574_v19 = vmul.f32 %v11023_v23, %v9316_v7  ;;  %v3575_v5 = vmul.f32 %v11024_v56, %v9311_v3  ;;  %v783_v23 = vrot.slane %v10992_v16, %v5616_v10  ;;  %v2356_v56 = vmul.f32 %v11029_v45, %v9304_v46  ;;  %5332 = vmatpush1.bf16.msra.mxu1 %v5331_v20 }
 0x198   :  { %v357_v15 = vmul.f32 %v11030_v17, %v9084_v39  ;;  %v230_v39 = vpop.permute.xlu1 %229  ;;  %v2601_v45 = vmul.f32 %v11034_v1, %v9363_v58  ;;  %5334 = vmatprep.subr.bf16.mxu1 %v5333_v63  ;;  %v11035_v17 = vld [vmem:[#allocation59_spill] sm:$0xff]  ;;  %v11038_v63 = vrot.slane %v10884_v6, %v5691_v34  ;;  %v11039_v1 = vrot.slane %v10911_v61, %v5689_v33 }
 0x199   :  { %v5303_v44 = vpack.c.bf16 %v3574_v19, %v3452_v62  ;;  %v5301_v18 = vpack.c.bf16 %v3575_v5, %v3453_v50  ;;  %v11031_v62 = vrot.slane %v10930_v32, %v5689_v33  ;;  %v9381_v5 = vsel %vm1385_vm8, %v8981_v55, %v1376_v48  ;;  %v11032_v50 = vld [vmem:[#allocation45_spill] sm:$0xff]  ;;  %v11041_v55 = vld [vmem:[#allocation63_spill] sm:$0xff] }
 0x19a   :  { %v11033_v37 = vrot.slane %v11032_v50, %v5614_v9  ;;  %v11036_v48 = vrot.slane %v10860_v38, %v5693_v35  ;;  %v11037_v9 = vrot.slane %v10860_v38, %v5616_v10 }
 0x19b   :  { %v2234_v19 = vmul.f32 %v11031_v62, %v9238_v57  ;;  %5302 = vmatprep.subr.bf16.mxu0 %v5301_v18  ;;  %v9392_v62 = vmul.f32 %v11035_v17, %v783_v23  ;;  %v58_v23 = vpop.permute.xlu0 %57  ;;  %v2600_v17 = vmul.f32 %v11039_v1, %v9381_v5  ;;  %v11044_v1 = vrot.slane %v10760_v49, %v5616_v10 }
 0x19c   :  { %v3697_v43 = vmul.f32 %v11033_v37, %v9363_v58  ;;  %5304 = vmatpush1.bf16.msra.mxu0 %v5303_v44  ;;  %v185_v20 = vmul.f32 %v11036_v48, %v9075_v2  ;;  %v186_v18 = vmul.f32 %v11037_v9, %v9103_v28  ;;  %v2479_v44 = vmul.f32 %v11038_v63, %v9311_v3 }
 0x19d   :  { %v5335_v37 = vpack.c.bf16 %v2356_v56, %v2234_v19  ;;  %v11040_v2 = vrot.slane %v11032_v50, %v5612_v8  ;;  %v9419_v28 = vsel %vm237_vm2, %v230_v39, %v11041_v55  ;;  %v11042_v56 = vld [vmem:[#allocation64_spill] sm:$0xff]  ;;  %v9433_v8 = vsel %vm237_vm2, %v9060_v59, %v230_v39  ;;  %v572_v59 = vpop.permute.xlu1 %571 }
 0x19e   :  { %4535 = vmatprep.subr.mxu0 %v3697_v43  ;;  %v9424_v19 = vsel %vm67_vm1, %v58_v23, %v11042_v56  ;;  %v11043_v43 = vrot.slane %v10850_v25, %v5693_v35  ;;  %v9438_v55 = vsel %vm67_vm1, %v9018_v22, %v58_v23  ;;  %v5357_v63 = vpack.c.bf16 %v357_v15, %v186_v18 }
 0x19f   :  { %v3696_v48 = vmul.f32 %v11040_v2, %v9381_v5  ;;  %5336 = vmatpush1.bf16.msra.mxu1 %v5335_v37  ;;  %v699_v2 = vmul.f32 %v11044_v1, %v9178_v51  ;;  %v11046_v22 = vrot.slane %v10924_v36, %v5691_v34  ;;  %v11047_v51 = vrot.slane %v10932_v54, %v5691_v34  ;;  %v401_v37 = vpop.permute.xlu0 %400 }
 0x1a0   :  { %v356_v9 = vmul.f32 %v11043_v43, %v9089_v29  ;;  %v11045_v29 = vrot.slane %v10884_v6, %v5689_v33  ;;  %v5337_v43 = vpack.c.bf16 %v2601_v45, %v2479_v44  ;;  %v11048_v23 = vrot.slane %v10866_v53, %v5616_v10 }
 0x1a1   :  { %4536 = vmatpush1.msra.mxu0 %v3696_v48  ;;  %v2845_v15 = vmul.f32 %v11046_v22, %v9419_v28  ;;  %v2723_v18 = vmul.f32 %v11047_v51, %v9424_v19  ;;  %v11051_v44 = vrot.slane %v10760_v49, %v5693_v35 }
 0x1a2   :  { %v2478_v56 = vmul.f32 %v11045_v29, %v9316_v7  ;;  %5358 = vmatprep.subr.bf16.mxu0 %v5357_v63  ;;  %v528_v48 = vmul.f32 %v11048_v23, %v9200_v24  ;;  %v11049_v29 = vrot.slane %v10924_v36, %v5689_v33  ;;  %v11050_v63 = vrot.slane %v10932_v54, %v5689_v33  ;;  %v9491_v54 = vld [vmem:[%s10073_s1] sm:$0xff] }
 0x1a3   :  { %5338 = vmatprep.subr.bf16.mxu1 %v5337_v43  ;;  %v5359_v39 = vpack.c.bf16 %v356_v9, %v185_v20  ;;  %v698_v45 = vmul.f32 %v11051_v44, %v9183_v27  ;;  %v9481_v24 = vsel %vm579_vm4, %v572_v59, %v11052_v11  ;;  %4548 = vmatmul.mubr.f32.vlgmr.msra.gmra.mrb[8].mxu0 %v9491_v54  ;;  %v11055_v9 = vld [vmem:[#allocation36_spill] sm:$0xff] }
 0x1a4   :  { %v5339_v1 = vpack.c.bf16 %v2600_v17, %v2478_v56  ;;  %v2844_v22 = vmul.f32 %v11049_v29, %v9433_v8  ;;  %v2722_v51 = vmul.f32 %v11050_v63, %v9438_v55  ;;  %v11053_v17 = vld [vmem:[#allocation82_spill] sm:$0xff]  ;;  %v11054_v27 = vrot.slane %v10785_v40, %v5616_v10  ;;  %v11070_v63 = vld [vmem:[#allocation17_spill] sm:$0xff] }
 0x1a5   :  { %v9486_v36 = vsel %vm408_vm3, %v401_v37, %v11053_v17  ;;  %v9501_v11 = vsel %vm579_vm4, %v9153_v42, %v572_v59  ;;  %v9506_v56 = vsel %vm408_vm3, %v11055_v9, %v401_v37  ;;  %v5361_v43 = vpack.c.bf16 %v699_v2, %v528_v48  ;;  %5360 = vmatpush1.bf16.msra.mxu0 %v5359_v39  ;;  %v11057_v37 = vld [vmem:[#allocation18_spill] sm:$0xff] }
 0x1a6   :  { %v992_v20 = vmul.f32 %v11054_v27, %v9233_v41  ;;  %5340 = vmatpush1.bf16.msra.mxu1 %v5339_v1  ;;  %v11056_v44 = vrot.slane %v10866_v53, %v5693_v35  ;;  %v5341_v29 = vpack.c.bf16 %v2845_v15, %v2723_v18  ;;  %v867_v41 = vpop.permute.xlu0 %866  ;;  %v3167_v42 = vrot.slane %v11019_v13, %v5691_v34  ;;  %v11059_v48 = vld [vmem:[#allocation14_spill] sm:$0xff]  ;;  %v11080_v13 = vld [vmem:[#allocation35_spill] sm:$0xff] }
 0x1a7   :  { %v5343_v59 = vpack.c.bf16 %v2844_v22, %v2722_v51  ;;  %v11058_v1 = vrot.slane %v11057_v37, %v5691_v34  ;;  %v11060_v17 = vrot.slane %v11059_v48, %v5691_v34  ;;  %5362 = vmatprep.subr.bf16.mxu0 %v5361_v43  ;;  %v11061_v18 = vrot.slane %v10785_v40, %v5693_v35  ;;  %v11064_v43 = vld [vmem:[#allocation100_spill] sm:$0xff] }
 0x1a8   :  { %v527_v23 = vmul.f32 %v11056_v44, %v9172_v4  ;;  %v11062_v51 = vrot.slane %v11057_v37, %v5689_v33  ;;  %v11063_v9 = vrot.slane %v11059_v48, %v5689_v33  ;;  %5342 = vmatprep.subr.bf16.mxu1 %v5341_v29  ;;  %v3533_v37 = vrot.slane %v11022_v14, %v5691_v34  ;;  %v1038_v29 = vpop.permute.xlu1 %1037 }
 0x1a9   :  { %v3089_v2 = vmul.f32 %v11058_v1, %v9481_v24  ;;  %v2967_v4 = vmul.f32 %v11060_v17, %v9486_v36  ;;  %v991_v22 = vmul.f32 %v11061_v18, %v9238_v57  ;;  %v3529_v57 = vrot.slane %v11022_v14, %v5689_v33  ;;  %v11066_v17 = vld [vmem:[#allocation83_spill] sm:$0xff]  ;;  %v11067_v14 = vld [vmem:[#allocation24_spill] sm:$0xff] }
 0x1aa   :  { %v5363_v15 = vpack.c.bf16 %v698_v45, %v527_v23  ;;  %v3088_v27 = vmul.f32 %v11062_v51, %v9501_v11  ;;  %v2966_v44 = vmul.f32 %v11063_v9, %v9506_v56  ;;  %v9541_v45 = vsel %vm872_vm5, %v867_v41, %v11064_v43  ;;  %5344 = vmatpush1.bf16.msra.mxu1 %v5343_v59  ;;  %v1209_v59 = vpop.permute.xlu0 %1208 }
 0x1ab   :  { %v5365_v23 = vpack.c.bf16 %v992_v20, %v9392_v62  ;;  %v11065_v1 = vrot.slane %v10879_v0, %v5616_v10  ;;  %v9555_v18 = vsel %vm872_vm5, %v11066_v17, %v867_v41  ;;  %v5477_v62 = vld [vmem:[%s10071_s0 + $0x68] sm:$0xff]  ;;  %v2077_v51 = vrot.slane %v11067_v14, %v5616_v10 }
 0x1ac   :  { %5364 = vmatpush1.bf16.msra.mxu0 %v5363_v15  ;;  %v3211_v20 = vmul.f32 %v5477_v62, %v3167_v42  ;;  %v5345_v43 = vpack.c.bf16 %v3089_v2, %v2967_v4  ;;  %v3655_v41 = vrot.slane %v11032_v50, %v5691_v34  ;;  %v791_v15 = vrot.slane %v10992_v16, %v5620_v12  ;;  %v11071_v42 = vld [vmem:[#allocation116_spill] sm:$0xff]  ;;  %v9582_v4 = vld [vmem:[%s10073_s1 + $0x18] sm:$0xff] }
 0x1ad   :  { %v1334_v48 = vmul.f32 %v11065_v1, %v9311_v3  ;;  %v11068_v3 = vrot.slane %v10879_v0, %v5693_v35  ;;  %5366 = vmatprep.subr.bf16.mxu0 %v5365_v23  ;;  %v11069_v1 = vld [vmem:[#allocation56_spill] sm:$0xff]  ;;  %v11072_v39 = vrot.slane %v11071_v42, %v5616_v10  ;;  %v5347_v14 = vpack.c.bf16 %v3088_v27, %v2966_v44 }
 0x1ae   :  { %v5367_v17 = vpack.c.bf16 %v991_v22, %v11069_v1  ;;  %5038 = vmatprep.mubr.msk.f32.mxu0 %vm4168_vm0, %v9582_v4  ;;  %v11074_v22 = vrot.slane %v11071_v42, %v5693_v35  ;;  %v11076_v27 = vrot.slane %v10993_v21, %v5689_v33  ;;  %5346 = vmatprep.subr.bf16.mxu1 %v5345_v43 }
 0x1af   :  { %v1333_v9 = vmul.f32 %v11068_v3, %v9316_v7  ;;  %v1163_v60 = vmul.f32 %v11072_v39, %v11070_v63  ;;  %v11073_v7 = vrot.slane %v10993_v21, %v5691_v34  ;;  %v11075_v63 = vld [vmem:[#allocation117_spill] sm:$0xff]  ;;  %v11077_v3 = vld [vmem:[#allocation28_spill] sm:$0xff]  ;;  %5348 = vmatpush1.bf16.msra.mxu1 %v5347_v14  ;;  %v9613_v21 = vmul.f32 %v5477_v62, %v2077_v51  ;;  %v1380_v51 = vpop.permute.xlu1 %1379 }
 0x1b0   :  { %v1162_v23 = vmul.f32 %v11074_v22, %v9304_v46  ;;  %v9593_v39 = vsel %vm1043_vm6, %v1038_v29, %v11075_v63  ;;  %v3332_v44 = vmul.f32 %v11076_v27, %v9555_v18  ;;  %v9602_v1 = vsel %vm1214_vm7, %v1209_v59, %v11077_v3  ;;  %v11081_v27 = vld [vmem:[#allocation128_spill] sm:$0xff]  ;;  %5368 = vmatpush1.bf16.msra.mxu0 %v5367_v17 }
 0x1b1   :  { %v3333_v2 = vmul.f32 %v11073_v7, %v9541_v45  ;;  %v11078_v7 = vld [vmem:[#allocation8_spill] sm:$0xff]  ;;  %v9611_v63 = vsel %vm1214_vm7, %v11080_v13, %v1209_v59  ;;  %v5369_v0 = vpack.c.bf16 %v1334_v48, %v1163_v60  ;;  %v11082_v3 = vrot.slane %v11081_v27, %v5616_v10  ;;  %v11084_v13 = vld [vmem:[#allocation6_spill] sm:$0xff]  ;;  %v11085_v48 = vld [vmem:[#allocation29_spill] sm:$0xff] }
 0x1b2   :  { %v11079_v46 = vrot.slane %v11078_v7, %v5616_v10  ;;  %v5371_v43 = vpack.c.bf16 %v1333_v9, %v1162_v23  ;;  %v11083_v16 = vrot.slane %v11078_v7, %v5693_v35  ;;  %v9623_v6 = vmul.f32 %v5477_v62, %v791_v15  ;;  %v11088_v15 = vld [vmem:[#allocation3_spill] sm:$0xff] }
 0x1b3   :  { %v1505_v47 = vmul.f32 %v11082_v3, %v9363_v58  ;;  %v9628_v60 = vsel %vm1043_vm6, %v11084_v13, %v1038_v29  ;;  %v11086_v59 = vrot.slane %v11085_v48, %v5691_v34  ;;  %v3577_v58 = vmul.f32 %v3533_v37, %v9602_v1  ;;  %5370 = vmatprep.subr.bf16.mxu0 %v5369_v0  ;;  %v9650_v37 = vld [vmem:[%s10073_s1 + $0x10] sm:$0xff] }
 0x1b4   :  { %v1627_v22 = vmul.f32 %v11079_v46, %v9424_v19  ;;  %v1626_v46 = vmul.f32 %v11083_v16, %v9438_v55  ;;  %v5349_v9 = vpack.c.bf16 %v3333_v2, %v3211_v20  ;;  %v11087_v16 = vrot.slane %v11081_v27, %v5693_v35  ;;  %4554 = vmatmul.mubr.f32.gmra.mrb[10].mxu0 %v9650_v37  ;;  %v11091_v20 = vld [vmem:[#allocation15_spill] sm:$0xff] }
 0x1b5   :  { %v3455_v14 = vmul.f32 %v11086_v59, %v9593_v39  ;;  %v11089_v29 = vrot.slane %v10850_v25, %v11088_v15  ;;  %v5351_v23 = vpack.c.bf16 %v3332_v44, %v9370_v52  ;;  %v3576_v34 = vmul.f32 %v3529_v57, %v9611_v63  ;;  %v11093_v44 = vld [vmem:[#allocation9_spill] sm:$0xff]  ;;  %5372 = vmatpush1.bf16.msra.mxu0 %v5371_v43 }
 0x1b6   :  { %v1504_v62 = vmul.f32 %v11087_v16, %v9381_v5  ;;  %v11090_v0 = vrot.slane %v10850_v25, %v5620_v12  ;;  %v11092_v2 = vrot.slane %v11091_v20, %v5616_v10  ;;  %5350 = vmatprep.subr.bf16.mxu1 %v5349_v9  ;;  %v5373_v57 = vpack.c.bf16 %v1627_v22, %v1505_v47  ;;  %v11096_v25 = vld [vmem:[#allocation135_spill] sm:$0xff] }
 0x1b7   :  { %v9643_v17 = vmul.f32 %v11089_v29, %v9433_v8  ;;  %v5353_v52 = vpack.c.bf16 %v3577_v58, %v3455_v14  ;;  %v11094_v13 = vrot.slane %v11093_v44, %v5693_v35  ;;  %v11095_v16 = vrot.slane %v11085_v48, %v5689_v33  ;;  %5352 = vmatpush1.bf16.msra.mxu1 %v5351_v23  ;;  %v11099_v48 = vld [vmem:[#allocation19_spill] sm:$0xff] }
 0x1b8   :  { %v359_v5 = vmul.f32 %v11090_v0, %v9419_v28  ;;  %v1871_v3 = vmul.f32 %v11092_v2, %v9486_v36  ;;  %v9672_v0 = vsel %vm1385_vm8, %v1380_v51, %v11096_v25  ;;  %v11097_v47 = vrot.slane %v11093_v44, %v5616_v10  ;;  %5374 = vmatprep.subr.bf16.mxu0 %v5373_v57  ;;  %v11103_v57 = vld [vmem:[#allocation136_spill] sm:$0xff] }
 0x1b9   :  { %v1748_v59 = vmul.f32 %v11094_v13, %v9433_v8  ;;  %v3454_v29 = vmul.f32 %v11095_v16, %v9628_v60  ;;  %v11098_v8 = vrot.slane %v10860_v38, %v11088_v15  ;;  %v5375_v58 = vpack.c.bf16 %v1626_v46, %v1504_v62  ;;  %5354 = vmatprep.subr.bf16.mxu1 %v5353_v52  ;;  %v11102_v52 = vld [vmem:[#allocation123_spill] sm:$0xff]  ;;  %v11112_v38 = vld [vmem:[#allocation106_spill] sm:$0xff] }
 0x1ba   :  { %v1749_v22 = vmul.f32 %v11097_v47, %v9419_v28  ;;  %v11100_v9 = vrot.slane %v11099_v48, %v5616_v10  ;;  %v11101_v43 = vrot.slane %v11091_v20, %v5693_v35  ;;  %v9693_v28 = vsel %vm1385_vm8, %v9345_v30, %v1380_v51  ;;  %v11104_v20 = vld [vmem:[#allocation76_spill] sm:$0xff]  ;;  %v11105_v16 = vld [vmem:[#allocation79_spill] sm:$0xff] }
 0x1bb   :  { %v187_v14 = vmul.f32 %v11098_v8, %v9438_v55  ;;  %v5355_v44 = vpack.c.bf16 %v3576_v34, %v3454_v29  ;;  %v5480_v55 = vld [vmem:[%s10073_s1 + $0x8] sm:$0xff]  ;;  %v3699_v46 = vmul.f32 %v3655_v41, %v9672_v0  ;;  %v188_v30 = vmul.f32 %v11106_v31, %v9424_v19  ;;  %5376 = vmatpush1.bf16.msra.mxu0 %v5375_v58  ;;  %v11108_v41 = vld [vmem:[#allocation74_spill] sm:$0xff]  ;;  %v11111_v8 = vld [vmem:[#allocation95_spill] sm:$0xff] }
 0x1bc   :  { %v1993_v2 = vmul.f32 %v11100_v9, %v9481_v24  ;;  %v1870_v23 = vmul.f32 %v11101_v43, %v9506_v56  ;;  %5041 = vmatprep.mubr.msk.f32.mxu0 %vm4168_vm0, %v5480_v55  ;;  %v5377_v62 = vpack.c.bf16 %v1871_v3, %v1749_v22  ;;  %v11107_v51 = vrot.slane %v10760_v49, %v5620_v12  ;;  %v11109_v3 = vld [vmem:[#allocation88_spill] sm:$0xff]  ;;  %v11113_v9 = vld [vmem:[#allocation30_spill] sm:$0xff]  ;;  %v11114_v43 = vld [vmem:[#allocation109_spill] sm:$0xff] }
 0x1bd   :  { %5356 = vmatpush1.bf16.msra.mxu1 %v5355_v44  ;;  %v11110_v47 = vrot.slane %v11099_v48, %v5693_v35  ;;  %v11119_v19 = vrot.slane %v10842_v26, %v5616_v10  ;;  %v11120_v31 = vrot.slane %v10930_v32, %v5616_v10 }
 0x1be   :  { %v701_v34 = vmul.f32 %v11107_v51, %v9481_v24  ;;  %4612 = vmatprep.subr.mxu1 %v3699_v46  ;;  %5378 = vmatprep.subr.bf16.mxu0 %v5377_v62  ;;  %v11115_v24 = vrot.slane %v10866_v53, %v5620_v12  ;;  %v5379_v44 = vpack.c.bf16 %v1870_v23, %v1748_v59  ;;  %v11118_v46 = vld [vmem:[#allocation73_spill] sm:$0xff]  ;;  %v11121_v59 = vld [vmem:[#allocation130_spill] sm:$0xff]  ;;  %v11122_v23 = vld [vmem:[#allocation75_spill] sm:$0xff] }
 0x1bf   :  { %v1992_v22 = vmul.f32 %v11110_v47, %v9501_v11  ;;  %v11116_v51 = vrot.slane %v11032_v50, %v5689_v33  ;;  %v2359_v25 = vmul.f32 %v11119_v19, %v9593_v39  ;;  %v2237_v13 = vmul.f32 %v11120_v31, %v9541_v45 }
 0x1c0   :  { %v530_v58 = vmul.f32 %v11115_v24, %v9486_v36  ;;  %v5381_v36 = vpack.c.bf16 %v9613_v21, %v1993_v2  ;;  %v5459_v24 = vpack.c.bf16 %v11122_v23, %v11121_v59  ;;  %v5411_v33 = vpack.c.bf16 %v9643_v17, %v187_v14  ;;  %5380 = vmatpush1.bf16.msra.mxu0 %v5379_v44 }
 0x1c1   :  { %v3698_v29 = vmul.f32 %v11116_v51, %v9693_v28  ;;  %v11123_v51 = vrot.slane %v10760_v49, %v11088_v15  ;;  %v5409_v19 = vpack.c.bf16 %v359_v5, %v188_v30  ;;  %v11124_v47 = vrot.slane %v10866_v53, %v11088_v15  ;;  %v11127_v49 = vld [vmem:[#allocation80_spill] sm:$0xff] }
 0x1c2   :  { %v11125_v21 = vrot.slane %v10842_v26, %v5693_v35  ;;  %v11126_v17 = vrot.slane %v10930_v32, %v5693_v35  ;;  %5382 = vmatprep.subr.bf16.mxu0 %v5381_v36  ;;  %v11128_v53 = vrot.slane %v10785_v40, %v5620_v12  ;;  %v5413_v5 = vpack.c.bf16 %v701_v34, %v530_v58  ;;  %v11134_v58 = vld [vmem:[#allocation4_spill] sm:$0xff] }
 0x1c3   :  { %v700_v62 = vmul.f32 %v11123_v51, %v9501_v11  ;;  %4613 = vmatpush1.msra.mxu1 %v3698_v29  ;;  %v529_v31 = vmul.f32 %v11124_v47, %v9506_v56  ;;  %v5383_v11 = vpack.c.bf16 %v11127_v49, %v1992_v22  ;;  %v1133_v26 = vrot.slane %v11071_v42, %v5620_v12  ;;  %v11130_v29 = vld [vmem:[#allocation40_spill] sm:$0xff]  ;;  %v11132_v47 = vld [vmem:[#allocation34_spill] sm:$0xff] }
 0x1c4   :  { %v2358_v2 = vmul.f32 %v11125_v21, %v9628_v60  ;;  %v2236_v14 = vmul.f32 %v11126_v17, %v9555_v18  ;;  %4625 = vmatmul.mubr.f32.vlgmr.msra.gmra.mrb[8].mxu1 %v9491_v54  ;;  %v994_v56 = vmul.f32 %v11128_v53, %v9541_v45  ;;  %5410 = vmatprep.subr.bf16.mxu1 %v5409_v19  ;;  %v11135_v19 = vld [vmem:[#allocation120_spill] sm:$0xff] }
 0x1c5   :  { %5040 = vmatprep.mubr.msk.f32.mxu1 %vm4168_vm0, %v9582_v4  ;;  %v11129_v32 = vrot.slane %v10911_v61, %v5616_v10  ;;  %v11131_v22 = vrot.slane %v11130_v29, %v5616_v10  ;;  %5412 = vmatpush1.bf16.msra.mxu1 %v5411_v33  ;;  %v5385_v45 = vpack.c.bf16 %v2359_v25, %v2237_v13 }
 0x1c6   :  { %v11133_v34 = vrot.slane %v11132_v47, %v11088_v15  ;;  %v1475_v51 = vrot.slane %v11081_v27, %v5620_v12  ;;  %v1300_v21 = vrot.slane %v11135_v19, %v11088_v15  ;;  %5414 = vmatprep.subr.bf16.mxu1 %v5413_v5  ;;  %5384 = vmatpush1.bf16.msra.mxu0 %v5383_v11 }
 0x1c7   :  { %v2603_v30 = vmul.f32 %v11129_v32, %v9672_v0  ;;  %v2481_v44 = vmul.f32 %v11131_v22, %v9602_v1  ;;  %v5415_v17 = vpack.c.bf16 %v700_v62, %v529_v31  ;;  %v11136_v49 = vrot.slane %v10785_v40, %v11088_v15  ;;  %5386 = vmatprep.subr.bf16.mxu0 %v5385_v45 }
 0x1c8   :  { %v822_v36 = vmul.f32 %v11134_v58, %v11133_v34  ;;  %v5387_v13 = vpack.c.bf16 %v2358_v2, %v2236_v14  ;;  %4631 = vmatmul.mubr.f32.gmra.mrb[10].mxu1 %v9650_v37  ;;  %v11137_v25 = vrot.slane %v10911_v61, %v5693_v35  ;;  %v11138_v5 = vrot.slane %v11135_v19, %v5620_v12 }
 0x1c9   :  { %v993_v33 = vmul.f32 %v11136_v49, %v9555_v18  ;;  %v11139_v62 = vrot.slane %v11130_v29, %v5693_v35  ;;  %v5417_v18 = vpack.c.bf16 %v994_v56, %v9623_v6  ;;  %5043 = vmatprep.mubr.msk.f32.mxu1 %vm4168_vm0, %v5480_v55  ;;  %v1129_v31 = vrot.slane %v11071_v42, %v11088_v15 }
 0x1ca   :  { %v2602_v53 = vmul.f32 %v11137_v25, %v9693_v28  ;;  %v1336_v11 = vmul.f32 %v11138_v5, %v9602_v1  ;;  %5416 = vmatpush1.bf16.msra.mxu1 %v5415_v17  ;;  %v5389_v2 = vpack.c.bf16 %v2603_v30, %v2481_v44  ;;  %v1597_v14 = vrot.slane %v11078_v7, %v5620_v12  ;;  %v11140_v44 = vld [vmem:[#allocation23_spill] sm:$0xff]  ;;  %v11148_v25 = vld [vmem:[#allocation96_spill] sm:$0xff] }
 0x1cb   :  { %v2480_v40 = vmul.f32 %v11139_v62, %v9611_v63  ;;  %v1165_v32 = vmul.f32 %v1133_v26, %v9593_v39  ;;  %5418 = vmatprep.subr.bf16.mxu1 %v5417_v18  ;;  %5388 = vmatpush1.bf16.msra.mxu0 %v5387_v13  ;;  %v5419_v1 = vpack.c.bf16 %v993_v33, %v822_v36  ;;  %v11141_v26 = vld [vmem:[#allocation32_spill] sm:$0xff]  ;;  %v11144_v36 = vld [vmem:[#allocation61_spill] sm:$0xff] }
 0x1cc   :  { %v1471_v22 = vrot.slane %v11081_v27, %v11088_v15  ;;  %v1335_v6 = vmul.f32 %v1300_v21, %v9611_v63  ;;  %5390 = vmatprep.subr.bf16.mxu0 %v5389_v2  ;;  %v1507_v55 = vmul.f32 %v1475_v51, %v9672_v0  ;;  %v1593_v30 = vrot.slane %v11078_v7, %v11088_v15  ;;  %v11142_v27 = vld [vmem:[#allocation60_spill] sm:$0xff]  ;;  %v11143_v7 = vld [vmem:[#allocation62_spill] sm:$0xff]  ;;  %v11147_v33 = vld [vmem:[#allocation65_spill] sm:$0xff] }
 0x1cd   :  { %v5391_v56 = vpack.c.bf16 %v2602_v53, %v2480_v40  ;;  %v5421_v42 = vpack.c.bf16 %v1336_v11, %v1165_v32  ;;  %v3297_v45 = vrot.slane %v11140_v44, %v5616_v10  ;;  %v1164_v39 = vmul.f32 %v1129_v31, %v9628_v60  ;;  %v11146_v21 = vld [vmem:[#allocation24_spill] sm:$0xff]  ;;  %v11149_v11 = vld [vmem:[#allocation67_spill] sm:$0xff]  ;;  %v11152_v2 = vld [vmem:[#allocation110_spill] sm:$0xff] }
 0x1ce   :  { %5420 = vmatpush1.bf16.msra.mxu1 %v5419_v1  ;;  %v3175_v47 = vrot.slane %v11141_v26, %v5616_v10  ;;  %v1629_v34 = vmul.f32 %v1597_v14, %v11142_v27  ;;  %v1963_v63 = vrot.slane %v11099_v48, %v5620_v12  ;;  %v1506_v0 = vmul.f32 %v1471_v22, %v9693_v28  ;;  %v5481_v28 = vld [vmem:[%s10071_s0 + $0x78] sm:$0xff]  ;;  %v11150_v62 = vld [vmem:[#allocation68_spill] sm:$0xff]  ;;  %v11155_v22 = vld [vmem:[#allocation77_spill] sm:$0xff] }
 0x1cf   :  { %5422 = vmatprep.subr.bf16.mxu1 %v5421_v42  ;;  %5392 = vmatpush1.bf16.msra.mxu0 %v5391_v56  ;;  %v5423_v58 = vpack.c.bf16 %v1335_v6, %v1164_v39  ;;  %v11145_v51 = vpack.c.bf16 %v11143_v7, %v11144_v36  ;;  %v3293_v60 = vrot.slane %v11140_v44, %v5693_v35  ;;  %v11153_v14 = vld [vmem:[#allocation102_spill] sm:$0xff]  ;;  %v11157_v39 = vld [vmem:[#allocation101_spill] sm:$0xff]  ;;  %v11163_v7 = vld [vmem:[#allocation84_spill] sm:$0xff] }
 0x1d0   :  { %v5425_v19 = vpack.c.bf16 %v1629_v34, %v1507_v55  ;;  %v2085_v17 = vrot.slane %v11146_v21, %v5620_v12  ;;  %v3171_v49 = vrot.slane %v11141_v26, %v5693_v35  ;;  %v1628_v13 = vmul.f32 %v1593_v30, %v11147_v33  ;;  %v11156_v55 = vld [vmem:[#allocation33_spill] sm:$0xff]  ;;  %v11160_v34 = vld [vmem:[#allocation112_spill] sm:$0xff] }
 0x1d1   :  { %5394 = vmatprep.subr.bf16.mxu0 %v11145_v51  ;;  %v3335_v53 = vmul.f32 %v3297_v45, %v11148_v25  ;;  %v3213_v5 = vmul.f32 %v5481_v28, %v3175_v47  ;;  %v11151_v40 = vpack.c.bf16 %v11149_v11, %v11150_v62  ;;  %v1959_v18 = vrot.slane %v11099_v48, %v11088_v15  ;;  %v5482_v30 = vld [vmem:[%s10071_s0 + $0x70] sm:$0xff]  ;;  %v11167_v25 = vld [vmem:[#allocation78_spill] sm:$0xff] }
 0x1d2   :  { %5424 = vmatpush1.bf16.msra.mxu1 %v5423_v58  ;;  %v5427_v31 = vpack.c.bf16 %v1628_v13, %v1506_v0  ;;  %v11154_v32 = vpack.c.bf16 %v11152_v2, %v11153_v14  ;;  %v2081_v1 = vrot.slane %v11146_v21, %v11088_v15  ;;  %v1995_v6 = vmul.f32 %v1963_v63, %v11155_v22  ;;  %v11158_v47 = vld [vmem:[#allocation89_spill] sm:$0xff]  ;;  %v11161_v0 = vld [vmem:[#allocation114_spill] sm:$0xff] }
 0x1d3   :  { %5426 = vmatprep.subr.bf16.mxu1 %v5425_v19  ;;  %5396 = vmatpush1.bf16.msra.mxu0 %v11151_v40  ;;  %v3334_v56 = vmul.f32 %v3293_v60, %v11156_v55  ;;  %v2117_v42 = vmul.f32 %v5481_v28, %v2085_v17  ;;  %v3212_v45 = vmul.f32 %v5482_v30, %v3171_v49  ;;  %v11164_v21 = vld [vmem:[#allocation113_spill] sm:$0xff]  ;;  %v11165_v17 = vld [vmem:[#allocation90_spill] sm:$0xff] }
 0x1d4   :  { %5398 = vmatprep.subr.bf16.mxu0 %v11154_v32  ;;  %v5401_v48 = vpack.c.bf16 %v3335_v53, %v3213_v5  ;;  %v11159_v27 = vpack.c.bf16 %v11157_v39, %v11158_v47  ;;  %v11162_v58 = vpack.c.bf16 %v11160_v34, %v11161_v0  ;;  %v1994_v63 = vmul.f32 %v1959_v18, %v11163_v7  ;;  %v11168_v53 = vld [vmem:[#allocation141_spill] sm:$0xff]  ;;  %v11170_v11 = vld [vmem:[#allocation138_spill] sm:$0xff]  ;;  %v11171_v18 = vld [vmem:[#allocation119_spill] sm:$0xff] }
 0x1d5   :  { %v2116_v36 = vmul.f32 %v5482_v30, %v2081_v1  ;;  %v2573_v51 = vrot.slane %v10911_v61, %v5620_v12  ;;  %v5433_v60 = vpack.c.bf16 %v2117_v42, %v1995_v6  ;;  %v5403_v19 = vpack.c.bf16 %v3334_v56, %v3212_v45  ;;  %v11174_v2 = vld [vmem:[#allocation125_spill] sm:$0xff]  ;;  %v11180_v56 = vld [vmem:[#allocation140_spill] sm:$0xff]  ;;  %v11181_v42 = vld [vmem:[#allocation139_spill] sm:$0xff] }
 0x1d6   :  { %5428 = vmatpush1.bf16.msra.mxu1 %v5427_v31  ;;  %v11166_v49 = vpack.c.bf16 %v11164_v21, %v11165_v17  ;;  %v3663_v33 = vrot.slane %v11032_v50, %v5616_v10  ;;  %v2451_v13 = vrot.slane %v11130_v29, %v5620_v12  ;;  %v11169_v28 = vpack.c.bf16 %v11167_v25, %v11168_v53  ;;  %v11173_v31 = vld [vmem:[#allocation126_spill] sm:$0xff]  ;;  %v11176_v32 = vld [vmem:[#allocation137_spill] sm:$0xff]  ;;  %v5483_v34 = vld [vmem:[%s10071_s0 + $0x8] sm:$0xff] }
 0x1d7   :  { %5430 = vmatprep.subr.bf16.mxu1 %v11159_v27  ;;  %5400 = vmatpush1.bf16.msra.mxu0 %v11162_v58  ;;  %v5435_v5 = vpack.c.bf16 %v2116_v36, %v1994_v63  ;;  %v3659_v61 = vrot.slane %v11032_v50, %v5693_v35  ;;  %v2605_v62 = vmul.f32 %v2573_v51, %v11170_v11  ;;  %v11177_v35 = vld [vmem:[#allocation122_spill] sm:$0xff]  ;;  %v11178_v6 = vld [vmem:[#allocation121_spill] sm:$0xff] }
 0x1d8   :  { %5402 = vmatprep.subr.bf16.mxu0 %v5401_v48  ;;  %v3701_v40 = vmul.f32 %v3663_v33, %v11170_v11  ;;  %v2483_v10 = vmul.f32 %v2451_v13, %v11171_v18  ;;  %v11172_v29 = vpack.c.bf16 %v11103_v57, %v11102_v52  ;;  %v11175_v14 = vpack.c.bf16 %v11173_v31, %v11174_v2  ;;  %v11184_v47 = vld [vmem:[#allocation97_spill] sm:$0xff] }
 0x1d9   :  { %v3700_v1 = vmul.f32 %v3659_v61, %v11176_v32  ;;  %v11179_v55 = vpack.c.bf16 %v11177_v35, %v11178_v6  ;;  %v3305_v52 = vrot.slane %v11140_v44, %v5620_v12  ;;  %v3183_v57 = vrot.slane %v11141_v26, %v5620_v12 }
 0x1da   :  { %5432 = vmatpush1.bf16.msra.mxu1 %v11166_v49  ;;  %v5441_v22 = vpack.c.bf16 %v2605_v62, %v2483_v10  ;;  %v11182_v30 = vpack.c.bf16 %v11180_v56, %v11181_v42  ;;  %v11183_v45 = vpack.c.bf16 %v11105_v16, %v11104_v20  ;;  %v3301_v48 = vrot.slane %v11140_v44, %v11088_v15  ;;  %v11187_v16 = vld [vmem:[#allocation92_spill] sm:$0xff] }
 0x1db   :  { %5434 = vmatprep.subr.bf16.mxu1 %v5433_v60  ;;  %5404 = vmatpush1.bf16.msra.mxu0 %v5403_v19  ;;  %v3179_v39 = vrot.slane %v11141_v26, %v11088_v15  ;;  %v3337_v27 = vmul.f32 %v3305_v52, %v11184_v47  ;;  %v3215_v0 = vmul.f32 %v5483_v34, %v3183_v57  ;;  %v5484_v26 = vld [vmem:[%s10071_s0] sm:$0xff]  ;;  %v11191_v60 = vld [vmem:[#allocation133_spill] sm:$0xff] }
 0x1dc   :  { %5406 = vmatprep.subr.bf16.mxu0 %v11169_v28  ;;  %v11185_v58 = vpack.c.bf16 %v11109_v3, %v11108_v41  ;;  %v11186_v20 = vpack.c.bf16 %v11112_v38, %v11111_v8  ;;  %v3336_v44 = vmul.f32 %v3301_v48, %v11187_v16  ;;  %v11188_v36 = vpack.c.bf16 %v11114_v43, %v11113_v9  ;;  %v11189_v3 = vld [vmem:[#allocation132_spill] sm:$0xff]  ;;  %v11192_v9 = vld [vmem:[#allocation134_spill] sm:$0xff] }
 0x1dd   :  { %v3214_v7 = vmul.f32 %v5484_v26, %v3179_v39  ;;  %v5453_v63 = vpack.c.bf16 %v3337_v27, %v3215_v0  ;;  %v3671_v41 = vrot.slane %v11032_v50, %v5620_v12  ;;  %v11190_v8 = vpack.c.bf16 %v11118_v46, %v11189_v3  ;;  %v9939_v12 = vpop.permute.xlu0 %4160 }
 0x1de   :  { %5436 = vmatpush1.bf16.msra.mxu1 %v5435_v5  ;;  %v3667_v38 = vrot.slane %v11032_v50, %v11088_v15  ;;  %v4241_v50 = vpop.f32.mrb[0].mxu0 }
 0x1df   :  { %5438 = vmatprep.subr.bf16.mxu1 %v11172_v29  ;;  %5408 = vmatpush1.bf16.msra.mxu0 %v11175_v14  ;;  %v5455_v51 = vpack.c.bf16 %v3336_v44, %v3214_v7  ;;  %v3703_v19 = vmul.f32 %v3671_v41, %v11191_v60  ;;  %v4242_v15 = vadd.f32 %v4241_v50, %v9939_v12  ;;  %v4243_v46 = vpop.f32.mrb[1].mxu0 }
 0x1e0   :  { %4689 = vmatprep.subr.mxu0 %v3701_v40  ;;  %v3702_v43 = vmul.f32 %v3667_v38, %v11192_v9  ;;  %v4244_v59 = vadd.f32 %v4243_v46, %v9939_v12 }
 0x1e1   :  { %vm4791_vm9 = vcmp.gt.f32.partialorder %v4242_v15, 0.0  ;;  %v4823_v23 = vmul.f32 0.2, %v4242_v15 }
 0x1e2   :  { %5440 = vmatpush1.bf16.msra.mxu1 %v11179_v55  ;;  %vm4792_vm10 = vcmp.gt.f32.partialorder %v4244_v59, 0.0 }
 0x1e3   :  { %5442 = vmatprep.subr.bf16.mxu1 %v5441_v22  ;;  %4690 = vmatpush1.msra.mxu0 %v3700_v1  ;;  %v4855_v21 = vsel %vm4791_vm9, %v4242_v15, %v4823_v23 }
 0x1e4   :  { %4702 = vmatmul.mubr.f32.vlgmr.msra.gmra.mrb[12].mxu0 %v9491_v54  ;;  %4887 = vst [vmem:[%s10075_s4] sm:$0xff] %v4855_v21 }
 0x1e5   :  { %5042 = vmatprep.mubr.msk.f32.mxu0 %vm4168_vm0, %v9582_v4 }
 0x1e6   :  { %5444 = vmatpush1.bf16.msra.mxu1 %v11182_v30 }
 0x1e7   :  { %5446 = vmatprep.subr.bf16.mxu1 %v11183_v45 }
 0x1e8   :  { %4708 = vmatmul.mubr.f32.gmra.mrb[14].mxu0 %v9650_v37 }
 0x1ea   :  { %5448 = vmatpush1.bf16.msra.mxu1 %v11185_v58 }
 0x1eb   :  { %5450 = vmatprep.subr.bf16.mxu1 %v11186_v20 }
 0x1ee   :  { %5452 = vmatpush1.bf16.msra.mxu1 %v11188_v36 }
 0x1ef   :  { %5454 = vmatprep.subr.bf16.mxu1 %v5453_v63 }
 0x1f2   :  { %5456 = vmatpush1.bf16.msra.mxu1 %v5455_v51 }
 0x1f3   :  { %5458 = vmatprep.subr.bf16.mxu1 %v11190_v8 }
 0x1f6   :  { %5460 = vmatpush1.bf16.msra.mxu1 %v5459_v24  ;;  %v4824_v24 = vmul.f32 0.2, %v4244_v59 }
 0x1f7   :  { %4766 = vmatprep.subr.mxu1 %v3703_v19 }
 0x1f8   :  { %v4318_v5 = vpop.f32.mrb[0].mxu1 }
 0x1f9   :  { %v4319_v61 = vadd.f32 %v4318_v5, %v9939_v12  ;;  %v4320_v11 = vpop.f32.mrb[1].mxu1 }
 0x1fa   :  { %4767 = vmatpush1.msra.mxu1 %v3702_v43  ;;  %v4321_v62 = vadd.f32 %v4320_v11, %v9939_v12 }
 0x1fb   :  { %4779 = vmatmul.mubr.f32.vlgmr.msra.gmra.mrb[12].mxu1 %v9491_v54  ;;  %v4856_v54 = vsel %vm4792_vm10, %v4244_v59, %v4824_v24  ;;  %vm4793_vm13 = vcmp.gt.f32.partialorder %v4319_v61, 0.0  ;;  %v4825_v40 = vmul.f32 0.2, %v4319_v61 }
 0x1fc   :  { %5044 = vmatprep.mubr.msk.f32.mxu1 %vm4168_vm0, %v9582_v4  ;;  %4888 = vst [vmem:[%s10075_s4 + $0x8] sm:$0xff] %v4856_v54  ;;  %v9949_v4 = vpop.permute.xlu1 %4165  ;;  %vm4794_vm14 = vcmp.gt.f32.partialorder %v4321_v62, 0.0  ;;  %v4826_v18 = vmul.f32 0.2, %v4321_v62  ;;  %v4324_v10 = vpop.f32.mrb[2].mxu1 }
 0x1fd   :  { %v4857_v29 = vsel %vm4793_vm13, %v4319_v61, %v4825_v40  ;;  %v4325_v31 = vadd.f32 %v4324_v10, %v9949_v4  ;;  %v4326_v2 = vpop.f32.mrb[3].mxu1 }
 0x1fe   :  { %4889 = vst [vmem:[%s10075_s4 + $0x10] sm:$0xff] %v4857_v29  ;;  %v4858_v14 = vsel %vm4794_vm14, %v4321_v62, %v4826_v18  ;;  %v4327_v32 = vadd.f32 %v4326_v2, %v9949_v4 }
 0x1ff   :  { %4785 = vmatmul.mubr.f32.gmra.mrb[14].mxu1 %v9650_v37  ;;  %v4247_v37 = vpop.f32.mrb[2].mxu0  ;;  %4890 = vst [vmem:[%s10075_s4 + $0x18] sm:$0xff] %v4858_v14  ;;  %vm4809_vm15 = vcmp.gt.f32.partialorder %v4325_v31, 0.0  ;;  %v4841_v1 = vmul.f32 0.2, %v4325_v31 }
 0x200   :  { %v4248_v17 = vadd.f32 %v4247_v37, %v9949_v4  ;;  %v4249_v49 = vpop.f32.mrb[3].mxu0  ;;  %vm4810_vm0 = vcmp.gt.f32.partialorder %v4327_v32, 0.0  ;;  %v4842_v22 = vmul.f32 0.2, %v4327_v32 }
 0x201   :  { %v4250_v33 = vadd.f32 %v4249_v49, %v9949_v4  ;;  %v4873_v35 = vsel %vm4809_vm15, %v4325_v31, %v4841_v1 }
 0x202   :  { %vm4807_vm11 = vcmp.gt.f32.partialorder %v4248_v17, 0.0  ;;  %v4839_v13 = vmul.f32 0.2, %v4248_v17  ;;  %4905 = vst [vmem:[%s10075_s4 + $0x90] sm:$0xff] %v4873_v35  ;;  %v4874_v6 = vsel %vm4810_vm0, %v4327_v32, %v4842_v22 }
 0x203   :  { %vm4808_vm12 = vcmp.gt.f32.partialorder %v4250_v33, 0.0  ;;  %v4840_v25 = vmul.f32 0.2, %v4250_v33  ;;  %4906 = vst [vmem:[%s10075_s4 + $0x98] sm:$0xff] %v4874_v6 }
 0x204   :  { %v4871_v53 = vsel %vm4807_vm11, %v4248_v17, %v4839_v13 }
 0x205   :  { %4903 = vst [vmem:[%s10075_s4 + $0x80] sm:$0xff] %v4871_v53  ;;  %v4872_v28 = vsel %vm4808_vm12, %v4250_v33, %v4840_v25 }
 0x206   :  { %4904 = vst [vmem:[%s10075_s4 + $0x88] sm:$0xff] %v4872_v28 }
 0x225   :  { %v4395_v55 = vpop.f32.mrb[4].mxu0 }
 0x226   :  { %v4396_v52 = vadd.f32 %v4395_v55, %v9939_v12  ;;  %v4397_v57 = vpop.f32.mrb[5].mxu0 }
 0x227   :  { %v4398_v56 = vadd.f32 %v4397_v57, %v9939_v12 }
 0x228   :  { %vm4795_vm1 = vcmp.gt.f32.partialorder %v4396_v52, 0.0  ;;  %v4827_v42 = vmul.f32 0.2, %v4396_v52 }
 0x229   :  { %vm4796_vm2 = vcmp.gt.f32.partialorder %v4398_v56, 0.0  ;;  %v4828_v30 = vmul.f32 0.2, %v4398_v56  ;;  %v4401_v45 = vpop.f32.mrb[6].mxu0 }
 0x22a   :  { %v4859_v48 = vsel %vm4795_vm1, %v4396_v52, %v4827_v42  ;;  %v4402_v39 = vadd.f32 %v4401_v45, %v9949_v4  ;;  %v4403_v47 = vpop.f32.mrb[7].mxu0 }
 0x22b   :  { %4891 = vst [vmem:[%s10075_s4 + $0x20] sm:$0xff] %v4859_v48  ;;  %v4860_v27 = vsel %vm4796_vm2, %v4398_v56, %v4828_v30  ;;  %v4404_v34 = vadd.f32 %v4403_v47, %v9949_v4 }
 0x22c   :  { %4892 = vst [vmem:[%s10075_s4 + $0x28] sm:$0xff] %v4860_v27  ;;  %vm4811_vm3 = vcmp.gt.f32.partialorder %v4402_v39, 0.0  ;;  %v4843_v0 = vmul.f32 0.2, %v4402_v39 }
 0x22d   :  { %vm4812_vm4 = vcmp.gt.f32.partialorder %v4404_v34, 0.0  ;;  %v4844_v58 = vmul.f32 0.2, %v4404_v34 }
 0x22e   :  { %v4875_v20 = vsel %vm4811_vm3, %v4402_v39, %v4843_v0 }
 0x22f   :  { %4907 = vst [vmem:[%s10075_s4 + $0xa0] sm:$0xff] %v4875_v20  ;;  %v4876_v16 = vsel %vm4812_vm4, %v4404_v34, %v4844_v58 }
 0x230   :  { %4908 = vst [vmem:[%s10075_s4 + $0xa8] sm:$0xff] %v4876_v16 }
 0x24d   :  { %v4472_v44 = vpop.f32.mrb[4].mxu1 }
 0x24e   :  { %v4473_v26 = vadd.f32 %v4472_v44, %v9939_v12  ;;  %v4474_v7 = vpop.f32.mrb[5].mxu1 }
 0x24f   :  { %v4475_v63 = vadd.f32 %v4474_v7, %v9939_v12 }
 0x250   :  { %vm4797_vm5 = vcmp.gt.f32.partialorder %v4473_v26, 0.0  ;;  %v4829_v36 = vmul.f32 0.2, %v4473_v26 }
 0x251   :  { %vm4798_vm6 = vcmp.gt.f32.partialorder %v4475_v63, 0.0  ;;  %v4830_v51 = vmul.f32 0.2, %v4475_v63 }
 0x252   :  { %v4861_v41 = vsel %vm4797_vm5, %v4473_v26, %v4829_v36 }
 0x253   :  { %v4478_v3 = vpop.f32.mrb[6].mxu1  ;;  %4893 = vst [vmem:[%s10075_s4 + $0x30] sm:$0xff] %v4861_v41  ;;  %v4862_v8 = vsel %vm4798_vm6, %v4475_v63, %v4830_v51 }
 0x254   :  { %v4479_v38 = vadd.f32 %v4478_v3, %v9949_v4  ;;  %v4480_v60 = vpop.f32.mrb[7].mxu1  ;;  %4894 = vst [vmem:[%s10075_s4 + $0x38] sm:$0xff] %v4862_v8 }
 0x255   :  { %v4481_v19 = vadd.f32 %v4480_v60, %v9949_v4 }
 0x256   :  { %vm4813_vm7 = vcmp.gt.f32.partialorder %v4479_v38, 0.0  ;;  %v4845_v9 = vmul.f32 0.2, %v4479_v38 }
 0x257   :  { %vm4814_vm8 = vcmp.gt.f32.partialorder %v4481_v19, 0.0  ;;  %v4846_v43 = vmul.f32 0.2, %v4481_v19 }
 0x258   :  { %v4877_v50 = vsel %vm4813_vm7, %v4479_v38, %v4845_v9 }
 0x259   :  { %4909 = vst [vmem:[%s10075_s4 + $0xb0] sm:$0xff] %v4877_v50  ;;  %v4878_v15 = vsel %vm4814_vm8, %v4481_v19, %v4846_v43 }
 0x25a   :  { %4910 = vst [vmem:[%s10075_s4 + $0xb8] sm:$0xff] %v4878_v15 }
 0x276   :  { %v4549_v46 = vpop.f32.mrb[8].mxu0 }
 0x277   :  { %v4550_v59 = vadd.f32 %v4549_v46, %v9939_v12  ;;  %v4551_v23 = vpop.f32.mrb[9].mxu0 }
 0x278   :  { %v4552_v24 = vadd.f32 %v4551_v23, %v9939_v12 }
 0x279   :  { %vm4799_vm9 = vcmp.gt.f32.partialorder %v4550_v59, 0.0  ;;  %v4831_v21 = vmul.f32 0.2, %v4550_v59 }
 0x27a   :  { %vm4800_vm10 = vcmp.gt.f32.partialorder %v4552_v24, 0.0  ;;  %v4832_v54 = vmul.f32 0.2, %v4552_v24 }
 0x27b   :  { %v4863_v37 = vsel %vm4799_vm9, %v4550_v59, %v4831_v21 }
 0x27c   :  { %4895 = vst [vmem:[%s10075_s4 + $0x40] sm:$0xff] %v4863_v37  ;;  %v4864_v17 = vsel %vm4800_vm10, %v4552_v24, %v4832_v54 }
 0x27d   :  { %4896 = vst [vmem:[%s10075_s4 + $0x48] sm:$0xff] %v4864_v17 }
 0x287   :  { %v4555_v49 = vpop.f32.mrb[10].mxu0 }
 0x288   :  { %v4556_v33 = vadd.f32 %v4555_v49, %v9949_v4  ;;  %v4557_v13 = vpop.f32.mrb[11].mxu0 }
 0x289   :  { %v4558_v25 = vadd.f32 %v4557_v13, %v9949_v4 }
 0x28a   :  { %vm4815_vm11 = vcmp.gt.f32.partialorder %v4556_v33, 0.0  ;;  %v4847_v53 = vmul.f32 0.2, %v4556_v33 }
 0x28b   :  { %vm4816_vm12 = vcmp.gt.f32.partialorder %v4558_v25, 0.0  ;;  %v4848_v28 = vmul.f32 0.2, %v4558_v25 }
 0x28c   :  { %v4879_v5 = vsel %vm4815_vm11, %v4556_v33, %v4847_v53 }
 0x28d   :  { %4911 = vst [vmem:[%s10075_s4 + $0xc0] sm:$0xff] %v4879_v5  ;;  %v4880_v61 = vsel %vm4816_vm12, %v4558_v25, %v4848_v28 }
 0x28e   :  { %4912 = vst [vmem:[%s10075_s4 + $0xc8] sm:$0xff] %v4880_v61 }
 0x297   :  { %v4626_v11 = vpop.f32.mrb[8].mxu1 }
 0x298   :  { %v4627_v62 = vadd.f32 %v4626_v11, %v9939_v12  ;;  %v4628_v40 = vpop.f32.mrb[9].mxu1 }
 0x299   :  { %v4629_v18 = vadd.f32 %v4628_v40, %v9939_v12 }
 0x29a   :  { %vm4801_vm13 = vcmp.gt.f32.partialorder %v4627_v62, 0.0  ;;  %v4833_v10 = vmul.f32 0.2, %v4627_v62 }
 0x29b   :  { %vm4802_vm14 = vcmp.gt.f32.partialorder %v4629_v18, 0.0  ;;  %v4834_v29 = vmul.f32 0.2, %v4629_v18  ;;  %v4632_v31 = vpop.f32.mrb[10].mxu1 }
 0x29c   :  { %v4865_v2 = vsel %vm4801_vm13, %v4627_v62, %v4833_v10  ;;  %v4633_v14 = vadd.f32 %v4632_v31, %v9949_v4  ;;  %v4634_v32 = vpop.f32.mrb[11].mxu1 }
 0x29d   :  { %4897 = vst [vmem:[%s10075_s4 + $0x50] sm:$0xff] %v4865_v2  ;;  %v4866_v1 = vsel %vm4802_vm14, %v4629_v18, %v4834_v29  ;;  %v4635_v22 = vadd.f32 %v4634_v32, %v9949_v4 }
 0x29e   :  { %4898 = vst [vmem:[%s10075_s4 + $0x58] sm:$0xff] %v4866_v1  ;;  %vm4817_vm15 = vcmp.gt.f32.partialorder %v4633_v14, 0.0  ;;  %v4849_v35 = vmul.f32 0.2, %v4633_v14 }
 0x29f   :  { %vm4818_vm0 = vcmp.gt.f32.partialorder %v4635_v22, 0.0  ;;  %v4850_v6 = vmul.f32 0.2, %v4635_v22 }
 0x2a0   :  { %v4881_v55 = vsel %vm4817_vm15, %v4633_v14, %v4849_v35 }
 0x2a1   :  { %4913 = vst [vmem:[%s10075_s4 + $0xd0] sm:$0xff] %v4881_v55  ;;  %v4882_v52 = vsel %vm4818_vm0, %v4635_v22, %v4850_v6 }
 0x2a2   :  { %4914 = vst [vmem:[%s10075_s4 + $0xd8] sm:$0xff] %v4882_v52 }
 0x2b7   :  { %v4703_v57 = vpop.f32.mrb[12].mxu0 }
 0x2b8   :  { %v4704_v56 = vadd.f32 %v4703_v57, %v9939_v12  ;;  %v4705_v42 = vpop.f32.mrb[13].mxu0 }
 0x2b9   :  { %v4706_v30 = vadd.f32 %v4705_v42, %v9939_v12 }
 0x2ba   :  { %vm4803_vm1 = vcmp.gt.f32.partialorder %v4704_v56, 0.0  ;;  %v4835_v45 = vmul.f32 0.2, %v4704_v56 }
 0x2bb   :  { %vm4804_vm2 = vcmp.gt.f32.partialorder %v4706_v30, 0.0  ;;  %v4836_v48 = vmul.f32 0.2, %v4706_v30  ;;  %v4709_v39 = vpop.f32.mrb[14].mxu0 }
 0x2bc   :  { %v4867_v47 = vsel %vm4803_vm1, %v4704_v56, %v4835_v45  ;;  %v4710_v27 = vadd.f32 %v4709_v39, %v9949_v4  ;;  %v4711_v34 = vpop.f32.mrb[15].mxu0 }
 0x2bd   :  { %4899 = vst [vmem:[%s10075_s4 + $0x60] sm:$0xff] %v4867_v47  ;;  %v4868_v0 = vsel %vm4804_vm2, %v4706_v30, %v4836_v48  ;;  %v4712_v58 = vadd.f32 %v4711_v34, %v9949_v4 }
 0x2be   :  { %4900 = vst [vmem:[%s10075_s4 + $0x68] sm:$0xff] %v4868_v0  ;;  %vm4819_vm3 = vcmp.gt.f32.partialorder %v4710_v27, 0.0  ;;  %v4851_v20 = vmul.f32 0.2, %v4710_v27 }
 0x2bf   :  { %vm4820_vm4 = vcmp.gt.f32.partialorder %v4712_v58, 0.0  ;;  %v4852_v16 = vmul.f32 0.2, %v4712_v58 }
 0x2c0   :  { %v4883_v44 = vsel %vm4819_vm3, %v4710_v27, %v4851_v20 }
 0x2c1   :  { %4915 = vst [vmem:[%s10075_s4 + $0xe0] sm:$0xff] %v4883_v44  ;;  %v4884_v26 = vsel %vm4820_vm4, %v4712_v58, %v4852_v16 }
 0x2c2   :  { %4916 = vst [vmem:[%s10075_s4 + $0xe8] sm:$0xff] %v4884_v26 }
 0x2ce   :  { %v4780_v7 = vpop.f32.mrb[12].mxu1 }
 0x2cf   :  { %v4781_v63 = vadd.f32 %v4780_v7, %v9939_v12  ;;  %v4782_v36 = vpop.f32.mrb[13].mxu1 }
 0x2d0   :  { %v4783_v51 = vadd.f32 %v4782_v36, %v9939_v12 }
 0x2d1   :  { %vm4805_vm5 = vcmp.gt.f32.partialorder %v4781_v63, 0.0  ;;  %v4837_v41 = vmul.f32 0.2, %v4781_v63 }
 0x2d2   :  { %vm4806_vm6 = vcmp.gt.f32.partialorder %v4783_v51, 0.0  ;;  %v4838_v3 = vmul.f32 0.2, %v4783_v51  ;;  %v4786_v8 = vpop.f32.mrb[14].mxu1 }
 0x2d3   :  { %v4869_v38 = vsel %vm4805_vm5, %v4781_v63, %v4837_v41  ;;  %v4787_v60 = vadd.f32 %v4786_v8, %v9949_v4  ;;  %v4788_v19 = vpop.f32.mrb[15].mxu1 }
 0x2d4   :  { %4901 = vst [vmem:[%s10075_s4 + $0x70] sm:$0xff] %v4869_v38  ;;  %v4870_v9 = vsel %vm4806_vm6, %v4783_v51, %v4838_v3  ;;  %v4789_v43 = vadd.f32 %v4788_v19, %v9949_v4 }
 0x2d5   :  { %4902 = vst [vmem:[%s10075_s4 + $0x78] sm:$0xff] %v4870_v9  ;;  %vm4821_vm7 = vcmp.gt.f32.partialorder %v4787_v60, 0.0  ;;  %v4853_v12 = vmul.f32 0.2, %v4787_v60 }
 0x2d6   :  { %vm4822_vm8 = vcmp.gt.f32.partialorder %v4789_v43, 0.0  ;;  %v4854_v50 = vmul.f32 0.2, %v4789_v43 }
 0x2d7   :  { %v4885_v15 = vsel %vm4821_vm7, %v4787_v60, %v4853_v12 }
 0x2d8   :  { %4917 = vst [vmem:[%s10075_s4 + $0xf0] sm:$0xff] %v4885_v15  ;;  %v4886_v46 = vsel %vm4822_vm8, %v4789_v43, %v4854_v50 }
 0x2d9   :  { %4918 = vst [vmem:[%s10075_s4 + $0xf8] sm:$0xff] %v4886_v46 }

</bundles_post_ra>
